<compile_context>
chip_gen: v5e
topology: v5e:2x2
jax: 0.10.0
libtpu: 0.0.40
codegen_flags: <defaults>
</compile_context>

<pallas_src>
import jax
import jax.numpy as jnp
from jax.experimental import pallas as pl
from jax.experimental.pallas import tpu as pltpu

HIDDEN = 1024
NUM_CLASSES = 2


def roberta_head_kernel(x_ref, w1_ref, b1_ref, w2_ref, b2_ref, o_ref):
    # pre_classifier: Linear(1024, 1024) — bf16 operands, f32 MXU accumulation.
    x = x_ref[...].astype(jnp.bfloat16)
    h = jnp.dot(x, w1_ref[...], preferred_element_type=jnp.float32) + b1_ref[...]
    # ReLU (in f32, before the bf16 round feeding the classifier matmul).
    h = jnp.maximum(h, 0.0)
    # Dropout(p=0.3): identity (inference / eval semantics).
    # TODO(synk): training-mode dropout would use pltpu.prng_seed + pltpu.prng_random_bits.
    # classifier: Linear(1024, 2); single unpadded (tb, 2) store.
    out2 = (
        jnp.dot(h.astype(jnp.bfloat16), w2_ref[...], preferred_element_type=jnp.float32)
        + b2_ref[...]
    )
    o_ref[...] = out2.astype(o_ref.dtype)


def _pick_batch_tile(B, cap=512):
    """Largest sublane-aligned (multiple of 8) tile <= cap that divides B,
    preferring a tile that leaves >= 2 grid steps so the 'parallel' batch axis
    actually shards across v7x's two TensorCores."""
    candidates = [t for t in range(8, min(B, cap) + 1, 8) if B % t == 0]
    if not candidates:
        return B  # tiny / ragged batch: one full-batch tile (block == full extent)
    multi_step = [t for t in candidates if B // t >= 2]
    return max(multi_step) if multi_step else max(candidates)


def roberta_class_forward(x, w1, b1, w2, b2, *, tb=None):
    """x: [B, 1024] f32; w1: [1024,1024] bf16; b1: [1,1024] f32;
    w2: [1024,2] bf16; b2: [1,2] f32.  Returns logits [B, 2] f32."""
    B, H = x.shape
    if tb is None:
        tb = _pick_batch_tile(B)
    assert B % tb == 0, "batch must be divisible by the batch tile"
    grid = (B // tb,)

    flops = 2 * B * H * H + 2 * B * H * NUM_CLASSES
    bytes_accessed = (
        x.size * x.dtype.itemsize
        + w1.size * w1.dtype.itemsize
        + b1.size * b1.dtype.itemsize
        + w2.size * w2.dtype.itemsize
        + b2.size * b2.dtype.itemsize
        + B * NUM_CLASSES * 4
    )

    # Weights/biases: constant index maps (VMEM-resident across batch steps),
    # single-buffered to reclaim the dead second pipeline buffer.
    resident = dict(pipeline_mode=pl.Buffered(1))

    return pl.pallas_call(
        roberta_head_kernel,
        out_shape=jax.ShapeDtypeStruct((B, NUM_CLASSES), jnp.float32),
        grid=grid,
        in_specs=[
            pl.BlockSpec((tb, H), lambda i: (i, 0)),                          # x (batch-tiled)
            pl.BlockSpec((H, H), lambda i: (0, 0), **resident),               # W1 bf16
            pl.BlockSpec((1, H), lambda i: (0, 0), **resident),               # b1
            pl.BlockSpec((H, NUM_CLASSES), lambda i: (0, 0), **resident),     # W2 bf16
            pl.BlockSpec((1, NUM_CLASSES), lambda i: (0, 0), **resident),     # b2
        ],
        out_specs=pl.BlockSpec((tb, NUM_CLASSES), lambda i: (i, 0)),
        compiler_params=pltpu.CompilerParams(
            dimension_semantics=("parallel",)),
        cost_estimate=pl.CostEstimate(
            flops=flops, transcendentals=0, bytes_accessed=bytes_accessed),
    )(x, w1, b1, w2, b2)


def init_params(key):
    """Deterministic init matching torch.nn.Linear's U(-1/sqrt(in), 1/sqrt(in)).

    Weights are stored pre-transposed as [in, out] (so the kernel does x @ W),
    and quantized to bfloat16 for HBM residency; biases stay f32.
    """
    k1, k2, k3, k4 = jax.random.split(key, 4)
    bound = 1.0 / jnp.sqrt(jnp.float32(HIDDEN))
    w1 = jax.random.uniform(k1, (HIDDEN, HIDDEN), jnp.float32, -bound, bound)
    b1 = jax.random.uniform(k2, (1, HIDDEN), jnp.float32, -bound, bound)
    w2 = jax.random.uniform(k3, (HIDDEN, NUM_CLASSES), jnp.float32, -bound, bound)
    b2 = jax.random.uniform(k4, (1, NUM_CLASSES), jnp.float32, -bound, bound)
    return w1.astype(jnp.bfloat16), b1, w2.astype(jnp.bfloat16), b2


def reference_forward(x, w1_bf16, b1, w2_bf16, b2):
    """Pure-JAX reference with the same bf16-rounded operands as the kernel."""
    xb = x.astype(jnp.bfloat16).astype(jnp.float32)
    w1 = w1_bf16.astype(jnp.float32)
    w2 = w2_bf16.astype(jnp.float32)
    h = jnp.maximum(xb @ w1 + b1, 0.0)
    hb = h.astype(jnp.bfloat16).astype(jnp.float32)
    return hb @ w2 + b2


if __name__ == "__main__":
    key = jax.random.PRNGKey(0)
    kx, kp = jax.random.split(key)

    B = 8  # small batch; hidden must be 1024 per the module definition
    # Forward treats "input_ids" as a float feature tensor fed into Linear(1024,.)
    x = jax.random.normal(kx, (B, HIDDEN), jnp.float32)
    # attention_mask / token_type_ids are unused by the module's forward.

    w1, b1, w2, b2 = init_params(kp)

    logits = roberta_class_forward(x, w1, b1, w2, b2)
    logits = jax.block_until_ready(logits)

    ref = reference_forward(x, w1, b1, w2, b2)
    assert logits.shape == (B, NUM_CLASSES)
    assert jnp.allclose(logits, ref, atol=1e-2, rtol=1e-2), "mismatch vs JAX reference"

    print("KERNEL_OK")
</pallas_src>

<mosaic_0001>
module attributes {stable_mosaic.version = 11 : i64} {
  func.func @roberta_head_kernel(%arg0: i32, %arg1: memref<8x1024xf32, #tpu.memory_space<vmem>>, %arg2: memref<1024x1024xbf16, #tpu.memory_space<vmem>>, %arg3: memref<1x1024xf32, #tpu.memory_space<vmem>>, %arg4: memref<1024x2xbf16, #tpu.memory_space<vmem>>, %arg5: memref<1x2xf32, #tpu.memory_space<vmem>>, %arg6: memref<8x2xf32, #tpu.memory_space<vmem>>) attributes {dimension_semantics = [#tpu.dimension_semantics<parallel>], iteration_bounds = array<i64: 1>, scalar_prefetch = 0 : i64, scratch_operands = 0 : i64, tpu.core_type = #tpu.core_type<tc>, window_params = [{transform_indices = @transform_0, window_bounds = array<i64: 8, 1024>}, {pipeline_mode = #tpu.pipeline_mode<synchronous>, transform_indices = @transform_1, window_bounds = array<i64: 1024, 1024>}, {pipeline_mode = #tpu.pipeline_mode<synchronous>, transform_indices = @transform_2, window_bounds = array<i64: 1, 1024>}, {pipeline_mode = #tpu.pipeline_mode<synchronous>, transform_indices = @transform_3, window_bounds = array<i64: 1024, 2>}, {pipeline_mode = #tpu.pipeline_mode<synchronous>, transform_indices = @transform_4, window_bounds = array<i64: 1, 2>}, {transform_indices = @transform_5, window_bounds = array<i64: 8, 2>}]} {
    %c0 = arith.constant 0 : index
    %c0_0 = arith.constant 0 : index
    %0 = vector.load %arg1[%c0, %c0_0] : memref<8x1024xf32, #tpu.memory_space<vmem>>, vector<8x1024xf32>
    %1 = arith.truncf %0 : vector<8x1024xf32> to vector<8x1024xbf16>
    %c0_1 = arith.constant 0 : index
    %c0_2 = arith.constant 0 : index
    %2 = vector.load %arg2[%c0_1, %c0_2] : memref<1024x1024xbf16, #tpu.memory_space<vmem>>, vector<1024x1024xbf16>
    %cst = arith.constant dense<0.000000e+00> : vector<8x1024xf32>
    %3 = tpu.matmul %1, %2, %cst {dimension_numbers = #tpu.dot_dimension_numbers<[1], [0], [0], [1], [0, 0, 1, 1], [], []>} : vector<8x1024xbf16>, vector<1024x1024xbf16>, vector<8x1024xf32> -> vector<8x1024xf32>
    %c0_3 = arith.constant 0 : index
    %c0_4 = arith.constant 0 : index
    %4 = vector.load %arg3[%c0_3, %c0_4] : memref<1x1024xf32, #tpu.memory_space<vmem>>, vector<1x1024xf32>
    %5 = vector.broadcast %4 : vector<1x1024xf32> to vector<8x1024xf32>
    %6 = arith.addf %3, %5 : vector<8x1024xf32>
    %cst_5 = arith.constant 0.000000e+00 : f32
    %7 = vector.broadcast %cst_5 : f32 to vector<8x1024xf32>
    %8 = arith.maximumf %6, %7 : vector<8x1024xf32>
    %9 = arith.truncf %8 : vector<8x1024xf32> to vector<8x1024xbf16>
    %c0_6 = arith.constant 0 : index
    %c0_7 = arith.constant 0 : index
    %10 = vector.load %arg4[%c0_6, %c0_7] : memref<1024x2xbf16, #tpu.memory_space<vmem>>, vector<1024x2xbf16>
    %cst_8 = arith.constant dense<0.000000e+00> : vector<8x2xf32>
    %11 = tpu.matmul %9, %10, %cst_8 {dimension_numbers = #tpu.dot_dimension_numbers<[1], [0], [0], [1], [0, 0, 1, 1], [], []>} : vector<8x1024xbf16>, vector<1024x2xbf16>, vector<8x2xf32> -> vector<8x2xf32>
    %c0_9 = arith.constant 0 : index
    %c0_10 = arith.constant 0 : index
    %12 = vector.load %arg5[%c0_9, %c0_10] : memref<1x2xf32, #tpu.memory_space<vmem>>, vector<1x2xf32>
    %13 = vector.broadcast %12 : vector<1x2xf32> to vector<8x2xf32>
    %14 = arith.addf %11, %13 : vector<8x2xf32>
    %c0_11 = arith.constant 0 : index
    %c0_12 = arith.constant 0 : index
    %15 = vector.load %arg6[%c0_11, %c0_12] : memref<8x2xf32, #tpu.memory_space<vmem>>, vector<8x2xf32>
    tpu.vector_store %arg6[%c0_11, %c0_12], %14 {strides = array<i32>} : memref<8x2xf32, #tpu.memory_space<vmem>>, vector<8x2xf32>,
    return
  }
  func.func @transform_0(%arg0: i32) -> (i32, i32) {
    %c0_i32 = arith.constant 0 : i32
    %c0_i32_0 = arith.constant 0 : i32
    return %arg0, %c0_i32 : i32, i32
  }
  func.func @transform_1(%arg0: i32) -> (i32, i32) {
    %c0_i32 = arith.constant 0 : i32
    %c0_i32_0 = arith.constant 0 : i32
    %c0_i32_1 = arith.constant 0 : i32
    return %c0_i32, %c0_i32_0 : i32, i32
  }
  func.func @transform_2(%arg0: i32) -> (i32, i32) {
    %c0_i32 = arith.constant 0 : i32
    %c0_i32_0 = arith.constant 0 : i32
    %c0_i32_1 = arith.constant 0 : i32
    return %c0_i32, %c0_i32_0 : i32, i32
  }
  func.func @transform_3(%arg0: i32) -> (i32, i32) {
    %c0_i32 = arith.constant 0 : i32
    %c0_i32_0 = arith.constant 0 : i32
    %c0_i32_1 = arith.constant 0 : i32
    return %c0_i32, %c0_i32_0 : i32, i32
  }
  func.func @transform_4(%arg0: i32) -> (i32, i32) {
    %c0_i32 = arith.constant 0 : i32
    %c0_i32_0 = arith.constant 0 : i32
    %c0_i32_1 = arith.constant 0 : i32
    return %c0_i32, %c0_i32_0 : i32, i32
  }
  func.func @transform_5(%arg0: i32) -> (i32, i32) {
    %c0_i32 = arith.constant 0 : i32
    %c0_i32_0 = arith.constant 0 : i32
    return %arg0, %c0_i32 : i32, i32
  }
}

</mosaic_0001>

<bundles_post_ra>
// kernel: tpu_custom_call.1
= control target key start
LH: loop header
LB: loop body
LE: loop exit
PB: predicated region body
PF: predicated region fallthrough
CT: control target
= control target key end

     0   :  { %10 = vsyncpa [#allocation3], 0  ;;  %s8045_s0 = inlined_call_operand.hbm [shape: f32[8,1024], index: 0, kind: input, shape index: {}]   ;;  %s8046_s1 = inlined_call_operand.hbm [shape: bf16[1024,1024], index: 1, kind: input, shape index: {}]   ;;  %s8047_s2 = inlined_call_operand.hbm [shape: f32[1,1024], index: 2, kind: input, shape index: {}]   ;;  %s8048_s3 = inlined_call_operand.vmem [shape: bf16[1024,2], index: 3, kind: input, shape index: {}]   ;;  %s8049_s4 = inlined_call_operand.hbm [shape: f32[1,2], index: 4, kind: input, shape index: {}]   ;;  %s8050_s5 = inlined_call_operand.vmem [shape: f32[8,2], index: 5, kind: output, shape index: {}]  }
   0x1   :  { %11 = vsyncpa [#allocation5], 0  ;;  %s28_s20 = sshll.u32 %s8046_s1, 4  ;;  %s29_s20 = int_to_ptr.hbm [resolvable:$true] %s28_s20 }
   0x2   :  { %12 = vsyncpa [#allocation8], 0  ;;  %s7652_s21 = smov [#allocation4]   ;;  %s18_s25 = sshll.u32 %s8045_s0, 4  ;;  %s19_s25 = int_to_ptr.hbm [resolvable:$true] %s18_s25 }
   0x3   :  { %s30_s22 = sshll.u32 %s7652_s21, 4  ;;  %s7653_s26 = smov 512   ;;  %s31_s22 = int_to_ptr.vmem [resolvable:$true] %s30_s22 }
   0x4   :  { %s7654_s27 = smov 32   ;;  %s7655_s28 = smov [#allocation2]  }
   0x5   :  { %36 = dma.hbm_to_vmem [thread:$0]  %s29_s20, 65536, %s31_s22, [#allocation5], %s7653_s26, %s7653_s26, %s7654_s27  }
   0x6   :  { %s20_s29 = sshll.u32 %s7655_s28, 4  ;;  %s42_s7 = sshll.u32 %s8047_s2, 4  ;;  %s21_s29 = int_to_ptr.vmem [resolvable:$true] %s20_s29  ;;  %s43_s7 = int_to_ptr.hbm [resolvable:$true] %s42_s7 }
   0x7   :  { %23 = dma.hbm_to_vmem [thread:$0]  %s19_s25, 1024, %s21_s29, [#allocation3]  }
   0x8   :  { %s55_s9 = sshll.u32 %s8049_s4, 4  ;;  %s7656_s10 = smov [#allocation6]   ;;  %s56_s9 = int_to_ptr.hbm [resolvable:$true] %s55_s9 }
   0x9   :  { %s44_s11 = sshll.u32 %s7656_s10, 4  ;;  %s7657_s0 = smov [#allocation7]   ;;  %s45_s11 = int_to_ptr.vmem [resolvable:$true] %s44_s11 }
   0xa   :  { %47 = dma.hbm_to_vmem [thread:$0]  %s43_s7, 128, %s45_s11, [#allocation5]  }
   0xb   :  { %s57_s12 = sshll.u32 %s7657_s0, 4  ;;  %s58_s12 = int_to_ptr.vmem [resolvable:$true] %s57_s12 }
   0xc   :  { %60 = dma.hbm_to_vmem [thread:$0]  %s56_s9, 16, %s58_s12, [#allocation8]  }
   0xd   :  { %7646 = dma.done.wait [#allocation3], 1024  }
   0xe   :  { %7647 = vsyncadd [#allocation3], 4294966272 }
   0xf   :  { %7648 = dma.done.wait [#allocation5], 65664  }
  0x10   :  { %7649 = vsyncadd [#allocation5], 4294901632 }
  0x11   :  { %7650 = dma.done.wait [#allocation8], 16  }
  0x12   :  { %7651 = vsyncadd [#allocation8], 4294967280  ;;  %v4886_v0 = vld [vmem:[#allocation4 + $0x1c0] sm:$0xf]  ;;  %vm4651_vm0 = vcmask 15360  }
  0x13   :  { %v7024_v1 = vld [vmem:[#allocation4 + $0x1dc] sm:$0xf0] }
  0x14   :  { %v5142_v2 = vld [vmem:[#allocation4 + $0x3c0] sm:$0xf]  ;;  %v4887_v3 = vor.u32 %v7024_v1, %v4886_v0 }
  0x15   :  { %v7088_v4 = vld [vmem:[#allocation4 + $0x3dc] sm:$0xf0] }
  0x16   :  { %v5398_v5 = vld [vmem:[#allocation4 + $0x5c0] sm:$0xf]  ;;  %v5143_v7 = vor.u32 %v7088_v4, %v5142_v2  ;;  %3183 = vmatpush.bf16.msra.mxu0 %v4887_v3 }
  0x17   :  { %v7152_v6 = vld [vmem:[#allocation4 + $0x5dc] sm:$0xf0] }
  0x18   :  { %v5399_v8 = vor.u32 %v7152_v6, %v5398_v5  ;;  %v5654_v9 = vld [vmem:[#allocation4 + $0x7c0] sm:$0xf]  ;;  %3196 = vmatpush.bf16.msra.mxu1 %v5143_v7 }
  0x19   :  { %v7216_v10 = vld [vmem:[#allocation4 + $0x7dc] sm:$0xf0] }
  0x1a   :  { %v4854_v11 = vld [vmem:[#allocation4 + $0x180] sm:$0xf]  ;;  %v5655_v12 = vor.u32 %v7216_v10, %v5654_v9  ;;  %3209 = vmatpush.bf16.msra.mxu2 %v5399_v8 }
  0x1b   :  { %v7016_v13 = vld [vmem:[#allocation4 + $0x19c] sm:$0xf0] }
  0x1c   :  { %v5110_v14 = vld [vmem:[#allocation4 + $0x380] sm:$0xf]  ;;  %v4855_v16 = vor.u32 %v7016_v13, %v4854_v11  ;;  %3222 = vmatpush.bf16.msra.mxu3 %v5655_v12 }
  0x1d   :  { %v7080_v15 = vld [vmem:[#allocation4 + $0x39c] sm:$0xf0] }
  0x1e   :  { %v5111_v17 = vor.u32 %v7080_v15, %v5110_v14  ;;  %v5366_v18 = vld [vmem:[#allocation4 + $0x580] sm:$0xf]  ;;  %3184 = vmatpush.bf16.msra.mxu0 %v4855_v16 }
  0x1f   :  { %v7144_v19 = vld [vmem:[#allocation4 + $0x59c] sm:$0xf0] }
  0x20   :  { %v5622_v20 = vld [vmem:[#allocation4 + $0x780] sm:$0xf]  ;;  %v5367_v21 = vor.u32 %v7144_v19, %v5366_v18  ;;  %3197 = vmatpush.bf16.msra.mxu1 %v5111_v17 }
  0x21   :  { %v7208_v22 = vld [vmem:[#allocation4 + $0x79c] sm:$0xf0] }
  0x22   :  { %v4822_v23 = vld [vmem:[#allocation4 + $0x140] sm:$0xf]  ;;  %v5623_v25 = vor.u32 %v7208_v22, %v5622_v20  ;;  %3210 = vmatpush.bf16.msra.mxu2 %v5367_v21 }
  0x23   :  { %v7008_v24 = vld [vmem:[#allocation4 + $0x15c] sm:$0xf0] }
  0x24   :  { %v5078_v26 = vld [vmem:[#allocation4 + $0x340] sm:$0xf]  ;;  %v4823_v29 = vor.u32 %v7008_v24, %v4822_v23  ;;  %3223 = vmatpush.bf16.msra.mxu3 %v5623_v25 }
  0x25   :  { %v7072_v27 = vld [vmem:[#allocation4 + $0x35c] sm:$0xf0] }
  0x26   :  { %v5334_v28 = vld [vmem:[#allocation4 + $0x540] sm:$0xf]  ;;  %v5079_v33 = vor.u32 %v7072_v27, %v5078_v26  ;;  %3185 = vmatpush.bf16.msra.mxu0 %v4823_v29 }
  0x27   :  { %v7136_v30 = vld [vmem:[#allocation4 + $0x55c] sm:$0xf0] }
  0x28   :  { %v5590_v31 = vld [vmem:[#allocation4 + $0x740] sm:$0xf]  ;;  %v5335_v34 = vor.u32 %v7136_v30, %v5334_v28  ;;  %3198 = vmatpush.bf16.msra.mxu1 %v5079_v33 }
  0x29   :  { %v7200_v32 = vld [vmem:[#allocation4 + $0x75c] sm:$0xf0] }
  0x2a   :  { %v4790_v35 = vld [vmem:[#allocation4 + $0x100] sm:$0xf]  ;;  %v5591_v38 = vor.u32 %v7200_v32, %v5590_v31  ;;  %3211 = vmatpush.bf16.msra.mxu2 %v5335_v34 }
  0x2b   :  { %v7000_v36 = vld [vmem:[#allocation4 + $0x11c] sm:$0xf0] }
  0x2c   :  { %v5046_v37 = vld [vmem:[#allocation4 + $0x300] sm:$0xf]  ;;  %v4791_v44 = vor.u32 %v7000_v36, %v4790_v35  ;;  %3224 = vmatpush.bf16.msra.mxu3 %v5591_v38 }
  0x2d   :  { %v7064_v39 = vld [vmem:[#allocation4 + $0x31c] sm:$0xf0] }
  0x2e   :  { %v5302_v40 = vld [vmem:[#allocation4 + $0x500] sm:$0xf]  ;;  %v5047_v45 = vor.u32 %v7064_v39, %v5046_v37  ;;  %3186 = vmatpush.bf16.msra.mxu0 %v4791_v44 }
  0x2f   :  { %v7128_v41 = vld [vmem:[#allocation4 + $0x51c] sm:$0xf0] }
  0x30   :  { %v5558_v42 = vld [vmem:[#allocation4 + $0x700] sm:$0xf]  ;;  %v5303_v46 = vor.u32 %v7128_v41, %v5302_v40  ;;  %3199 = vmatpush.bf16.msra.mxu1 %v5047_v45 }
  0x31   :  { %v7192_v43 = vld [vmem:[#allocation4 + $0x71c] sm:$0xf0] }
  0x32   :  { %v4758_v47 = vld [vmem:[#allocation4 + $0xc0] sm:$0xf]  ;;  %v5559_v50 = vor.u32 %v7192_v43, %v5558_v42  ;;  %3212 = vmatpush.bf16.msra.mxu2 %v5303_v46 }
  0x33   :  { %v6992_v48 = vld [vmem:[#allocation4 + $0xdc] sm:$0xf0] }
  0x34   :  { %v5014_v49 = vld [vmem:[#allocation4 + $0x2c0] sm:$0xf]  ;;  %v4759_v56 = vor.u32 %v6992_v48, %v4758_v47  ;;  %3225 = vmatpush.bf16.msra.mxu3 %v5559_v50 }
  0x35   :  { %v7056_v51 = vld [vmem:[#allocation4 + $0x2dc] sm:$0xf0] }
  0x36   :  { %v5270_v52 = vld [vmem:[#allocation4 + $0x4c0] sm:$0xf]  ;;  %v5015_v57 = vor.u32 %v7056_v51, %v5014_v49  ;;  %3187 = vmatpush.bf16.msra.mxu0 %v4759_v56 }
  0x37   :  { %v7120_v53 = vld [vmem:[#allocation4 + $0x4dc] sm:$0xf0] }
  0x38   :  { %v5526_v54 = vld [vmem:[#allocation4 + $0x6c0] sm:$0xf]  ;;  %v5271_v58 = vor.u32 %v7120_v53, %v5270_v52  ;;  %3200 = vmatpush.bf16.msra.mxu1 %v5015_v57 }
  0x39   :  { %v7184_v55 = vld [vmem:[#allocation4 + $0x6dc] sm:$0xf0] }
  0x3a   :  { %v4726_v59 = vld [vmem:[#allocation4 + $0x80] sm:$0xf]  ;;  %v5527_v62 = vor.u32 %v7184_v55, %v5526_v54  ;;  %3213 = vmatpush.bf16.msra.mxu2 %v5271_v58 }
  0x3b   :  { %v6984_v60 = vld [vmem:[#allocation4 + $0x9c] sm:$0xf0] }
  0x3c   :  { %v4982_v61 = vld [vmem:[#allocation4 + $0x280] sm:$0xf]  ;;  %v4727_v4 = vor.u32 %v6984_v60, %v4726_v59  ;;  %3226 = vmatpush.bf16.msra.mxu3 %v5527_v62 }
  0x3d   :  { %v7048_v63 = vld [vmem:[#allocation4 + $0x29c] sm:$0xf0] }
  0x3e   :  { %v5238_v0 = vld [vmem:[#allocation4 + $0x480] sm:$0xf]  ;;  %v4983_v5 = vor.u32 %v7048_v63, %v4982_v61  ;;  %3188 = vmatpush.bf16.msra.mxu0 %v4727_v4 }
  0x3f   :  { %v7112_v1 = vld [vmem:[#allocation4 + $0x49c] sm:$0xf0] }
  0x40   :  { %v5494_v2 = vld [vmem:[#allocation4 + $0x680] sm:$0xf]  ;;  %v5239_v6 = vor.u32 %v7112_v1, %v5238_v0  ;;  %3201 = vmatpush.bf16.msra.mxu1 %v4983_v5 }
  0x41   :  { %v7176_v3 = vld [vmem:[#allocation4 + $0x69c] sm:$0xf0] }
  0x42   :  { %v4694_v7 = vld [vmem:[#allocation4 + $0x40] sm:$0xf]  ;;  %v5495_v10 = vor.u32 %v7176_v3, %v5494_v2  ;;  %3214 = vmatpush.bf16.msra.mxu2 %v5239_v6  ;;  %v79_v3 = vld [vmem:[#allocation2 + $0x10] sm:$0xff] }
  0x43   :  { %v6976_v8 = vld [vmem:[#allocation4 + $0x5c] sm:$0xf0] }
  0x44   :  { %v4950_v9 = vld [vmem:[#allocation4 + $0x240] sm:$0xf]  ;;  %v4695_v16 = vor.u32 %v6976_v8, %v4694_v7  ;;  %3227 = vmatpush.bf16.msra.mxu3 %v5495_v10  ;;  %v7700_v8 = vpack.c.bf16 %v79_v3, %v79_v3  ;;  %v80_v10 = vld [vmem:[#allocation2 + $0x18] sm:$0xff] }
  0x45   :  { %v7040_v11 = vld [vmem:[#allocation4 + $0x25c] sm:$0xf0] }
  0x46   :  { %v5206_v12 = vld [vmem:[#allocation4 + $0x440] sm:$0xf]  ;;  %v4951_v19 = vor.u32 %v7040_v11, %v4950_v9  ;;  %3189 = vmatpush.bf16.msra.mxu0 %v4695_v16 }
  0x47   :  { %v7104_v13 = vld [vmem:[#allocation4 + $0x45c] sm:$0xf0] }
  0x48   :  { %v5462_v14 = vld [vmem:[#allocation4 + $0x640] sm:$0xf]  ;;  %v5207_v20 = vor.u32 %v7104_v13, %v5206_v12  ;;  %3202 = vmatpush.bf16.msra.mxu1 %v4951_v19  ;;  %v78_v19 = vld [vmem:[#allocation2 + $0x8] sm:$0xff] }
  0x49   :  { %v7168_v15 = vld [vmem:[#allocation4 + $0x65c] sm:$0xf0] }
  0x4a   :  { %v4662_v17 = vld [vmem:[#allocation4] sm:$0xf]  ;;  %v5463_v24 = vor.u32 %v7168_v15, %v5462_v14  ;;  %3215 = vmatpush.bf16.msra.mxu2 %v5207_v20  ;;  %v7704_v15 = vpack.c.bf16 %v80_v10, %v80_v10  ;;  %v5144_v10 = vld [vmem:[#allocation4 + $0x3e0] sm:$0xf0] }
  0x4b   :  { %v6968_v18 = vld [vmem:[#allocation4 + $0x1c] sm:$0xf0] }
  0x4c   :  { %v4918_v21 = vld [vmem:[#allocation4 + $0x200] sm:$0xf]  ;;  %v4663_v31 = vor.u32 %v6968_v18, %v4662_v17  ;;  %3228 = vmatpush.bf16.msra.mxu3 %v5463_v24 }
  0x4d   :  { %v7032_v22 = vld [vmem:[#allocation4 + $0x21c] sm:$0xf0] }
  0x4e   :  { %v5174_v23 = vld [vmem:[#allocation4 + $0x400] sm:$0xf]  ;;  %v4919_v35 = vor.u32 %v7032_v22, %v4918_v21  ;;  %3190 = vmatpush.bf16.msra.mxu0 %v4663_v31 }
  0x4f   :  { %v7096_v25 = vld [vmem:[#allocation4 + $0x41c] sm:$0xf0] }
  0x50   :  { %v5430_v26 = vld [vmem:[#allocation4 + $0x600] sm:$0xf]  ;;  %v5175_v36 = vor.u32 %v7096_v25, %v5174_v23  ;;  %3203 = vmatpush.bf16.msra.mxu1 %v4919_v35  ;;  %v7709_v25 = vpack.c.bf16 %v78_v19, %v78_v19 }
  0x51   :  { %v7160_v27 = vld [vmem:[#allocation4 + $0x61c] sm:$0xf0] }
  0x52   :  { %v5910_v28 = vld [vmem:[#allocation4 + $0x9c0] sm:$0xf]  ;;  %v5431_v39 = vor.u32 %v7160_v27, %v5430_v26  ;;  %3216 = vmatpush.bf16.msra.mxu2 %v5175_v36 }
  0x53   :  { %v7280_v29 = vld [vmem:[#allocation4 + $0x9dc] sm:$0xf0]  ;;  %3204 = vmatmul.bf16.vlgmr.msra.gmra.mxu1 %v7709_v25 }
  0x54   :  { %v6166_v30 = vld [vmem:[#allocation4 + $0xbc0] sm:$0xf]  ;;  %v5911_v40 = vor.u32 %v7280_v29, %v5910_v28  ;;  %3229 = vmatpush.bf16.msra.mxu3 %v5431_v39 }
  0x55   :  { %v7344_v32 = vld [vmem:[#allocation4 + $0xbdc] sm:$0xf0]  ;;  %3217 = vmatmul.bf16.vlgmr.msra.gmra.mxu2 %v7700_v8 }
  0x56   :  { %v6422_v33 = vld [vmem:[#allocation4 + $0xdc0] sm:$0xf]  ;;  %v6167_v41 = vor.u32 %v7344_v32, %v6166_v30  ;;  %3235 = vmatpush.bf16.msrb.mxu0 %v5911_v40 }
  0x57   :  { %v7408_v34 = vld [vmem:[#allocation4 + $0xddc] sm:$0xf0]  ;;  %3230 = vmatmul.bf16.vlgmr.msra.gmra.mxu3 %v7704_v15 }
  0x58   :  { %v6678_v37 = vld [vmem:[#allocation4 + $0xfc0] sm:$0xf]  ;;  %v6423_v42 = vor.u32 %v7408_v34, %v6422_v33  ;;  %3248 = vmatpush.bf16.msrb.mxu1 %v6167_v41 }
  0x59   :  { %v7472_v38 = vld [vmem:[#allocation4 + $0xfdc] sm:$0xf0] }
  0x5a   :  { %v5878_v43 = vld [vmem:[#allocation4 + $0x980] sm:$0xf]  ;;  %v6679_v46 = vor.u32 %v7472_v38, %v6678_v37  ;;  %3261 = vmatpush.bf16.msrb.mxu2 %v6423_v42 }
  0x5b   :  { %v7272_v44 = vld [vmem:[#allocation4 + $0x99c] sm:$0xf0] }
  0x5c   :  { %v6134_v45 = vld [vmem:[#allocation4 + $0xb80] sm:$0xf]  ;;  %v5879_v52 = vor.u32 %v7272_v44, %v5878_v43  ;;  %3274 = vmatpush.bf16.msrb.mxu3 %v6679_v46 }
  0x5d   :  { %v7336_v47 = vld [vmem:[#allocation4 + $0xb9c] sm:$0xf0] }
  0x5e   :  { %v6390_v48 = vld [vmem:[#allocation4 + $0xd80] sm:$0xf]  ;;  %v6135_v54 = vor.u32 %v7336_v47, %v6134_v45  ;;  %3236 = vmatpush.bf16.msrb.mxu0 %v5879_v52 }
  0x5f   :  { %v7400_v49 = vld [vmem:[#allocation4 + $0xd9c] sm:$0xf0] }
  0x60   :  { %v6646_v50 = vld [vmem:[#allocation4 + $0xf80] sm:$0xf]  ;;  %v6391_v55 = vor.u32 %v7400_v49, %v6390_v48  ;;  %3249 = vmatpush.bf16.msrb.mxu1 %v6135_v54 }
  0x61   :  { %v7464_v51 = vld [vmem:[#allocation4 + $0xf9c] sm:$0xf0] }
  0x62   :  { %v5846_v53 = vld [vmem:[#allocation4 + $0x940] sm:$0xf]  ;;  %v6647_v59 = vor.u32 %v7464_v51, %v6646_v50  ;;  %3262 = vmatpush.bf16.msrb.mxu2 %v6391_v55 }
  0x63   :  { %v7264_v56 = vld [vmem:[#allocation4 + $0x95c] sm:$0xf0] }
  0x64   :  { %v6102_v57 = vld [vmem:[#allocation4 + $0xb40] sm:$0xf]  ;;  %v5847_v0 = vor.u32 %v7264_v56, %v5846_v53  ;;  %3275 = vmatpush.bf16.msrb.mxu3 %v6647_v59 }
  0x65   :  { %v7328_v58 = vld [vmem:[#allocation4 + $0xb5c] sm:$0xf0] }
  0x66   :  { %v6358_v60 = vld [vmem:[#allocation4 + $0xd40] sm:$0xf]  ;;  %v6103_v1 = vor.u32 %v7328_v58, %v6102_v57  ;;  %3237 = vmatpush.bf16.msrb.mxu0 %v5847_v0 }
  0x67   :  { %v7392_v61 = vld [vmem:[#allocation4 + $0xd5c] sm:$0xf0] }
  0x68   :  { %v6614_v62 = vld [vmem:[#allocation4 + $0xf40] sm:$0xf]  ;;  %v6359_v5 = vor.u32 %v7392_v61, %v6358_v60  ;;  %3250 = vmatpush.bf16.msrb.mxu1 %v6103_v1 }
  0x69   :  { %v7456_v63 = vld [vmem:[#allocation4 + $0xf5c] sm:$0xf0] }
  0x6a   :  { %v5814_v2 = vld [vmem:[#allocation4 + $0x900] sm:$0xf]  ;;  %v6615_v11 = vor.u32 %v7456_v63, %v6614_v62  ;;  %3263 = vmatpush.bf16.msrb.mxu2 %v6359_v5  ;;  %v4888_v5 = vld [vmem:[#allocation4 + $0x1e0] sm:$0xf0] }
  0x6b   :  { %v77_v4 = vld [vmem:[#allocation2] sm:$0xff] }
  0x6c   :  { %v7256_v6 = vld [vmem:[#allocation4 + $0x91c] sm:$0xf0]  ;;  %v7702_v9 = vpack.c.bf16 %v77_v4, %v77_v4  ;;  %3276 = vmatpush.bf16.msrb.mxu3 %v6615_v11  ;;  %v7020_v4 = vld [vmem:[#allocation4 + $0x1c4] sm:$0xf] }
  0x6d   :  { %v6070_v7 = vld [vmem:[#allocation4 + $0xb00] sm:$0xf]  ;;  %v5815_v18 = vor.u32 %v7256_v6, %v5814_v2  ;;  %v7084_v6 = vld [vmem:[#allocation4 + $0x3c4] sm:$0xf] }
  0x6e   :  { %v7320_v12 = vld [vmem:[#allocation4 + $0xb1c] sm:$0xf0]  ;;  %3191 = vmatmul.bf16.vlgmr.msra.gmra.mxu0 %v7702_v9  ;;  %v7148_v11 = vld [vmem:[#allocation4 + $0x5c4] sm:$0xf] }
  0x6f   :  { %v6326_v13 = vld [vmem:[#allocation4 + $0xd00] sm:$0xf]  ;;  %v6071_v20 = vor.u32 %v7320_v12, %v6070_v7  ;;  %3238 = vmatpush.bf16.msrb.mxu0 %v5815_v18  ;;  %v5400_v12 = vld [vmem:[#allocation4 + $0x5e0] sm:$0xf0]  ;;  %v83_v18 = vld [vmem:[#allocation2 + $0x30] sm:$0xff] }
  0x70   :  { %v7384_v14 = vld [vmem:[#allocation4 + $0xd1c] sm:$0xf0] }
  0x71   :  { %v6582_v16 = vld [vmem:[#allocation4 + $0xf00] sm:$0xf]  ;;  %v6327_v21 = vor.u32 %v7384_v14, %v6326_v13  ;;  %3251 = vmatpush.bf16.msrb.mxu1 %v6071_v20  ;;  %v4891_v20 = vor.u32 %v7020_v4, %v4888_v5  ;;  %v4760_v4 = vld [vmem:[#allocation4 + $0xe0] sm:$0xf0] }
  0x72   :  { %v7448_v17 = vld [vmem:[#allocation4 + $0xf1c] sm:$0xf0]  ;;  %v7052_v5 = vld [vmem:[#allocation4 + $0x2c4] sm:$0xf] }
  0x73   :  { %v5782_v22 = vld [vmem:[#allocation4 + $0x8c0] sm:$0xf]  ;;  %v6583_v26 = vor.u32 %v7448_v17, %v6582_v16  ;;  %3264 = vmatpush.bf16.msrb.mxu2 %v6327_v21  ;;  %v7212_v16 = vld [vmem:[#allocation4 + $0x7c4] sm:$0xf] }
  0x74   :  { %v7248_v23 = vld [vmem:[#allocation4 + $0x8dc] sm:$0xf0]  ;;  %v5656_v17 = vld [vmem:[#allocation4 + $0x7e0] sm:$0xf0] }
  0x75   :  { %v6038_v24 = vld [vmem:[#allocation4 + $0xac0] sm:$0xf]  ;;  %v5783_v32 = vor.u32 %v7248_v23, %v5782_v22  ;;  %3277 = vmatpush.bf16.msrb.mxu3 %v6583_v26  ;;  %v7012_v21 = vld [vmem:[#allocation4 + $0x184] sm:$0xf]  ;;  %v84_v23 = vld [vmem:[#allocation2 + $0x38] sm:$0xff]  ;;  %v5403_v26 = vor.u32 %v7148_v11, %v5400_v12 }
  0x76   :  { %v7312_v27 = vld [vmem:[#allocation4 + $0xadc] sm:$0xf0]  ;;  %v5272_v11 = vld [vmem:[#allocation4 + $0x4e0] sm:$0xf0] }
  0x77   :  { %v6294_v28 = vld [vmem:[#allocation4 + $0xcc0] sm:$0xf]  ;;  %v6039_v33 = vor.u32 %v7312_v27, %v6038_v24  ;;  %3239 = vmatpush.bf16.msrb.mxu0 %v5783_v32  ;;  %v5147_v24 = vor.u32 %v7084_v6, %v5144_v10  ;;  %v4856_v27 = vld [vmem:[#allocation4 + $0x1a0] sm:$0xf0] }
  0x78   :  { %v7376_v29 = vld [vmem:[#allocation4 + $0xcdc] sm:$0xf0]  ;;  %v7140_v32 = vld [vmem:[#allocation4 + $0x584] sm:$0xf] }
  0x79   :  { %v6550_v30 = vld [vmem:[#allocation4 + $0xec0] sm:$0xf]  ;;  %v6295_v34 = vor.u32 %v7376_v29, %v6294_v28  ;;  %3252 = vmatpush.bf16.msrb.mxu1 %v6039_v33  ;;  %v7076_v28 = vld [vmem:[#allocation4 + $0x384] sm:$0xf]  ;;  %v82_v29 = vld [vmem:[#allocation2 + $0x28] sm:$0xff] }
  0x7a   :  { %v7440_v31 = vld [vmem:[#allocation4 + $0xedc] sm:$0xf0]  ;;  %v5368_v33 = vld [vmem:[#allocation4 + $0x5a0] sm:$0xf0] }
  0x7b   :  { %v5750_v35 = vld [vmem:[#allocation4 + $0x880] sm:$0xf]  ;;  %v6551_v38 = vor.u32 %v7440_v31, %v6550_v30  ;;  %3265 = vmatpush.bf16.msrb.mxu2 %v6295_v34  ;;  %v5659_v30 = vor.u32 %v7212_v16, %v5656_v17  ;;  %v5112_v31 = vld [vmem:[#allocation4 + $0x3a0] sm:$0xf0]  ;;  %v7712_v34 = vpack.c.bf16 %v83_v18, %v83_v18 }
  0x7c   :  { %v7240_v36 = vld [vmem:[#allocation4 + $0x89c] sm:$0xf0]  ;;  %v7116_v10 = vld [vmem:[#allocation4 + $0x4c4] sm:$0xf] }
  0x7d   :  { %v6006_v37 = vld [vmem:[#allocation4 + $0xa80] sm:$0xf]  ;;  %v5751_v44 = vor.u32 %v7240_v36, %v5750_v35  ;;  %3278 = vmatpush.bf16.msrb.mxu3 %v6551_v38  ;;  %v7204_v35 = vld [vmem:[#allocation4 + $0x784] sm:$0xf]  ;;  %v7716_v38 = vpack.c.bf16 %v84_v23, %v84_v23  ;;  %v5275_v17 = vor.u32 %v7116_v10, %v5272_v11 }
  0x7e   :  { %v7304_v39 = vld [vmem:[#allocation4 + $0xa9c] sm:$0xf0]  ;;  %v5624_v36 = vld [vmem:[#allocation4 + $0x7a0] sm:$0xf0] }
  0x7f   :  { %v6262_v40 = vld [vmem:[#allocation4 + $0xc80] sm:$0xf]  ;;  %v6007_v45 = vor.u32 %v7304_v39, %v6006_v37  ;;  %3240 = vmatpush.bf16.msrb.mxu0 %v5751_v44  ;;  %v4859_v39 = vor.u32 %v7012_v21, %v4856_v27  ;;  %v4824_v44 = vld [vmem:[#allocation4 + $0x160] sm:$0xf0] }
  0x80   :  { %v7368_v41 = vld [vmem:[#allocation4 + $0xc9c] sm:$0xf0]  ;;  %v7180_v12 = vld [vmem:[#allocation4 + $0x6c4] sm:$0xf] }
  0x81   :  { %v6518_v42 = vld [vmem:[#allocation4 + $0xe80] sm:$0xf]  ;;  %v6263_v46 = vor.u32 %v7368_v41, %v6262_v40  ;;  %3253 = vmatpush.bf16.msrb.mxu1 %v6007_v45  ;;  %v7718_v40 = vpack.c.bf16 %v82_v29, %v82_v29  ;;  %v5115_v41 = vor.u32 %v7076_v28, %v5112_v31  ;;  %v7068_v45 = vld [vmem:[#allocation4 + $0x344] sm:$0xf] }
  0x82   :  { %v7432_v43 = vld [vmem:[#allocation4 + $0xe9c] sm:$0xf0]  ;;  %v6980_v18 = vld [vmem:[#allocation4 + $0x84] sm:$0xf] }
  0x83   :  { %v5718_v47 = vld [vmem:[#allocation4 + $0x840] sm:$0xf]  ;;  %v6519_v50 = vor.u32 %v7432_v43, %v6518_v42  ;;  %3266 = vmatpush.bf16.msrb.mxu2 %v6263_v46  ;;  %v5371_v42 = vor.u32 %v7140_v32, %v5368_v33  ;;  %v7004_v43 = vld [vmem:[#allocation4 + $0x144] sm:$0xf]  ;;  %v5627_v46 = vor.u32 %v7204_v35, %v5624_v36 }
  0x84   :  { %v7232_v48 = vld [vmem:[#allocation4 + $0x85c] sm:$0xf0]  ;;  %v7108_v23 = vld [vmem:[#allocation4 + $0x484] sm:$0xf] }
  0x85   :  { %v5974_v49 = vld [vmem:[#allocation4 + $0xa40] sm:$0xf]  ;;  %v5719_v56 = vor.u32 %v7232_v48, %v5718_v47  ;;  %3279 = vmatpush.bf16.msrb.mxu3 %v6519_v50  ;;  %v5080_v47 = vld [vmem:[#allocation4 + $0x360] sm:$0xf0] }
  0x86   :  { %v7296_v51 = vld [vmem:[#allocation4 + $0xa5c] sm:$0xf0]  ;;  %v7132_v48 = vld [vmem:[#allocation4 + $0x544] sm:$0xf] }
  0x87   :  { %v6230_v52 = vld [vmem:[#allocation4 + $0xc40] sm:$0xf]  ;;  %v5975_v59 = vor.u32 %v7296_v51, %v5974_v49  ;;  %3241 = vmatpush.bf16.msrb.mxu0 %v5719_v56  ;;  %v5336_v49 = vld [vmem:[#allocation4 + $0x560] sm:$0xf0] }
  0x88   :  { %v7360_v53 = vld [vmem:[#allocation4 + $0xc5c] sm:$0xf0]  ;;  %v7196_v50 = vld [vmem:[#allocation4 + $0x744] sm:$0xf] }
  0x89   :  { %v6486_v54 = vld [vmem:[#allocation4 + $0xe40] sm:$0xf]  ;;  %v6231_v60 = vor.u32 %v7360_v53, %v6230_v52  ;;  %3254 = vmatpush.bf16.msrb.mxu1 %v5975_v59  ;;  %v5592_v51 = vld [vmem:[#allocation4 + $0x760] sm:$0xf0]  ;;  %v4827_v52 = vor.u32 %v7004_v43, %v4824_v44  ;;  %v5083_v53 = vor.u32 %v7068_v45, %v5080_v47 }
  0x8a   :  { %v7424_v55 = vld [vmem:[#allocation4 + $0xe5c] sm:$0xf0]  ;;  %v4792_v56 = vld [vmem:[#allocation4 + $0x120] sm:$0xf0] }
  0x8b   :  { %v5686_v57 = vld [vmem:[#allocation4 + $0x800] sm:$0xf]  ;;  %v6487_v0 = vor.u32 %v7424_v55, %v6486_v54  ;;  %3267 = vmatpush.bf16.msrb.mxu2 %v6231_v60  ;;  %v5339_v54 = vor.u32 %v7132_v48, %v5336_v49  ;;  %v6996_v55 = vld [vmem:[#allocation4 + $0x104] sm:$0xf] }
  0x8c   :  { %v7224_v58 = vld [vmem:[#allocation4 + $0x81c] sm:$0xf0]  ;;  %v5048_v59 = vld [vmem:[#allocation4 + $0x320] sm:$0xf0] }
  0x8d   :  { %v5942_v61 = vld [vmem:[#allocation4 + $0xa00] sm:$0xf]  ;;  %v5687_v7 = vor.u32 %v7224_v58, %v5686_v57  ;;  %3280 = vmatpush.bf16.msrb.mxu3 %v6487_v0  ;;  %v7060_v57 = vld [vmem:[#allocation4 + $0x304] sm:$0xf]  ;;  %v5595_v58 = vor.u32 %v7196_v50, %v5592_v51  ;;  %v4795_v0 = vor.u32 %v6996_v55, %v4792_v56 }
  0x8e   :  { %v7288_v62 = vld [vmem:[#allocation4 + $0xa1c] sm:$0xf0]  ;;  %v7124_v60 = vld [vmem:[#allocation4 + $0x504] sm:$0xf] }
  0x8f   :  { %v6198_v63 = vld [vmem:[#allocation4 + $0xc00] sm:$0xf]  ;;  %v5943_v13 = vor.u32 %v7288_v62, %v5942_v61  ;;  %3242 = vmatpush.bf16.msrb.mxu0 %v5687_v7  ;;  %v5304_v61 = vld [vmem:[#allocation4 + $0x520] sm:$0xf0] }
  0x90   :  { %v7352_v1 = vld [vmem:[#allocation4 + $0xc1c] sm:$0xf0]  ;;  %v7188_v62 = vld [vmem:[#allocation4 + $0x704] sm:$0xf] }
  0x91   :  { %v6454_v2 = vld [vmem:[#allocation4 + $0xe00] sm:$0xf]  ;;  %v6199_v14 = vor.u32 %v7352_v1, %v6198_v63  ;;  %3255 = vmatpush.bf16.msrb.mxu1 %v5943_v13  ;;  %v5560_v63 = vld [vmem:[#allocation4 + $0x720] sm:$0xf0]  ;;  %v5051_v1 = vor.u32 %v7060_v57, %v5048_v59 }
  0x92   :  { %v7416_v3 = vld [vmem:[#allocation4 + $0xe1c] sm:$0xf0]  ;;  %v5563_v6 = vor.u32 %v7188_v62, %v5560_v63  ;;  %v5016_v7 = vld [vmem:[#allocation4 + $0x2e0] sm:$0xf0] }
  0x93   :  { %v6455_v19 = vor.u32 %v7416_v3, %v6454_v2  ;;  %v81_v22 = vld [vmem:[#allocation2 + $0x20] sm:$0xff]  ;;  %3268 = vmatpush.bf16.msrb.mxu2 %v6199_v14  ;;  %3287 = vmatpush.bf16.msra.mxu0 %v4891_v20  ;;  %v5307_v2 = vor.u32 %v7124_v60, %v5304_v61  ;;  %v5019_v16 = vor.u32 %v7052_v5, %v5016_v7 }
  0x94   :  { %v7714_v37 = vpack.c.bf16 %v81_v22, %v81_v22  ;;  %3256 = vmatmul.bf16.vlgmr.msrb.gmra.mxu1 %v7718_v40  ;;  %v6988_v3 = vld [vmem:[#allocation4 + $0xc4] sm:$0xf] }
  0x95   :  { %3281 = vmatpush.bf16.msrb.mxu3 %v6455_v19  ;;  %3300 = vmatpush.bf16.msra.mxu1 %v5147_v24  ;;  %v5528_v13 = vld [vmem:[#allocation4 + $0x6e0] sm:$0xf0]  ;;  %v4763_v14 = vor.u32 %v6988_v3, %v4760_v4 }
  0x96   :  { %3269 = vmatmul.bf16.vlgmr.msrb.gmra.mxu2 %v7712_v34  ;;  %3243 = vmatmul.bf16.vlgmr.msrb.gmra.mxu0 %v7714_v37  ;;  %v4728_v19 = vld [vmem:[#allocation4 + $0xa0] sm:$0xf0]  ;;  %v5531_v21 = vor.u32 %v7180_v12, %v5528_v13 }
  0x97   :  { %3313 = vmatpush.bf16.msra.mxu2 %v5403_v26  ;;  %3288 = vmatpush.bf16.msra.mxu0 %v4859_v39  ;;  %v7044_v20 = vld [vmem:[#allocation4 + $0x284] sm:$0xf]  ;;  %v4731_v28 = vor.u32 %v6980_v18, %v4728_v19 }
  0x98   :  { %3282 = vmatmul.bf16.vlgmr.msrb.gmra.mxu3 %v7716_v38  ;;  %v4984_v22 = vld [vmem:[#allocation4 + $0x2a0] sm:$0xf0] }
  0x99   :  { %3326 = vmatpush.bf16.msra.mxu3 %v5659_v30  ;;  %3301 = vmatpush.bf16.msra.mxu1 %v5115_v41  ;;  %v5240_v24 = vld [vmem:[#allocation4 + $0x4a0] sm:$0xf0]  ;;  %v4987_v29 = vor.u32 %v7044_v20, %v4984_v22 }
  0x9a   :  { %v7172_v26 = vld [vmem:[#allocation4 + $0x684] sm:$0xf]  ;;  %v5243_v30 = vor.u32 %v7108_v23, %v5240_v24 }
  0x9b   :  { %3314 = vmatpush.bf16.msra.mxu2 %v5371_v42  ;;  %3289 = vmatpush.bf16.msra.mxu0 %v4827_v52  ;;  %v5496_v27 = vld [vmem:[#allocation4 + $0x6a0] sm:$0xf0] }
  0x9c   :  { %v6972_v31 = vld [vmem:[#allocation4 + $0x44] sm:$0xf]  ;;  %v5499_v35 = vor.u32 %v7172_v26, %v5496_v27 }
  0x9d   :  { %3327 = vmatpush.bf16.msra.mxu3 %v5627_v46  ;;  %3302 = vmatpush.bf16.msra.mxu1 %v5083_v53  ;;  %v4696_v32 = vld [vmem:[#allocation4 + $0x60] sm:$0xf0] }
  0x9e   :  { %v7036_v33 = vld [vmem:[#allocation4 + $0x244] sm:$0xf]  ;;  %v4699_v44 = vor.u32 %v6972_v31, %v4696_v32 }
  0x9f   :  { %3315 = vmatpush.bf16.msra.mxu2 %v5339_v54  ;;  %3290 = vmatpush.bf16.msra.mxu0 %v4795_v0  ;;  %v4952_v36 = vld [vmem:[#allocation4 + $0x260] sm:$0xf0] }
  0xa0   :  { %v7100_v39 = vld [vmem:[#allocation4 + $0x444] sm:$0xf]  ;;  %v4955_v47 = vor.u32 %v7036_v33, %v4952_v36 }
  0xa1   :  { %3328 = vmatpush.bf16.msra.mxu3 %v5595_v58  ;;  %3303 = vmatpush.bf16.msra.mxu1 %v5051_v1  ;;  %v5208_v41 = vld [vmem:[#allocation4 + $0x460] sm:$0xf0] }
  0xa2   :  { %v7164_v42 = vld [vmem:[#allocation4 + $0x644] sm:$0xf]  ;;  %v5211_v48 = vor.u32 %v7100_v39, %v5208_v41 }
  0xa3   :  { %3316 = vmatpush.bf16.msra.mxu2 %v5307_v2  ;;  %3291 = vmatpush.bf16.msra.mxu0 %v4763_v14  ;;  %v5464_v43 = vld [vmem:[#allocation4 + $0x660] sm:$0xf0] }
  0xa4   :  { %v6964_v45 = vld [vmem:[#allocation4 + $0x4] sm:$0xf]  ;;  %v5467_v52 = vor.u32 %v7164_v42, %v5464_v43 }
  0xa5   :  { %3329 = vmatpush.bf16.msra.mxu3 %v5563_v6  ;;  %3304 = vmatpush.bf16.msra.mxu1 %v5019_v16  ;;  %v4664_v46 = vld [vmem:[#allocation4 + $0x20] sm:$0xf0] }
  0xa6   :  { %v7028_v49 = vld [vmem:[#allocation4 + $0x204] sm:$0xf]  ;;  %v4667_v59 = vor.u32 %v6964_v45, %v4664_v46 }
  0xa7   :  { %3317 = vmatpush.bf16.msra.mxu2 %v5275_v17  ;;  %3292 = vmatpush.bf16.msra.mxu0 %v4731_v28  ;;  %v4920_v50 = vld [vmem:[#allocation4 + $0x220] sm:$0xf0] }
  0xa8   :  { %v7092_v51 = vld [vmem:[#allocation4 + $0x404] sm:$0xf]  ;;  %v4923_v63 = vor.u32 %v7028_v49, %v4920_v50 }
  0xa9   :  { %3330 = vmatpush.bf16.msra.mxu3 %v5531_v21  ;;  %3305 = vmatpush.bf16.msra.mxu1 %v4987_v29  ;;  %v5176_v53 = vld [vmem:[#allocation4 + $0x420] sm:$0xf0] }
  0xaa   :  { %v7156_v54 = vld [vmem:[#allocation4 + $0x604] sm:$0xf]  ;;  %v5179_v0 = vor.u32 %v7092_v51, %v5176_v53 }
  0xab   :  { %3318 = vmatpush.bf16.msra.mxu2 %v5243_v30  ;;  %v5432_v55 = vld [vmem:[#allocation4 + $0x620] sm:$0xf0]  ;;  %3293 = vmatpush.bf16.msra.mxu0 %v4699_v44 }
  0xac   :  { %v7276_v56 = vld [vmem:[#allocation4 + $0x9c4] sm:$0xf]  ;;  %v5435_v3 = vor.u32 %v7156_v54, %v5432_v55 }
  0xad   :  { %3331 = vmatpush.bf16.msra.mxu3 %v5499_v35  ;;  %v5912_v57 = vld [vmem:[#allocation4 + $0x9e0] sm:$0xf0]  ;;  %3306 = vmatpush.bf16.msra.mxu1 %v4955_v47 }
  0xae   :  { %v7340_v58 = vld [vmem:[#allocation4 + $0xbc4] sm:$0xf]  ;;  %v5915_v4 = vor.u32 %v7276_v56, %v5912_v57 }
  0xaf   :  { %v6168_v60 = vld [vmem:[#allocation4 + $0xbe0] sm:$0xf0]  ;;  %3319 = vmatpush.bf16.msra.mxu2 %v5211_v48  ;;  %3294 = vmatpush.bf16.msra.mxu0 %v4667_v59 }
  0xb0   :  { %v7404_v61 = vld [vmem:[#allocation4 + $0xdc4] sm:$0xf]  ;;  %v6171_v5 = vor.u32 %v7340_v58, %v6168_v60 }
  0xb1   :  { %v6424_v62 = vld [vmem:[#allocation4 + $0xde0] sm:$0xf0]  ;;  %3332 = vmatpush.bf16.msra.mxu3 %v5467_v52  ;;  %3307 = vmatpush.bf16.msra.mxu1 %v4923_v63 }
  0xb2   :  { %v7468_v1 = vld [vmem:[#allocation4 + $0xfc4] sm:$0xf]  ;;  %v6427_v6 = vor.u32 %v7404_v61, %v6424_v62  ;;  %3295 = vmatmul.bf16.vlgmr.msra.gmra.mxu0 %v7702_v9 }
  0xb3   :  { %v6680_v2 = vld [vmem:[#allocation4 + $0xfe0] sm:$0xf0]  ;;  %3320 = vmatpush.bf16.msra.mxu2 %v5179_v0  ;;  %3339 = vmatpush.bf16.msrb.mxu0 %v5915_v4 }
  0xb4   :  { %v7268_v7 = vld [vmem:[#allocation4 + $0x984] sm:$0xf]  ;;  %v6683_v12 = vor.u32 %v7468_v1, %v6680_v2  ;;  %3308 = vmatmul.bf16.vlgmr.msra.gmra.mxu1 %v7709_v25 }
  0xb5   :  { %v5880_v10 = vld [vmem:[#allocation4 + $0x9a0] sm:$0xf0]  ;;  %3333 = vmatpush.bf16.msra.mxu3 %v5435_v3  ;;  %3352 = vmatpush.bf16.msrb.mxu1 %v6171_v5 }
  0xb6   :  { %v7332_v11 = vld [vmem:[#allocation4 + $0xb84] sm:$0xf]  ;;  %v5883_v19 = vor.u32 %v7268_v7, %v5880_v10  ;;  %3321 = vmatmul.bf16.vlgmr.msra.gmra.mxu2 %v7700_v8 }
  0xb7   :  { %v6136_v13 = vld [vmem:[#allocation4 + $0xba0] sm:$0xf0]  ;;  %3365 = vmatpush.bf16.msrb.mxu2 %v6427_v6 }
  0xb8   :  { %v7396_v14 = vld [vmem:[#allocation4 + $0xd84] sm:$0xf]  ;;  %v6139_v20 = vor.u32 %v7332_v11, %v6136_v13  ;;  %3334 = vmatmul.bf16.vlgmr.msra.gmra.mxu3 %v7704_v15  ;;  %3340 = vmatpush.bf16.msrb.mxu0 %v5883_v19 }
  0xb9   :  { %v6392_v16 = vld [vmem:[#allocation4 + $0xda0] sm:$0xf0]  ;;  %3378 = vmatpush.bf16.msrb.mxu3 %v6683_v12 }
  0xba   :  { %v7460_v17 = vld [vmem:[#allocation4 + $0xf84] sm:$0xf]  ;;  %v6395_v21 = vor.u32 %v7396_v14, %v6392_v16  ;;  %3353 = vmatpush.bf16.msrb.mxu1 %v6139_v20 }
  0xbb   :  { %v6648_v18 = vld [vmem:[#allocation4 + $0xfa0] sm:$0xf0] }
  0xbc   :  { %v7260_v22 = vld [vmem:[#allocation4 + $0x944] sm:$0xf]  ;;  %v6651_v26 = vor.u32 %v7460_v17, %v6648_v18  ;;  %3366 = vmatpush.bf16.msrb.mxu2 %v6395_v21 }
  0xbd   :  { %v5848_v23 = vld [vmem:[#allocation4 + $0x960] sm:$0xf0] }
  0xbe   :  { %v7324_v24 = vld [vmem:[#allocation4 + $0xb44] sm:$0xf]  ;;  %v5851_v32 = vor.u32 %v7260_v22, %v5848_v23  ;;  %3379 = vmatpush.bf16.msrb.mxu3 %v6651_v26 }
  0xbf   :  { %v6104_v27 = vld [vmem:[#allocation4 + $0xb60] sm:$0xf0] }
  0xc0   :  { %v7388_v28 = vld [vmem:[#allocation4 + $0xd44] sm:$0xf]  ;;  %v6107_v33 = vor.u32 %v7324_v24, %v6104_v27  ;;  %3341 = vmatpush.bf16.msrb.mxu0 %v5851_v32 }
  0xc1   :  { %v6360_v29 = vld [vmem:[#allocation4 + $0xd60] sm:$0xf0] }
  0xc2   :  { %v7452_v30 = vld [vmem:[#allocation4 + $0xf44] sm:$0xf]  ;;  %v6363_v35 = vor.u32 %v7388_v28, %v6360_v29  ;;  %3354 = vmatpush.bf16.msrb.mxu1 %v6107_v33 }
  0xc3   :  { %v6616_v31 = vld [vmem:[#allocation4 + $0xf60] sm:$0xf0] }
  0xc4   :  { %v7252_v36 = vld [vmem:[#allocation4 + $0x904] sm:$0xf]  ;;  %v6619_v42 = vor.u32 %v7452_v30, %v6616_v31  ;;  %3367 = vmatpush.bf16.msrb.mxu2 %v6363_v35 }
  0xc5   :  { %v5816_v39 = vld [vmem:[#allocation4 + $0x920] sm:$0xf0] }
  0xc6   :  { %v7316_v41 = vld [vmem:[#allocation4 + $0xb04] sm:$0xf]  ;;  %v5819_v48 = vor.u32 %v7252_v36, %v5816_v39  ;;  %3380 = vmatpush.bf16.msrb.mxu3 %v6619_v42  ;;  %v4894_v39 = vld [vmem:[#allocation4 + $0x1c8] sm:$0xf] }
  0xc7   :  { %v6072_v43 = vld [vmem:[#allocation4 + $0xb20] sm:$0xf0]  ;;  %v5150_v42 = vld [vmem:[#allocation4 + $0x3c8] sm:$0xf] }
  0xc8   :  { %v7380_v44 = vld [vmem:[#allocation4 + $0xd04] sm:$0xf]  ;;  %v6075_v49 = vor.u32 %v7316_v41, %v6072_v43  ;;  %3342 = vmatpush.bf16.msrb.mxu0 %v5819_v48  ;;  %v7025_v41 = vld [vmem:[#allocation4 + $0x1e4] sm:$0xf0] }
  0xc9   :  { %v6328_v45 = vld [vmem:[#allocation4 + $0xd20] sm:$0xf0] }
  0xca   :  { %v7444_v46 = vld [vmem:[#allocation4 + $0xf04] sm:$0xf]  ;;  %v6331_v50 = vor.u32 %v7380_v44, %v6328_v45  ;;  %3355 = vmatpush.bf16.msrb.mxu1 %v6075_v49  ;;  %v7089_v44 = vld [vmem:[#allocation4 + $0x3e4] sm:$0xf0] }
  0xcb   :  { %v6584_v47 = vld [vmem:[#allocation4 + $0xf20] sm:$0xf0]  ;;  %v5406_v45 = vld [vmem:[#allocation4 + $0x5c8] sm:$0xf] }
  0xcc   :  { %v7244_v51 = vld [vmem:[#allocation4 + $0x8c4] sm:$0xf]  ;;  %v6587_v54 = vor.u32 %v7444_v46, %v6584_v47  ;;  %3368 = vmatpush.bf16.msrb.mxu2 %v6331_v50  ;;  %v7153_v46 = vld [vmem:[#allocation4 + $0x5e4] sm:$0xf0] }
  0xcd   :  { %v5784_v52 = vld [vmem:[#allocation4 + $0x8e0] sm:$0xf0]  ;;  %v5662_v49 = vld [vmem:[#allocation4 + $0x7c8] sm:$0xf] }
  0xce   :  { %v7308_v53 = vld [vmem:[#allocation4 + $0xac4] sm:$0xf]  ;;  %v5787_v60 = vor.u32 %v7244_v51, %v5784_v52  ;;  %3381 = vmatpush.bf16.msrb.mxu3 %v6587_v54  ;;  %v7217_v50 = vld [vmem:[#allocation4 + $0x7e4] sm:$0xf0]  ;;  %v4895_v52 = vor.u32 %v7025_v41, %v4894_v39  ;;  %v5407_v54 = vor.u32 %v7153_v46, %v5406_v45 }
  0xcf   :  { %v6040_v55 = vld [vmem:[#allocation4 + $0xae0] sm:$0xf0]  ;;  %v5278_v39 = vld [vmem:[#allocation4 + $0x4c8] sm:$0xf] }
  0xd0   :  { %v7372_v56 = vld [vmem:[#allocation4 + $0xcc4] sm:$0xf]  ;;  %v6043_v61 = vor.u32 %v7308_v53, %v6040_v55  ;;  %3343 = vmatpush.bf16.msrb.mxu0 %v5787_v60  ;;  %v5151_v53 = vor.u32 %v7089_v44, %v5150_v42  ;;  %v4862_v55 = vld [vmem:[#allocation4 + $0x188] sm:$0xf] }
  0xd1   :  { %v6296_v57 = vld [vmem:[#allocation4 + $0xce0] sm:$0xf0]  ;;  %v5374_v60 = vld [vmem:[#allocation4 + $0x588] sm:$0xf] }
  0xd2   :  { %v7436_v58 = vld [vmem:[#allocation4 + $0xec4] sm:$0xf]  ;;  %v6299_v62 = vor.u32 %v7372_v56, %v6296_v57  ;;  %3356 = vmatpush.bf16.msrb.mxu1 %v6043_v61  ;;  %v7017_v56 = vld [vmem:[#allocation4 + $0x1a4] sm:$0xf0] }
  0xd3   :  { %v6552_v59 = vld [vmem:[#allocation4 + $0xee0] sm:$0xf0]  ;;  %v5118_v57 = vld [vmem:[#allocation4 + $0x388] sm:$0xf] }
  0xd4   :  { %v7236_v63 = vld [vmem:[#allocation4 + $0x884] sm:$0xf]  ;;  %v6555_v2 = vor.u32 %v7436_v58, %v6552_v59  ;;  %3369 = vmatpush.bf16.msrb.mxu2 %v6299_v62  ;;  %v5663_v58 = vor.u32 %v7217_v50, %v5662_v49  ;;  %v7081_v59 = vld [vmem:[#allocation4 + $0x3a4] sm:$0xf0] }
  0xd5   :  { %v5752_v0 = vld [vmem:[#allocation4 + $0x8a0] sm:$0xf0]  ;;  %v7145_v61 = vld [vmem:[#allocation4 + $0x5a4] sm:$0xf0] }
  0xd6   :  { %v7300_v1 = vld [vmem:[#allocation4 + $0xa84] sm:$0xf]  ;;  %v5755_v10 = vor.u32 %v7236_v63, %v5752_v0  ;;  %3382 = vmatpush.bf16.msrb.mxu3 %v6555_v2  ;;  %v5630_v62 = vld [vmem:[#allocation4 + $0x788] sm:$0xf]  ;;  %v4863_v0 = vor.u32 %v7017_v56, %v4862_v55  ;;  %v5375_v2 = vor.u32 %v7145_v61, %v5374_v60 }
  0xd7   :  { %v6008_v3 = vld [vmem:[#allocation4 + $0xaa0] sm:$0xf0]  ;;  %v7209_v63 = vld [vmem:[#allocation4 + $0x7a4] sm:$0xf0] }
  0xd8   :  { %v7364_v4 = vld [vmem:[#allocation4 + $0xc84] sm:$0xf]  ;;  %v6011_v11 = vor.u32 %v7300_v1, %v6008_v3  ;;  %3344 = vmatpush.bf16.msrb.mxu0 %v5755_v10  ;;  %v5119_v1 = vor.u32 %v7081_v59, %v5118_v57  ;;  %v4830_v3 = vld [vmem:[#allocation4 + $0x148] sm:$0xf] }
  0xd9   :  { %v6264_v5 = vld [vmem:[#allocation4 + $0xca0] sm:$0xf0]  ;;  %v5342_v10 = vld [vmem:[#allocation4 + $0x548] sm:$0xf] }
  0xda   :  { %v7428_v6 = vld [vmem:[#allocation4 + $0xe84] sm:$0xf]  ;;  %v6267_v12 = vor.u32 %v7364_v4, %v6264_v5  ;;  %3357 = vmatpush.bf16.msrb.mxu1 %v6011_v11  ;;  %v7009_v4 = vld [vmem:[#allocation4 + $0x164] sm:$0xf0] }
  0xdb   :  { %v6520_v7 = vld [vmem:[#allocation4 + $0xea0] sm:$0xf0]  ;;  %v5086_v5 = vld [vmem:[#allocation4 + $0x348] sm:$0xf] }
  0xdc   :  { %v7228_v13 = vld [vmem:[#allocation4 + $0x844] sm:$0xf]  ;;  %v6523_v17 = vor.u32 %v7428_v6, %v6520_v7  ;;  %3370 = vmatpush.bf16.msrb.mxu2 %v6267_v12  ;;  %v5631_v6 = vor.u32 %v7209_v63, %v5630_v62  ;;  %v7073_v7 = vld [vmem:[#allocation4 + $0x364] sm:$0xf0] }
  0xdd   :  { %v5720_v14 = vld [vmem:[#allocation4 + $0x860] sm:$0xf0]  ;;  %v7137_v11 = vld [vmem:[#allocation4 + $0x564] sm:$0xf0] }
  0xde   :  { %v7292_v16 = vld [vmem:[#allocation4 + $0xa44] sm:$0xf]  ;;  %v5723_v23 = vor.u32 %v7228_v13, %v5720_v14  ;;  %3383 = vmatpush.bf16.msrb.mxu3 %v6523_v17  ;;  %v5598_v12 = vld [vmem:[#allocation4 + $0x748] sm:$0xf]  ;;  %v4831_v14 = vor.u32 %v7009_v4, %v4830_v3  ;;  %v5343_v17 = vor.u32 %v7137_v11, %v5342_v10 }
  0xdf   :  { %v5976_v18 = vld [vmem:[#allocation4 + $0xa60] sm:$0xf0]  ;;  %v7201_v13 = vld [vmem:[#allocation4 + $0x764] sm:$0xf0] }
  0xe0   :  { %v7356_v19 = vld [vmem:[#allocation4 + $0xc44] sm:$0xf]  ;;  %v5979_v27 = vor.u32 %v7292_v16, %v5976_v18  ;;  %3345 = vmatpush.bf16.msrb.mxu0 %v5723_v23  ;;  %v5087_v16 = vor.u32 %v7073_v7, %v5086_v5  ;;  %v4798_v18 = vld [vmem:[#allocation4 + $0x108] sm:$0xf] }
  0xe1   :  { %v6232_v20 = vld [vmem:[#allocation4 + $0xc60] sm:$0xf0]  ;;  %v5310_v23 = vld [vmem:[#allocation4 + $0x508] sm:$0xf] }
  0xe2   :  { %v7420_v21 = vld [vmem:[#allocation4 + $0xe44] sm:$0xf]  ;;  %v6235_v28 = vor.u32 %v7356_v19, %v6232_v20  ;;  %3358 = vmatpush.bf16.msrb.mxu1 %v5979_v27  ;;  %v7001_v19 = vld [vmem:[#allocation4 + $0x124] sm:$0xf0] }
  0xe3   :  { %v6488_v22 = vld [vmem:[#allocation4 + $0xe60] sm:$0xf0]  ;;  %v5054_v20 = vld [vmem:[#allocation4 + $0x308] sm:$0xf] }
  0xe4   :  { %v7220_v24 = vld [vmem:[#allocation4 + $0x804] sm:$0xf]  ;;  %v6491_v32 = vor.u32 %v7420_v21, %v6488_v22  ;;  %3371 = vmatpush.bf16.msrb.mxu2 %v6235_v28  ;;  %v5599_v21 = vor.u32 %v7201_v13, %v5598_v12  ;;  %v7065_v22 = vld [vmem:[#allocation4 + $0x324] sm:$0xf0]  ;;  %v4799_v28 = vor.u32 %v7001_v19, %v4798_v18 }
  0xe5   :  { %v5688_v26 = vld [vmem:[#allocation4 + $0x820] sm:$0xf0]  ;;  %v7193_v27 = vld [vmem:[#allocation4 + $0x724] sm:$0xf0] }
  0xe6   :  { %v7284_v29 = vld [vmem:[#allocation4 + $0xa04] sm:$0xf]  ;;  %v5691_v43 = vor.u32 %v7220_v24, %v5688_v26  ;;  %3384 = vmatpush.bf16.msrb.mxu3 %v6491_v32  ;;  %v7129_v24 = vld [vmem:[#allocation4 + $0x524] sm:$0xf0] }
  0xe7   :  { %v5944_v30 = vld [vmem:[#allocation4 + $0xa20] sm:$0xf0]  ;;  %v5566_v26 = vld [vmem:[#allocation4 + $0x708] sm:$0xf] }
  0xe8   :  { %v7348_v31 = vld [vmem:[#allocation4 + $0xc04] sm:$0xf]  ;;  %v5947_v47 = vor.u32 %v7284_v29, %v5944_v30  ;;  %3346 = vmatpush.bf16.msrb.mxu0 %v5691_v43  ;;  %v5055_v29 = vor.u32 %v7065_v22, %v5054_v20  ;;  %v5311_v30 = vor.u32 %v7129_v24, %v5310_v23  ;;  %v6993_v32 = vld [vmem:[#allocation4 + $0xe4] sm:$0xf0] }
  0xe9   :  { %v6200_v33 = vld [vmem:[#allocation4 + $0xc20] sm:$0xf0]  ;;  %v7121_v41 = vld [vmem:[#allocation4 + $0x4e4] sm:$0xf0] }
  0xea   :  { %v7412_v35 = vld [vmem:[#allocation4 + $0xe04] sm:$0xf]  ;;  %v6203_v48 = vor.u32 %v7348_v31, %v6200_v33  ;;  %3359 = vmatpush.bf16.msrb.mxu1 %v5947_v47  ;;  %v4766_v31 = vld [vmem:[#allocation4 + $0xc8] sm:$0xf]  ;;  %v5279_v46 = vor.u32 %v7121_v41, %v5278_v39 }
  0xeb   :  { %v6456_v36 = vld [vmem:[#allocation4 + $0xe20] sm:$0xf0]  ;;  %3347 = vmatmul.bf16.vlgmr.msrb.gmra.mxu0 %v7714_v37  ;;  %v5022_v33 = vld [vmem:[#allocation4 + $0x2c8] sm:$0xf]  ;;  %v4767_v44 = vor.u32 %v6993_v32, %v4766_v31 }
  0xec   :  { %v6459_v51 = vor.u32 %v7412_v35, %v6456_v36  ;;  %3372 = vmatpush.bf16.msrb.mxu2 %v6203_v48  ;;  %3391 = vmatpush.bf16.msra.mxu0 %v4895_v52  ;;  %v5567_v35 = vor.u32 %v7193_v27, %v5566_v26  ;;  %v7057_v36 = vld [vmem:[#allocation4 + $0x2e4] sm:$0xf0] }
  0xed   :  { %3360 = vmatmul.bf16.vlgmr.msrb.gmra.mxu1 %v7718_v40  ;;  %v5534_v42 = vld [vmem:[#allocation4 + $0x6c8] sm:$0xf]  ;;  %v5023_v45 = vor.u32 %v7057_v36, %v5022_v33 }
  0xee   :  { %3385 = vmatpush.bf16.msrb.mxu3 %v6459_v51  ;;  %3404 = vmatpush.bf16.msra.mxu1 %v5151_v53  ;;  %v7185_v43 = vld [vmem:[#allocation4 + $0x6e4] sm:$0xf0] }
  0xef   :  { %3373 = vmatmul.bf16.vlgmr.msrb.gmra.mxu2 %v7712_v34  ;;  %v4734_v47 = vld [vmem:[#allocation4 + $0x88] sm:$0xf]  ;;  %v5535_v50 = vor.u32 %v7185_v43, %v5534_v42 }
  0xf0   :  { %3417 = vmatpush.bf16.msra.mxu2 %v5407_v54  ;;  %3392 = vmatpush.bf16.msra.mxu0 %v4863_v0  ;;  %v6985_v48 = vld [vmem:[#allocation4 + $0xa4] sm:$0xf0] }
  0xf1   :  { %3386 = vmatmul.bf16.vlgmr.msrb.gmra.mxu3 %v7716_v38  ;;  %v4990_v49 = vld [vmem:[#allocation4 + $0x288] sm:$0xf]  ;;  %v4735_v56 = vor.u32 %v6985_v48, %v4734_v47 }
  0xf2   :  { %3430 = vmatpush.bf16.msra.mxu3 %v5663_v58  ;;  %3405 = vmatpush.bf16.msra.mxu1 %v5119_v1  ;;  %v7049_v51 = vld [vmem:[#allocation4 + $0x2a4] sm:$0xf0] }
  0xf3   :  { %v5246_v52 = vld [vmem:[#allocation4 + $0x488] sm:$0xf]  ;;  %v4991_v57 = vor.u32 %v7049_v51, %v4990_v49 }
  0xf4   :  { %3418 = vmatpush.bf16.msra.mxu2 %v5375_v2  ;;  %3393 = vmatpush.bf16.msra.mxu0 %v4831_v14  ;;  %v7113_v53 = vld [vmem:[#allocation4 + $0x4a4] sm:$0xf0] }
  0xf5   :  { %v5502_v54 = vld [vmem:[#allocation4 + $0x688] sm:$0xf]  ;;  %v5247_v58 = vor.u32 %v7113_v53, %v5246_v52 }
  0xf6   :  { %3431 = vmatpush.bf16.msra.mxu3 %v5631_v6  ;;  %3406 = vmatpush.bf16.msra.mxu1 %v5087_v16  ;;  %v7177_v55 = vld [vmem:[#allocation4 + $0x6a4] sm:$0xf0] }
  0xf7   :  { %v4702_v59 = vld [vmem:[#allocation4 + $0x48] sm:$0xf]  ;;  %v5503_v62 = vor.u32 %v7177_v55, %v5502_v54 }
  0xf8   :  { %3419 = vmatpush.bf16.msra.mxu2 %v5343_v17  ;;  %3394 = vmatpush.bf16.msra.mxu0 %v4799_v28  ;;  %v6977_v60 = vld [vmem:[#allocation4 + $0x64] sm:$0xf0] }
  0xf9   :  { %v4958_v61 = vld [vmem:[#allocation4 + $0x248] sm:$0xf]  ;;  %v4703_v4 = vor.u32 %v6977_v60, %v4702_v59 }
  0xfa   :  { %3432 = vmatpush.bf16.msra.mxu3 %v5599_v21  ;;  %3407 = vmatpush.bf16.msra.mxu1 %v5055_v29  ;;  %v7041_v63 = vld [vmem:[#allocation4 + $0x264] sm:$0xf0] }
  0xfb   :  { %v5214_v0 = vld [vmem:[#allocation4 + $0x448] sm:$0xf]  ;;  %v4959_v7 = vor.u32 %v7041_v63, %v4958_v61 }
  0xfc   :  { %3420 = vmatpush.bf16.msra.mxu2 %v5311_v30  ;;  %3395 = vmatpush.bf16.msra.mxu0 %v4767_v44  ;;  %v7105_v1 = vld [vmem:[#allocation4 + $0x464] sm:$0xf0] }
  0xfd   :  { %v5470_v2 = vld [vmem:[#allocation4 + $0x648] sm:$0xf]  ;;  %v5215_v10 = vor.u32 %v7105_v1, %v5214_v0 }
  0xfe   :  { %3433 = vmatpush.bf16.msra.mxu3 %v5567_v35  ;;  %3408 = vmatpush.bf16.msra.mxu1 %v5023_v45  ;;  %v7169_v3 = vld [vmem:[#allocation4 + $0x664] sm:$0xf0] }
  0xff   :  { %v4670_v5 = vld [vmem:[#allocation4 + $0x8] sm:$0xf]  ;;  %v5471_v14 = vor.u32 %v7169_v3, %v5470_v2 }
 0x100   :  { %3421 = vmatpush.bf16.msra.mxu2 %v5279_v46  ;;  %3396 = vmatpush.bf16.msra.mxu0 %v4735_v56  ;;  %v6969_v6 = vld [vmem:[#allocation4 + $0x24] sm:$0xf0] }
 0x101   :  { %v4926_v11 = vld [vmem:[#allocation4 + $0x208] sm:$0xf]  ;;  %v4671_v22 = vor.u32 %v6969_v6, %v4670_v5  ;;  %v7736_v6 = vld [vmem:[#allocation6] sm:$0xff] }
 0x102   :  { %3434 = vmatpush.bf16.msra.mxu3 %v5535_v50  ;;  %3409 = vmatpush.bf16.msra.mxu1 %v4991_v57  ;;  %v7033_v12 = vld [vmem:[#allocation4 + $0x224] sm:$0xf0] }
 0x103   :  { %v5182_v13 = vld [vmem:[#allocation4 + $0x408] sm:$0xf]  ;;  %v4927_v27 = vor.u32 %v7033_v12, %v4926_v11 }
 0x104   :  { %3422 = vmatpush.bf16.msra.mxu2 %v5247_v58  ;;  %v7097_v16 = vld [vmem:[#allocation4 + $0x424] sm:$0xf0]  ;;  %3397 = vmatpush.bf16.msra.mxu0 %v4703_v4 }
 0x105   :  { %v5438_v17 = vld [vmem:[#allocation4 + $0x608] sm:$0xf]  ;;  %v5183_v28 = vor.u32 %v7097_v16, %v5182_v13 }
 0x106   :  { %3435 = vmatpush.bf16.msra.mxu3 %v5503_v62  ;;  %v7161_v18 = vld [vmem:[#allocation4 + $0x624] sm:$0xf0]  ;;  %3410 = vmatpush.bf16.msra.mxu1 %v4959_v7 }
 0x107   :  { %v5918_v19 = vld [vmem:[#allocation4 + $0x9c8] sm:$0xf]  ;;  %v5439_v31 = vor.u32 %v7161_v18, %v5438_v17  ;;  %v607_v18 = vperm.slane %v7736_v6, 0 }
 0x108   :  { %v7281_v20 = vld [vmem:[#allocation4 + $0x9e4] sm:$0xf0]  ;;  %3423 = vmatpush.bf16.msra.mxu2 %v5215_v10  ;;  %3398 = vmatpush.bf16.msra.mxu0 %v4671_v22 }
 0x109   :  { %v6174_v21 = vld [vmem:[#allocation4 + $0xbc8] sm:$0xf]  ;;  %v5919_v32 = vor.u32 %v7281_v20, %v5918_v19 }
 0x10a   :  { %v7345_v23 = vld [vmem:[#allocation4 + $0xbe4] sm:$0xf0]  ;;  %3436 = vmatpush.bf16.msra.mxu3 %v5471_v14  ;;  %3411 = vmatpush.bf16.msra.mxu1 %v4927_v27  ;;  %v3192_v27 = vpop.f32.mrf.mxu0 }
 0x10b   :  { %v6430_v24 = vld [vmem:[#allocation4 + $0xdc8] sm:$0xf]  ;;  %v6175_v33 = vor.u32 %v7345_v23, %v6174_v21  ;;  %3399 = vmatmul.bf16.vlgmr.msra.gmra.mxu0 %v7702_v9 }
 0x10c   :  { %v7409_v26 = vld [vmem:[#allocation4 + $0xde4] sm:$0xf0]  ;;  %3424 = vmatpush.bf16.msra.mxu2 %v5183_v28  ;;  %3443 = vmatpush.bf16.msrb.mxu0 %v5919_v32 }
 0x10d   :  { %v6686_v29 = vld [vmem:[#allocation4 + $0xfc8] sm:$0xf]  ;;  %v6431_v35 = vor.u32 %v7409_v26, %v6430_v24  ;;  %3412 = vmatmul.bf16.vlgmr.msra.gmra.mxu1 %v7709_v25 }
 0x10e   :  { %v7473_v30 = vld [vmem:[#allocation4 + $0xfe4] sm:$0xf0]  ;;  %3437 = vmatpush.bf16.msra.mxu3 %v5439_v31  ;;  %3456 = vmatpush.bf16.msrb.mxu1 %v6175_v33  ;;  %v3193_v33 = vadd.f32 %v3192_v27, %v607_v18  ;;  %v5664_v27 = vld [vmem:[#allocation4 + $0x7e8] sm:$0xf0] }
 0x10f   :  { %v5886_v36 = vld [vmem:[#allocation4 + $0x988] sm:$0xf]  ;;  %v6687_v42 = vor.u32 %v7473_v30, %v6686_v29  ;;  %3425 = vmatmul.bf16.vlgmr.msra.gmra.mxu2 %v7700_v8 }
 0x110   :  { %v7273_v39 = vld [vmem:[#allocation4 + $0x9a4] sm:$0xf0]  ;;  %3469 = vmatpush.bf16.msrb.mxu2 %v6431_v35 }
 0x111   :  { %v6142_v41 = vld [vmem:[#allocation4 + $0xb88] sm:$0xf]  ;;  %v5887_v48 = vor.u32 %v7273_v39, %v5886_v36  ;;  %3438 = vmatmul.bf16.vlgmr.msra.gmra.mxu3 %v7704_v15 }
 0x112   :  { %v7337_v43 = vld [vmem:[#allocation4 + $0xba4] sm:$0xf0]  ;;  %3482 = vmatpush.bf16.msrb.mxu3 %v6687_v42 }
 0x113   :  { %v6398_v44 = vld [vmem:[#allocation4 + $0xd88] sm:$0xf]  ;;  %v6143_v49 = vor.u32 %v7337_v43, %v6142_v41  ;;  %3444 = vmatpush.bf16.msrb.mxu0 %v5887_v48 }
 0x114   :  { %v7401_v45 = vld [vmem:[#allocation4 + $0xda4] sm:$0xf0] }
 0x115   :  { %v6654_v46 = vld [vmem:[#allocation4 + $0xf88] sm:$0xf]  ;;  %v6399_v50 = vor.u32 %v7401_v45, %v6398_v44  ;;  %3457 = vmatpush.bf16.msrb.mxu1 %v6143_v49  ;;  %v3205_v45 = vpop.f32.mrf.mxu1 }
 0x116   :  { %v7465_v47 = vld [vmem:[#allocation4 + $0xfa4] sm:$0xf0] }
 0x117   :  { %v5854_v51 = vld [vmem:[#allocation4 + $0x948] sm:$0xf]  ;;  %v6655_v54 = vor.u32 %v7465_v47, %v6654_v46  ;;  %3470 = vmatpush.bf16.msrb.mxu2 %v6399_v50 }
 0x118   :  { %v7265_v52 = vld [vmem:[#allocation4 + $0x964] sm:$0xf0] }
 0x119   :  { %v6110_v53 = vld [vmem:[#allocation4 + $0xb48] sm:$0xf]  ;;  %v5855_v60 = vor.u32 %v7265_v52, %v5854_v51  ;;  %3483 = vmatpush.bf16.msrb.mxu3 %v6655_v54  ;;  %v3206_v51 = vadd.f32 %v3205_v45, %v3193_v33  ;;  %v7013_v33 = vld [vmem:[#allocation4 + $0x18c] sm:$0xf] }
 0x11a   :  { %v7329_v55 = vld [vmem:[#allocation4 + $0xb64] sm:$0xf0]  ;;  %v7205_v45 = vld [vmem:[#allocation4 + $0x78c] sm:$0xf] }
 0x11b   :  { %v6366_v56 = vld [vmem:[#allocation4 + $0xd48] sm:$0xf]  ;;  %v6111_v62 = vor.u32 %v7329_v55, %v6110_v53  ;;  %3445 = vmatpush.bf16.msrb.mxu0 %v5855_v60  ;;  %v3231_v60 = vpop.f32.mrf.mxu3 }
 0x11c   :  { %v7393_v57 = vld [vmem:[#allocation4 + $0xd64] sm:$0xf0] }
 0x11d   :  { %v6622_v58 = vld [vmem:[#allocation4 + $0xf48] sm:$0xf]  ;;  %v6367_v63 = vor.u32 %v7393_v57, %v6366_v56  ;;  %3458 = vmatpush.bf16.msrb.mxu1 %v6111_v62  ;;  %v3218_v56 = vpop.f32.mrf.mxu2 }
 0x11e   :  { %v7457_v59 = vld [vmem:[#allocation4 + $0xf64] sm:$0xf0] }
 0x11f   :  { %v5822_v61 = vld [vmem:[#allocation4 + $0x908] sm:$0xf]  ;;  %v6623_v3 = vor.u32 %v7457_v59, %v6622_v58  ;;  %3471 = vmatpush.bf16.msrb.mxu2 %v6367_v63  ;;  %v3219_v59 = vadd.f32 %v3218_v56, %v3206_v51  ;;  %v4832_v51 = vld [vmem:[#allocation4 + $0x168] sm:$0xf0] }
 0x120   :  { %v7257_v0 = vld [vmem:[#allocation4 + $0x924] sm:$0xf0]  ;;  %v5344_v56 = vld [vmem:[#allocation4 + $0x568] sm:$0xf0] }
 0x121   :  { %v6078_v1 = vld [vmem:[#allocation4 + $0xb08] sm:$0xf]  ;;  %v5823_v11 = vor.u32 %v7257_v0, %v5822_v61  ;;  %3484 = vmatpush.bf16.msrb.mxu3 %v6623_v3  ;;  %v3194_v0 = vpop.f32.mrf.mxu0 }
 0x122   :  { %v7321_v2 = vld [vmem:[#allocation4 + $0xb24] sm:$0xf0]  ;;  %v7061_v0 = vld [vmem:[#allocation4 + $0x30c] sm:$0xf] }
 0x123   :  { %v6334_v4 = vld [vmem:[#allocation4 + $0xd08] sm:$0xf]  ;;  %v6079_v13 = vor.u32 %v7321_v2, %v6078_v1  ;;  %3446 = vmatpush.bf16.msrb.mxu0 %v5823_v11 }
 0x124   :  { %v7385_v5 = vld [vmem:[#allocation4 + $0xd24] sm:$0xf0] }
 0x125   :  { %v6590_v7 = vld [vmem:[#allocation4 + $0xf08] sm:$0xf]  ;;  %v6335_v14 = vor.u32 %v7385_v5, %v6334_v4  ;;  %3459 = vmatpush.bf16.msrb.mxu1 %v6079_v13 }
 0x126   :  { %v7449_v10 = vld [vmem:[#allocation4 + $0xf24] sm:$0xf0] }
 0x127   :  { %v5790_v12 = vld [vmem:[#allocation4 + $0x8c8] sm:$0xf]  ;;  %v6591_v19 = vor.u32 %v7449_v10, %v6590_v7  ;;  %3472 = vmatpush.bf16.msrb.mxu2 %v6335_v14  ;;  %v7739_v7 = vadd.f32 %v3231_v60, %v3219_v59  ;;  %v7021_v14 = vld [vmem:[#allocation4 + $0x1cc] sm:$0xf] }
 0x128   :  { %v7249_v16 = vld [vmem:[#allocation4 + $0x8e4] sm:$0xf0] }
 0x129   :  { %v6046_v17 = vld [vmem:[#allocation4 + $0xac8] sm:$0xf]  ;;  %v5791_v26 = vor.u32 %v7249_v16, %v5790_v12  ;;  %3485 = vmatpush.bf16.msrb.mxu3 %v6591_v19  ;;  %v4896_v16 = vld [vmem:[#allocation4 + $0x1e8] sm:$0xf0] }
 0x12a   :  { %v7313_v20 = vld [vmem:[#allocation4 + $0xae4] sm:$0xf0]  ;;  %v5152_v19 = vld [vmem:[#allocation4 + $0x3e8] sm:$0xf0] }
 0x12b   :  { %v6302_v21 = vld [vmem:[#allocation4 + $0xcc8] sm:$0xf]  ;;  %v6047_v28 = vor.u32 %v7313_v20, %v6046_v17  ;;  %3447 = vmatpush.bf16.msrb.mxu0 %v5791_v26  ;;  %v7085_v17 = vld [vmem:[#allocation4 + $0x3cc] sm:$0xf] }
 0x12c   :  { %v7377_v22 = vld [vmem:[#allocation4 + $0xce4] sm:$0xf0]  ;;  %v7149_v20 = vld [vmem:[#allocation4 + $0x5cc] sm:$0xf] }
 0x12d   :  { %v6558_v23 = vld [vmem:[#allocation4 + $0xec8] sm:$0xf]  ;;  %v6303_v29 = vor.u32 %v7377_v22, %v6302_v21  ;;  %3460 = vmatpush.bf16.msrb.mxu1 %v6047_v28  ;;  %v5408_v21 = vld [vmem:[#allocation4 + $0x5e8] sm:$0xf0]  ;;  %v3207_v22 = vpop.f32.mrf.mxu1 }
 0x12e   :  { %v7441_v24 = vld [vmem:[#allocation4 + $0xee4] sm:$0xf0]  ;;  %v7213_v26 = vld [vmem:[#allocation4 + $0x7cc] sm:$0xf] }
 0x12f   :  { %v5758_v30 = vld [vmem:[#allocation4 + $0x888] sm:$0xf]  ;;  %v6559_v35 = vor.u32 %v7441_v24, %v6558_v23  ;;  %3473 = vmatpush.bf16.msrb.mxu2 %v6303_v29  ;;  %v4899_v29 = vor.u32 %v7021_v14, %v4896_v16  ;;  %v6989_v16 = vld [vmem:[#allocation4 + $0xcc] sm:$0xf] }
 0x130   :  { %v7241_v31 = vld [vmem:[#allocation4 + $0x8a4] sm:$0xf0]  ;;  %v5024_v22 = vld [vmem:[#allocation4 + $0x2e8] sm:$0xf0] }
 0x131   :  { %v6014_v32 = vld [vmem:[#allocation4 + $0xa88] sm:$0xf]  ;;  %v5759_v44 = vor.u32 %v7241_v31, %v5758_v30  ;;  %3486 = vmatpush.bf16.msrb.mxu3 %v6559_v35  ;;  %v3220_v30 = vpop.f32.mrf.mxu2  ;;  %v5155_v31 = vor.u32 %v7085_v17, %v5152_v19  ;;  %v4864_v35 = vld [vmem:[#allocation4 + $0x1a8] sm:$0xf0] }
 0x132   :  { %v7305_v36 = vld [vmem:[#allocation4 + $0xaa4] sm:$0xf0]  ;;  %v4768_v17 = vld [vmem:[#allocation4 + $0xe8] sm:$0xf0] }
 0x133   :  { %v6270_v39 = vld [vmem:[#allocation4 + $0xc88] sm:$0xf]  ;;  %v6015_v46 = vor.u32 %v7305_v36, %v6014_v32  ;;  %3448 = vmatpush.bf16.msrb.mxu0 %v5759_v44  ;;  %v5411_v32 = vor.u32 %v7149_v20, %v5408_v21  ;;  %v7077_v36 = vld [vmem:[#allocation4 + $0x38c] sm:$0xf] }
 0x134   :  { %v7369_v41 = vld [vmem:[#allocation4 + $0xca4] sm:$0xf0]  ;;  %v5376_v44 = vld [vmem:[#allocation4 + $0x5a8] sm:$0xf0] }
 0x135   :  { %v6526_v42 = vld [vmem:[#allocation4 + $0xe88] sm:$0xf]  ;;  %v6271_v47 = vor.u32 %v7369_v41, %v6270_v39  ;;  %3461 = vmatpush.bf16.msrb.mxu1 %v6015_v46  ;;  %v3233_v39 = vpop.f32.mrf.mxu3  ;;  %v5667_v41 = vor.u32 %v7213_v26, %v5664_v27  ;;  %v5632_v46 = vld [vmem:[#allocation4 + $0x7a8] sm:$0xf0]  ;;  %v3257_v20 = vpop.f32.mrf.mxu1 }
 0x136   :  { %v7433_v43 = vld [vmem:[#allocation4 + $0xea4] sm:$0xf0]  ;;  %v7181_v26 = vld [vmem:[#allocation4 + $0x6cc] sm:$0xf] }
 0x137   :  { %v5726_v48 = vld [vmem:[#allocation4 + $0x848] sm:$0xf]  ;;  %v6527_v52 = vor.u32 %v7433_v43, %v6526_v42  ;;  %3474 = vmatpush.bf16.msrb.mxu2 %v6271_v47  ;;  %v5120_v42 = vld [vmem:[#allocation4 + $0x3a8] sm:$0xf0]  ;;  %v4867_v47 = vor.u32 %v7013_v33, %v4864_v35 }
 0x138   :  { %v7233_v49 = vld [vmem:[#allocation4 + $0x864] sm:$0xf0]  ;;  %v7141_v43 = vld [vmem:[#allocation4 + $0x58c] sm:$0xf] }
 0x139   :  { %v5982_v50 = vld [vmem:[#allocation4 + $0xa48] sm:$0xf]  ;;  %v5727_v61 = vor.u32 %v7233_v49, %v5726_v48  ;;  %3487 = vmatpush.bf16.msrb.mxu3 %v6527_v52  ;;  %v5123_v48 = vor.u32 %v7077_v36, %v5120_v42  ;;  %v5379_v49 = vor.u32 %v7141_v43, %v5376_v44  ;;  %v7069_v52 = vld [vmem:[#allocation4 + $0x34c] sm:$0xf]  ;;  %v3270_v36 = vpop.f32.mrf.mxu2 }
 0x13a   :  { %v7297_v53 = vld [vmem:[#allocation4 + $0xa64] sm:$0xf0]  ;;  %v5536_v27 = vld [vmem:[#allocation4 + $0x6e8] sm:$0xf0] }
 0x13b   :  { %v6238_v54 = vld [vmem:[#allocation4 + $0xc48] sm:$0xf]  ;;  %v5983_v1 = vor.u32 %v7297_v53, %v5982_v50  ;;  %3449 = vmatpush.bf16.msrb.mxu0 %v5727_v61  ;;  %v7005_v50 = vld [vmem:[#allocation4 + $0x14c] sm:$0xf]  ;;  %v5635_v53 = vor.u32 %v7205_v45, %v5632_v46 }
 0x13c   :  { %v7361_v55 = vld [vmem:[#allocation4 + $0xc64] sm:$0xf0]  ;;  %v4835_v59 = vor.u32 %v7005_v50, %v4832_v51  ;;  %v4736_v33 = vld [vmem:[#allocation4 + $0xa8] sm:$0xf0] }
 0x13d   :  { %v6494_v57 = vld [vmem:[#allocation4 + $0xe48] sm:$0xf]  ;;  %v6239_v2 = vor.u32 %v7361_v55, %v6238_v54  ;;  %3462 = vmatpush.bf16.msrb.mxu1 %v5983_v1  ;;  %v5088_v54 = vld [vmem:[#allocation4 + $0x368] sm:$0xf0]  ;;  %v3283_v44 = vpop.f32.mrf.mxu3 }
 0x13e   :  { %v7425_v58 = vld [vmem:[#allocation4 + $0xe64] sm:$0xf0]  ;;  %v7133_v55 = vld [vmem:[#allocation4 + $0x54c] sm:$0xf]  ;;  %v5091_v60 = vor.u32 %v7069_v52, %v5088_v54 }
 0x13f   :  { %v5694_v62 = vld [vmem:[#allocation4 + $0x808] sm:$0xf]  ;;  %v6495_v10 = vor.u32 %v7425_v58, %v6494_v57  ;;  %3475 = vmatpush.bf16.msrb.mxu2 %v6239_v2  ;;  %v7197_v57 = vld [vmem:[#allocation4 + $0x74c] sm:$0xf]  ;;  %v5347_v61 = vor.u32 %v7133_v55, %v5344_v56  ;;  %v3259_v55 = vpop.f32.mrf.mxu1 }
 0x140   :  { %v7225_v63 = vld [vmem:[#allocation4 + $0x824] sm:$0xf0]  ;;  %v5600_v58 = vld [vmem:[#allocation4 + $0x768] sm:$0xf0] }
 0x141   :  { %v5950_v3 = vld [vmem:[#allocation4 + $0xa08] sm:$0xf]  ;;  %v5695_v18 = vor.u32 %v7225_v63, %v5694_v62  ;;  %3488 = vmatpush.bf16.msrb.mxu3 %v6495_v10  ;;  %v6997_v62 = vld [vmem:[#allocation4 + $0x10c] sm:$0xf]  ;;  %v5603_v1 = vor.u32 %v7197_v57, %v5600_v58 }
 0x142   :  { %v7289_v4 = vld [vmem:[#allocation4 + $0xa24] sm:$0xf0]  ;;  %v4800_v63 = vld [vmem:[#allocation4 + $0x128] sm:$0xf0] }
 0x143   :  { %v6206_v5 = vld [vmem:[#allocation4 + $0xc08] sm:$0xf]  ;;  %v5951_v23 = vor.u32 %v7289_v4, %v5950_v3  ;;  %3450 = vmatpush.bf16.msrb.mxu0 %v5695_v18  ;;  %v5056_v2 = vld [vmem:[#allocation4 + $0x328] sm:$0xf0] }
 0x144   :  { %v7353_v11 = vld [vmem:[#allocation4 + $0xc24] sm:$0xf0]  ;;  %v7125_v3 = vld [vmem:[#allocation4 + $0x50c] sm:$0xf] }
 0x145   :  { %v6462_v12 = vld [vmem:[#allocation4 + $0xe08] sm:$0xf]  ;;  %v6207_v24 = vor.u32 %v7353_v11, %v6206_v5  ;;  %3463 = vmatpush.bf16.msrb.mxu1 %v5951_v23  ;;  %v5312_v4 = vld [vmem:[#allocation4 + $0x528] sm:$0xf0]  ;;  %v4803_v11 = vor.u32 %v6997_v62, %v4800_v63 }
 0x146   :  { %v7417_v13 = vld [vmem:[#allocation4 + $0xe24] sm:$0xf0]  ;;  %3451 = vmatmul.bf16.vlgmr.msrb.gmra.mxu0 %v7714_v37  ;;  %v7189_v5 = vld [vmem:[#allocation4 + $0x70c] sm:$0xf]  ;;  %v5315_v14 = vor.u32 %v7125_v3, %v5312_v4 }
 0x147   :  { %v6463_v28 = vor.u32 %v7417_v13, %v6462_v12  ;;  %3476 = vmatpush.bf16.msrb.mxu2 %v6207_v24  ;;  %3495 = vmatpush.bf16.msra.mxu0 %v4899_v29  ;;  %v5568_v10 = vld [vmem:[#allocation4 + $0x728] sm:$0xf0]  ;;  %v3244_v12 = vpop.f32.mrf.mxu0  ;;  %v5059_v13 = vor.u32 %v7061_v0, %v5056_v2  ;;  %v4771_v29 = vor.u32 %v6989_v16, %v4768_v17  ;;  %v3285_v16 = vpop.f32.mrf.mxu3 }
 0x148   :  { %3464 = vmatmul.bf16.vlgmr.msrb.gmra.mxu1 %v7718_v40  ;;  %v7053_v18 = vld [vmem:[#allocation4 + $0x2cc] sm:$0xf]  ;;  %v3245_v19 = vadd.f32 %v3244_v12, %v7739_v7  ;;  %v5571_v21 = vor.u32 %v7189_v5, %v5568_v10  ;;  %v5539_v7 = vor.u32 %v7181_v26, %v5536_v27  ;;  %v3272_v10 = vpop.f32.mrf.mxu2 }
 0x149   :  { %3489 = vmatpush.bf16.msrb.mxu3 %v6463_v28  ;;  %3508 = vmatpush.bf16.msra.mxu1 %v5155_v31  ;;  %v7117_v23 = vld [vmem:[#allocation4 + $0x4cc] sm:$0xf]  ;;  %v5027_v30 = vor.u32 %v7053_v18, %v5024_v22 }
 0x14a   :  { %3477 = vmatmul.bf16.vlgmr.msrb.gmra.mxu2 %v7712_v34  ;;  %v5280_v24 = vld [vmem:[#allocation4 + $0x4e8] sm:$0xf0]  ;;  %v3258_v28 = vadd.f32 %v3257_v20, %v3245_v19 }
 0x14b   :  { %3521 = vmatpush.bf16.msra.mxu2 %v5411_v32  ;;  %3496 = vmatpush.bf16.msra.mxu0 %v4867_v47  ;;  %v5283_v31 = vor.u32 %v7117_v23, %v5280_v24  ;;  %v6981_v32 = vld [vmem:[#allocation4 + $0x8c] sm:$0xf] }
 0x14c   :  { %3490 = vmatmul.bf16.vlgmr.msrb.gmra.mxu3 %v7716_v38  ;;  %v7045_v35 = vld [vmem:[#allocation4 + $0x28c] sm:$0xf]  ;;  %v3271_v43 = vadd.f32 %v3270_v36, %v3258_v28  ;;  %v4739_v47 = vor.u32 %v6981_v32, %v4736_v33 }
 0x14d   :  { %3534 = vmatpush.bf16.msra.mxu3 %v5667_v41  ;;  %3509 = vmatpush.bf16.msra.mxu1 %v5123_v48  ;;  %v4992_v39 = vld [vmem:[#allocation4 + $0x2a8] sm:$0xf0] }
 0x14e   :  { %v7109_v41 = vld [vmem:[#allocation4 + $0x48c] sm:$0xf]  ;;  %v7746_v48 = vadd.f32 %v3283_v44, %v3271_v43  ;;  %v4995_v50 = vor.u32 %v7045_v35, %v4992_v39 }
 0x14f   :  { %3522 = vmatpush.bf16.msra.mxu2 %v5379_v49  ;;  %3497 = vmatpush.bf16.msra.mxu0 %v4835_v59  ;;  %v5248_v42 = vld [vmem:[#allocation4 + $0x4a8] sm:$0xf0]  ;;  %v3246_v49 = vpop.f32.mrf.mxu0 }
 0x150   :  { %v7173_v45 = vld [vmem:[#allocation4 + $0x68c] sm:$0xf]  ;;  %v5251_v51 = vor.u32 %v7109_v41, %v5248_v42 }
 0x151   :  { %3535 = vmatpush.bf16.msra.mxu3 %v5635_v53  ;;  %3510 = vmatpush.bf16.msra.mxu1 %v5091_v60  ;;  %v5504_v46 = vld [vmem:[#allocation4 + $0x6a8] sm:$0xf0] }
 0x152   :  { %v6973_v52 = vld [vmem:[#allocation4 + $0x4c] sm:$0xf]  ;;  %v5507_v56 = vor.u32 %v7173_v45, %v5504_v46 }
 0x153   :  { %3523 = vmatpush.bf16.msra.mxu2 %v5347_v61  ;;  %3498 = vmatpush.bf16.msra.mxu0 %v4803_v11  ;;  %v4704_v53 = vld [vmem:[#allocation4 + $0x68] sm:$0xf0] }
 0x154   :  { %v7037_v54 = vld [vmem:[#allocation4 + $0x24c] sm:$0xf]  ;;  %v4707_v62 = vor.u32 %v6973_v52, %v4704_v53 }
 0x155   :  { %3536 = vmatpush.bf16.msra.mxu3 %v5603_v1  ;;  %3511 = vmatpush.bf16.msra.mxu1 %v5059_v13  ;;  %v4960_v57 = vld [vmem:[#allocation4 + $0x268] sm:$0xf0] }
 0x156   :  { %v7101_v58 = vld [vmem:[#allocation4 + $0x44c] sm:$0xf]  ;;  %v4963_v1 = vor.u32 %v7037_v54, %v4960_v57 }
 0x157   :  { %3524 = vmatpush.bf16.msra.mxu2 %v5315_v14  ;;  %3499 = vmatpush.bf16.msra.mxu0 %v4771_v29  ;;  %v5216_v59 = vld [vmem:[#allocation4 + $0x468] sm:$0xf0] }
 0x158   :  { %v7165_v60 = vld [vmem:[#allocation4 + $0x64c] sm:$0xf]  ;;  %v5219_v2 = vor.u32 %v7101_v58, %v5216_v59 }
 0x159   :  { %3537 = vmatpush.bf16.msra.mxu3 %v5571_v21  ;;  %3512 = vmatpush.bf16.msra.mxu1 %v5027_v30  ;;  %v5472_v61 = vld [vmem:[#allocation4 + $0x668] sm:$0xf0] }
 0x15a   :  { %v6965_v63 = vld [vmem:[#allocation4 + $0xc] sm:$0xf]  ;;  %v5475_v11 = vor.u32 %v7165_v60, %v5472_v61 }
 0x15b   :  { %3525 = vmatpush.bf16.msra.mxu2 %v5283_v31  ;;  %3500 = vmatpush.bf16.msra.mxu0 %v4739_v47  ;;  %v4672_v0 = vld [vmem:[#allocation4 + $0x28] sm:$0xf0] }
 0x15c   :  { %v7029_v3 = vld [vmem:[#allocation4 + $0x20c] sm:$0xf]  ;;  %v4675_v20 = vor.u32 %v6965_v63, %v4672_v0  ;;  %v608_v0 = vperm.slane %v7736_v6, 1 }
 0x15d   :  { %3538 = vmatpush.bf16.msra.mxu3 %v5539_v7  ;;  %3513 = vmatpush.bf16.msra.mxu1 %v4995_v50  ;;  %v4928_v4 = vld [vmem:[#allocation4 + $0x228] sm:$0xf0] }
 0x15e   :  { %v7093_v5 = vld [vmem:[#allocation4 + $0x40c] sm:$0xf]  ;;  %v4931_v24 = vor.u32 %v7029_v3, %v4928_v4 }
 0x15f   :  { %3526 = vmatpush.bf16.msra.mxu2 %v5251_v51  ;;  %v5184_v12 = vld [vmem:[#allocation4 + $0x428] sm:$0xf0]  ;;  %3501 = vmatpush.bf16.msra.mxu0 %v4707_v62 }
 0x160   :  { %v7157_v13 = vld [vmem:[#allocation4 + $0x60c] sm:$0xf]  ;;  %v5187_v26 = vor.u32 %v7093_v5, %v5184_v12  ;;  %v3296_v12 = vpop.f32.mrf.mxu0 }
 0x161   :  { %3539 = vmatpush.bf16.msra.mxu3 %v5507_v56  ;;  %v5440_v14 = vld [vmem:[#allocation4 + $0x628] sm:$0xf0]  ;;  %3514 = vmatpush.bf16.msra.mxu1 %v4963_v1 }
 0x162   :  { %v7277_v17 = vld [vmem:[#allocation4 + $0x9cc] sm:$0xf]  ;;  %v5443_v29 = vor.u32 %v7157_v13, %v5440_v14 }
 0x163   :  { %v5920_v18 = vld [vmem:[#allocation4 + $0x9e8] sm:$0xf0]  ;;  %3527 = vmatpush.bf16.msra.mxu2 %v5219_v2  ;;  %3502 = vmatpush.bf16.msra.mxu0 %v4675_v20  ;;  %v3309_v20 = vpop.f32.mrf.mxu1 }
 0x164   :  { %v7341_v19 = vld [vmem:[#allocation4 + $0xbcc] sm:$0xf]  ;;  %v5923_v30 = vor.u32 %v7277_v17, %v5920_v18 }
 0x165   :  { %v6176_v21 = vld [vmem:[#allocation4 + $0xbe8] sm:$0xf0]  ;;  %3540 = vmatpush.bf16.msra.mxu3 %v5475_v11  ;;  %3515 = vmatpush.bf16.msra.mxu1 %v4931_v24 }
 0x166   :  { %v7405_v22 = vld [vmem:[#allocation4 + $0xdcc] sm:$0xf]  ;;  %v6179_v31 = vor.u32 %v7341_v19, %v6176_v21  ;;  %3503 = vmatmul.bf16.vlgmr.msra.gmra.mxu0 %v7702_v9  ;;  %v3297_v19 = vadd.f32 %v3296_v12, %v608_v0 }
 0x167   :  { %v6432_v23 = vld [vmem:[#allocation4 + $0xde8] sm:$0xf0]  ;;  %3528 = vmatpush.bf16.msra.mxu2 %v5187_v26  ;;  %3547 = vmatpush.bf16.msrb.mxu0 %v5923_v30 }
 0x168   :  { %v7469_v27 = vld [vmem:[#allocation4 + $0xfcc] sm:$0xf]  ;;  %v6435_v32 = vor.u32 %v7405_v22, %v6432_v23  ;;  %3516 = vmatmul.bf16.vlgmr.msra.gmra.mxu1 %v7709_v25 }
 0x169   :  { %v6688_v28 = vld [vmem:[#allocation4 + $0xfe8] sm:$0xf0]  ;;  %3541 = vmatpush.bf16.msra.mxu3 %v5443_v29  ;;  %3560 = vmatpush.bf16.msrb.mxu1 %v6179_v31 }
 0x16a   :  { %v7269_v33 = vld [vmem:[#allocation4 + $0x98c] sm:$0xf]  ;;  %v6691_v7 = vor.u32 %v7469_v27, %v6688_v28  ;;  %3529 = vmatmul.bf16.vlgmr.msra.gmra.mxu2 %v7700_v8  ;;  %v3310_v27 = vadd.f32 %v3309_v20, %v3297_v19  ;;  %v5158_v19 = vld [vmem:[#allocation4 + $0x3d0] sm:$0xf] }
 0x16b   :  { %v5888_v35 = vld [vmem:[#allocation4 + $0x9a8] sm:$0xf0]  ;;  %3573 = vmatpush.bf16.msrb.mxu2 %v6435_v32 }
 0x16c   :  { %v7333_v36 = vld [vmem:[#allocation4 + $0xb8c] sm:$0xf]  ;;  %v5891_v45 = vor.u32 %v7269_v33, %v5888_v35  ;;  %3542 = vmatmul.bf16.vlgmr.msra.gmra.mxu3 %v7704_v15  ;;  %v3322_v35 = vpop.f32.mrf.mxu2 }
 0x16d   :  { %v6144_v39 = vld [vmem:[#allocation4 + $0xba8] sm:$0xf0]  ;;  %3586 = vmatpush.bf16.msrb.mxu3 %v6691_v7 }
 0x16e   :  { %v7397_v41 = vld [vmem:[#allocation4 + $0xd8c] sm:$0xf]  ;;  %v6147_v46 = vor.u32 %v7333_v36, %v6144_v39  ;;  %3548 = vmatpush.bf16.msrb.mxu0 %v5891_v45 }
 0x16f   :  { %v6400_v42 = vld [vmem:[#allocation4 + $0xda8] sm:$0xf0] }
 0x170   :  { %v7461_v43 = vld [vmem:[#allocation4 + $0xf8c] sm:$0xf]  ;;  %v6403_v47 = vor.u32 %v7397_v41, %v6400_v42  ;;  %3561 = vmatpush.bf16.msrb.mxu1 %v6147_v46  ;;  %v3323_v42 = vadd.f32 %v3322_v35, %v3310_v27  ;;  %v7218_v27 = vld [vmem:[#allocation4 + $0x7ec] sm:$0xf0] }
 0x171   :  { %v6656_v44 = vld [vmem:[#allocation4 + $0xfa8] sm:$0xf0]  ;;  %v5126_v35 = vld [vmem:[#allocation4 + $0x390] sm:$0xf] }
 0x172   :  { %v7261_v49 = vld [vmem:[#allocation4 + $0x94c] sm:$0xf]  ;;  %v6659_v52 = vor.u32 %v7461_v43, %v6656_v44  ;;  %3574 = vmatpush.bf16.msrb.mxu2 %v6403_v47  ;;  %v3335_v43 = vpop.f32.mrf.mxu3 }
 0x173   :  { %v5856_v50 = vld [vmem:[#allocation4 + $0x968] sm:$0xf0]  ;;  %v7753_v47 = vadd.f32 %v3335_v43, %v3323_v42  ;;  %v5638_v42 = vld [vmem:[#allocation4 + $0x790] sm:$0xf] }
 0x174   :  { %v7325_v51 = vld [vmem:[#allocation4 + $0xb4c] sm:$0xf]  ;;  %v5859_v58 = vor.u32 %v7261_v49, %v5856_v50  ;;  %3587 = vmatpush.bf16.msrb.mxu3 %v6659_v52  ;;  %v3298_v49 = vpop.f32.mrf.mxu0  ;;  %v7210_v43 = vld [vmem:[#allocation4 + $0x7ac] sm:$0xf0] }
 0x175   :  { %v6112_v53 = vld [vmem:[#allocation4 + $0xb68] sm:$0xf0]  ;;  %v4838_v49 = vld [vmem:[#allocation4 + $0x150] sm:$0xf] }
 0x176   :  { %v7389_v54 = vld [vmem:[#allocation4 + $0xd4c] sm:$0xf]  ;;  %v6115_v60 = vor.u32 %v7325_v51, %v6112_v53  ;;  %3549 = vmatpush.bf16.msrb.mxu0 %v5859_v58 }
 0x177   :  { %v6368_v55 = vld [vmem:[#allocation4 + $0xd68] sm:$0xf0] }
 0x178   :  { %v7453_v56 = vld [vmem:[#allocation4 + $0xf4c] sm:$0xf]  ;;  %v6371_v61 = vor.u32 %v7389_v54, %v6368_v55  ;;  %3562 = vmatpush.bf16.msrb.mxu1 %v6115_v60  ;;  %v3311_v55 = vpop.f32.mrf.mxu1 }
 0x179   :  { %v6624_v57 = vld [vmem:[#allocation4 + $0xf68] sm:$0xf0]  ;;  %v7138_v55 = vld [vmem:[#allocation4 + $0x56c] sm:$0xf0] }
 0x17a   :  { %v7253_v59 = vld [vmem:[#allocation4 + $0x90c] sm:$0xf]  ;;  %v6627_v1 = vor.u32 %v7453_v56, %v6624_v57  ;;  %3575 = vmatpush.bf16.msrb.mxu2 %v6371_v61 }
 0x17b   :  { %v5824_v62 = vld [vmem:[#allocation4 + $0x928] sm:$0xf0] }
 0x17c   :  { %v7317_v63 = vld [vmem:[#allocation4 + $0xb0c] sm:$0xf]  ;;  %v5827_v11 = vor.u32 %v7253_v59, %v5824_v62  ;;  %3588 = vmatpush.bf16.msrb.mxu3 %v6627_v1 }
 0x17d   :  { %v6080_v2 = vld [vmem:[#allocation4 + $0xb28] sm:$0xf0] }
 0x17e   :  { %v7381_v3 = vld [vmem:[#allocation4 + $0xd0c] sm:$0xf]  ;;  %v6083_v13 = vor.u32 %v7317_v63, %v6080_v2  ;;  %3550 = vmatpush.bf16.msrb.mxu0 %v5827_v11 }
 0x17f   :  { %v6336_v4 = vld [vmem:[#allocation4 + $0xd28] sm:$0xf0] }
 0x180   :  { %v7445_v5 = vld [vmem:[#allocation4 + $0xf0c] sm:$0xf]  ;;  %v6339_v14 = vor.u32 %v7381_v3, %v6336_v4  ;;  %3563 = vmatpush.bf16.msrb.mxu1 %v6083_v13 }
 0x181   :  { %v6592_v10 = vld [vmem:[#allocation4 + $0xf28] sm:$0xf0] }
 0x182   :  { %v7245_v16 = vld [vmem:[#allocation4 + $0x8cc] sm:$0xf]  ;;  %v6595_v6 = vor.u32 %v7445_v5, %v6592_v10  ;;  %3576 = vmatpush.bf16.msrb.mxu2 %v6339_v14  ;;  %v3324_v10 = vpop.f32.mrf.mxu2 }
 0x183   :  { %v5792_v17 = vld [vmem:[#allocation4 + $0x8e8] sm:$0xf0] }
 0x184   :  { %v7309_v18 = vld [vmem:[#allocation4 + $0xacc] sm:$0xf]  ;;  %v5795_v28 = vor.u32 %v7245_v16, %v5792_v17  ;;  %3589 = vmatpush.bf16.msrb.mxu3 %v6595_v6  ;;  %v3337_v16 = vpop.f32.mrf.mxu3  ;;  %v4902_v17 = vld [vmem:[#allocation4 + $0x1d0] sm:$0xf] }
 0x185   :  { %v6048_v21 = vld [vmem:[#allocation4 + $0xae8] sm:$0xf0]  ;;  %v7090_v6 = vld [vmem:[#allocation4 + $0x3ec] sm:$0xf0] }
 0x186   :  { %v7373_v22 = vld [vmem:[#allocation4 + $0xccc] sm:$0xf]  ;;  %v6051_v29 = vor.u32 %v7309_v18, %v6048_v21  ;;  %3551 = vmatpush.bf16.msrb.mxu0 %v5795_v28  ;;  %v7026_v18 = vld [vmem:[#allocation4 + $0x1ec] sm:$0xf0] }
 0x187   :  { %v6304_v23 = vld [vmem:[#allocation4 + $0xce8] sm:$0xf0]  ;;  %v5414_v21 = vld [vmem:[#allocation4 + $0x5d0] sm:$0xf] }
 0x188   :  { %v7437_v24 = vld [vmem:[#allocation4 + $0xecc] sm:$0xf]  ;;  %v6307_v30 = vor.u32 %v7373_v22, %v6304_v23  ;;  %3564 = vmatpush.bf16.msrb.mxu1 %v6051_v29  ;;  %v7154_v22 = vld [vmem:[#allocation4 + $0x5ec] sm:$0xf0]  ;;  %v4903_v29 = vor.u32 %v7026_v18, %v4902_v17 }
 0x189   :  { %v6560_v26 = vld [vmem:[#allocation4 + $0xee8] sm:$0xf0]  ;;  %v6994_v16 = vld [vmem:[#allocation4 + $0xec] sm:$0xf0] }
 0x18a   :  { %v7237_v31 = vld [vmem:[#allocation4 + $0x88c] sm:$0xf]  ;;  %v6563_v36 = vor.u32 %v7437_v24, %v6560_v26  ;;  %3577 = vmatpush.bf16.msrb.mxu2 %v6307_v30  ;;  %v5670_v26 = vld [vmem:[#allocation4 + $0x7d0] sm:$0xf]  ;;  %v5159_v30 = vor.u32 %v7090_v6, %v5158_v19  ;;  %v3361_v19 = vpop.f32.mrf.mxu1 }
 0x18b   :  { %v5760_v32 = vld [vmem:[#allocation4 + $0x8a8] sm:$0xf0]  ;;  %v5030_v17 = vld [vmem:[#allocation4 + $0x2d0] sm:$0xf] }
 0x18c   :  { %v7301_v33 = vld [vmem:[#allocation4 + $0xa8c] sm:$0xf]  ;;  %v5763_v46 = vor.u32 %v7237_v31, %v5760_v32  ;;  %3590 = vmatpush.bf16.msrb.mxu3 %v6563_v36  ;;  %v5415_v31 = vor.u32 %v7154_v22, %v5414_v21  ;;  %v4870_v32 = vld [vmem:[#allocation4 + $0x190] sm:$0xf]  ;;  %v5671_v36 = vor.u32 %v7218_v27, %v5670_v26 }
 0x18d   :  { %v6016_v7 = vld [vmem:[#allocation4 + $0xaa8] sm:$0xf0]  ;;  %v7058_v6 = vld [vmem:[#allocation4 + $0x2ec] sm:$0xf0] }
 0x18e   :  { %v7365_v39 = vld [vmem:[#allocation4 + $0xc8c] sm:$0xf]  ;;  %v6019_v50 = vor.u32 %v7301_v33, %v6016_v7  ;;  %3552 = vmatpush.bf16.msrb.mxu0 %v5763_v46  ;;  %v7018_v33 = vld [vmem:[#allocation4 + $0x1ac] sm:$0xf0] }
 0x18f   :  { %v6272_v41 = vld [vmem:[#allocation4 + $0xca8] sm:$0xf0]  ;;  %v7082_v7 = vld [vmem:[#allocation4 + $0x3ac] sm:$0xf0] }
 0x190   :  { %v7429_v44 = vld [vmem:[#allocation4 + $0xe8c] sm:$0xf]  ;;  %v6275_v51 = vor.u32 %v7365_v39, %v6272_v41  ;;  %3565 = vmatpush.bf16.msrb.mxu1 %v6019_v50  ;;  %v5382_v39 = vld [vmem:[#allocation4 + $0x590] sm:$0xf] }
 0x191   :  { %v6528_v45 = vld [vmem:[#allocation4 + $0xea8] sm:$0xf0]  ;;  %v7146_v41 = vld [vmem:[#allocation4 + $0x5ac] sm:$0xf0] }
 0x192   :  { %v7229_v52 = vld [vmem:[#allocation4 + $0x84c] sm:$0xf]  ;;  %v6531_v56 = vor.u32 %v7429_v44, %v6528_v45  ;;  %3578 = vmatpush.bf16.msrb.mxu2 %v6275_v51  ;;  %v4871_v44 = vor.u32 %v7018_v33, %v4870_v32  ;;  %v5127_v45 = vor.u32 %v7082_v7, %v5126_v35  ;;  %v5383_v46 = vor.u32 %v7146_v41, %v5382_v39  ;;  %v7010_v50 = vld [vmem:[#allocation4 + $0x16c] sm:$0xf0]  ;;  %v3374_v33 = vpop.f32.mrf.mxu2  ;;  %v3387_v41 = vpop.f32.mrf.mxu3 }
 0x193   :  { %v5728_v53 = vld [vmem:[#allocation4 + $0x868] sm:$0xf0]  ;;  %v5094_v51 = vld [vmem:[#allocation4 + $0x350] sm:$0xf] }
 0x194   :  { %v7293_v54 = vld [vmem:[#allocation4 + $0xa4c] sm:$0xf]  ;;  %v5731_v62 = vor.u32 %v7229_v52, %v5728_v53  ;;  %3591 = vmatpush.bf16.msrb.mxu3 %v6531_v56  ;;  %v5639_v52 = vor.u32 %v7210_v43, %v5638_v42  ;;  %v7074_v53 = vld [vmem:[#allocation4 + $0x36c] sm:$0xf0] }
 0x195   :  { %v5984_v57 = vld [vmem:[#allocation4 + $0xa68] sm:$0xf0]  ;;  %v5606_v56 = vld [vmem:[#allocation4 + $0x750] sm:$0xf] }
 0x196   :  { %v7357_v58 = vld [vmem:[#allocation4 + $0xc4c] sm:$0xf]  ;;  %v5987_v1 = vor.u32 %v7293_v54, %v5984_v57  ;;  %3553 = vmatpush.bf16.msrb.mxu0 %v5731_v62  ;;  %v5350_v54 = vld [vmem:[#allocation4 + $0x550] sm:$0xf] }
 0x197   :  { %v6240_v59 = vld [vmem:[#allocation4 + $0xc68] sm:$0xf0]  ;;  %v7202_v57 = vld [vmem:[#allocation4 + $0x76c] sm:$0xf0] }
 0x198   :  { %v7421_v60 = vld [vmem:[#allocation4 + $0xe4c] sm:$0xf]  ;;  %v6243_v2 = vor.u32 %v7357_v58, %v6240_v59  ;;  %3566 = vmatpush.bf16.msrb.mxu1 %v5987_v1  ;;  %v4839_v58 = vor.u32 %v7010_v50, %v4838_v49  ;;  %v5095_v59 = vor.u32 %v7074_v53, %v5094_v51  ;;  %v7002_v62 = vld [vmem:[#allocation4 + $0x12c] sm:$0xf0] }
 0x199   :  { %v6496_v61 = vld [vmem:[#allocation4 + $0xe68] sm:$0xf0]  ;;  %v7066_v1 = vld [vmem:[#allocation4 + $0x32c] sm:$0xf0] }
 0x19a   :  { %v7221_v63 = vld [vmem:[#allocation4 + $0x80c] sm:$0xf]  ;;  %v6499_v11 = vor.u32 %v7421_v60, %v6496_v61  ;;  %3579 = vmatpush.bf16.msrb.mxu2 %v6243_v2  ;;  %v5351_v60 = vor.u32 %v7138_v55, %v5350_v54  ;;  %v4806_v61 = vld [vmem:[#allocation4 + $0x110] sm:$0xf]  ;;  %v3363_v54 = vpop.f32.mrf.mxu1 }
 0x19b   :  { %v5696_v0 = vld [vmem:[#allocation4 + $0x828] sm:$0xf0]  ;;  %v5318_v2 = vld [vmem:[#allocation4 + $0x510] sm:$0xf]  ;;  %v4807_v10 = vor.u32 %v7002_v62, %v4806_v61 }
 0x19c   :  { %v7285_v3 = vld [vmem:[#allocation4 + $0xa0c] sm:$0xf]  ;;  %v5699_v20 = vor.u32 %v7221_v63, %v5696_v0  ;;  %3592 = vmatpush.bf16.msrb.mxu3 %v6499_v11  ;;  %v5062_v63 = vld [vmem:[#allocation4 + $0x310] sm:$0xf]  ;;  %v5607_v0 = vor.u32 %v7202_v57, %v5606_v56  ;;  %v3348_v11 = vpop.f32.mrf.mxu0 }
 0x19d   :  { %v5952_v4 = vld [vmem:[#allocation4 + $0xa28] sm:$0xf0]  ;;  %v3349_v18 = vadd.f32 %v3348_v11, %v7753_v47  ;;  %v5286_v21 = vld [vmem:[#allocation4 + $0x4d0] sm:$0xf] }
 0x19e   :  { %v7349_v5 = vld [vmem:[#allocation4 + $0xc0c] sm:$0xf]  ;;  %v5955_v23 = vor.u32 %v7285_v3, %v5952_v4  ;;  %3554 = vmatpush.bf16.msrb.mxu0 %v5699_v20  ;;  %v7130_v3 = vld [vmem:[#allocation4 + $0x52c] sm:$0xf0] }
 0x19f   :  { %v6208_v12 = vld [vmem:[#allocation4 + $0xc28] sm:$0xf0]  ;;  %v5574_v4 = vld [vmem:[#allocation4 + $0x710] sm:$0xf]  ;;  %v3362_v26 = vadd.f32 %v3361_v19, %v3349_v18 }
 0x1a0   :  { %v7413_v13 = vld [vmem:[#allocation4 + $0xe0c] sm:$0xf]  ;;  %v6211_v24 = vor.u32 %v7349_v5, %v6208_v12  ;;  %3567 = vmatpush.bf16.msrb.mxu1 %v5955_v23  ;;  %v7194_v5 = vld [vmem:[#allocation4 + $0x72c] sm:$0xf0]  ;;  %v5063_v12 = vor.u32 %v7066_v1, %v5062_v63 }
 0x1a1   :  { %v6464_v14 = vld [vmem:[#allocation4 + $0xe28] sm:$0xf0]  ;;  %3555 = vmatmul.bf16.vlgmr.msrb.gmra.mxu0 %v7714_v37  ;;  %v5575_v20 = vor.u32 %v7194_v5, %v5574_v4  ;;  %v7122_v22 = vld [vmem:[#allocation4 + $0x4ec] sm:$0xf0]  ;;  %v3375_v39 = vadd.f32 %v3374_v33, %v3362_v26  ;;  %v3376_v5 = vpop.f32.mrf.mxu2 }
 0x1a2   :  { %v6467_v28 = vor.u32 %v7413_v13, %v6464_v14  ;;  %3580 = vmatpush.bf16.msrb.mxu2 %v6211_v24  ;;  %3599 = vmatpush.bf16.msra.mxu0 %v4903_v29  ;;  %v5319_v13 = vor.u32 %v7130_v3, %v5318_v2  ;;  %v4774_v14 = vld [vmem:[#allocation4 + $0xd0] sm:$0xf]  ;;  %v5287_v29 = vor.u32 %v7122_v22, %v5286_v21 }
 0x1a3   :  { %3568 = vmatmul.bf16.vlgmr.msrb.gmra.mxu1 %v7718_v40  ;;  %v5542_v23 = vld [vmem:[#allocation4 + $0x6d0] sm:$0xf]  ;;  %v4775_v27 = vor.u32 %v6994_v16, %v4774_v14  ;;  %v3389_v14 = vpop.f32.mrf.mxu3 }
 0x1a4   :  { %3593 = vmatpush.bf16.msrb.mxu3 %v6467_v28  ;;  %3612 = vmatpush.bf16.msra.mxu1 %v5159_v30  ;;  %v7186_v24 = vld [vmem:[#allocation4 + $0x6ec] sm:$0xf0]  ;;  %v5031_v28 = vor.u32 %v7058_v6, %v5030_v17 }
 0x1a5   :  { %3581 = vmatmul.bf16.vlgmr.msrb.gmra.mxu2 %v7712_v34  ;;  %v4742_v30 = vld [vmem:[#allocation4 + $0x90] sm:$0xf]  ;;  %v5543_v47 = vor.u32 %v7186_v24, %v5542_v23 }
 0x1a6   :  { %3625 = vmatpush.bf16.msra.mxu2 %v5415_v31  ;;  %3600 = vmatpush.bf16.msra.mxu0 %v4871_v44  ;;  %v6986_v31 = vld [vmem:[#allocation4 + $0xac] sm:$0xf0] }
 0x1a7   :  { %3594 = vmatmul.bf16.vlgmr.msrb.gmra.mxu3 %v7716_v38  ;;  %v4998_v32 = vld [vmem:[#allocation4 + $0x290] sm:$0xf]  ;;  %v4743_v44 = vor.u32 %v6986_v31, %v4742_v30 }
 0x1a8   :  { %3638 = vmatpush.bf16.msra.mxu3 %v5671_v36  ;;  %3613 = vmatpush.bf16.msra.mxu1 %v5127_v45  ;;  %v7050_v35 = vld [vmem:[#allocation4 + $0x2ac] sm:$0xf0]  ;;  %v7760_v45 = vadd.f32 %v3387_v41, %v3375_v39 }
 0x1a9   :  { %v5254_v36 = vld [vmem:[#allocation4 + $0x490] sm:$0xf]  ;;  %v4999_v49 = vor.u32 %v7050_v35, %v4998_v32 }
 0x1aa   :  { %3626 = vmatpush.bf16.msra.mxu2 %v5383_v46  ;;  %3601 = vmatpush.bf16.msra.mxu0 %v4839_v58  ;;  %v7114_v7 = vld [vmem:[#allocation4 + $0x4ac] sm:$0xf0]  ;;  %v3350_v46 = vpop.f32.mrf.mxu0 }
 0x1ab   :  { %v5510_v42 = vld [vmem:[#allocation4 + $0x690] sm:$0xf]  ;;  %v5255_v50 = vor.u32 %v7114_v7, %v5254_v36 }
 0x1ac   :  { %3639 = vmatpush.bf16.msra.mxu3 %v5639_v52  ;;  %3614 = vmatpush.bf16.msra.mxu1 %v5095_v59  ;;  %v7178_v43 = vld [vmem:[#allocation4 + $0x6ac] sm:$0xf0] }
 0x1ad   :  { %v4710_v51 = vld [vmem:[#allocation4 + $0x50] sm:$0xf]  ;;  %v5511_v55 = vor.u32 %v7178_v43, %v5510_v42 }
 0x1ae   :  { %3627 = vmatpush.bf16.msra.mxu2 %v5351_v60  ;;  %3602 = vmatpush.bf16.msra.mxu0 %v4807_v10  ;;  %v6978_v52 = vld [vmem:[#allocation4 + $0x6c] sm:$0xf0] }
 0x1af   :  { %v4966_v53 = vld [vmem:[#allocation4 + $0x250] sm:$0xf]  ;;  %v4711_v61 = vor.u32 %v6978_v52, %v4710_v51 }
 0x1b0   :  { %3640 = vmatpush.bf16.msra.mxu3 %v5607_v0  ;;  %3615 = vmatpush.bf16.msra.mxu1 %v5063_v12  ;;  %v7042_v56 = vld [vmem:[#allocation4 + $0x26c] sm:$0xf0] }
 0x1b1   :  { %v5222_v57 = vld [vmem:[#allocation4 + $0x450] sm:$0xf]  ;;  %v4967_v0 = vor.u32 %v7042_v56, %v4966_v53 }
 0x1b2   :  { %3628 = vmatpush.bf16.msra.mxu2 %v5319_v13  ;;  %3603 = vmatpush.bf16.msra.mxu0 %v4775_v27  ;;  %v7106_v58 = vld [vmem:[#allocation4 + $0x46c] sm:$0xf0] }
 0x1b3   :  { %v5478_v59 = vld [vmem:[#allocation4 + $0x650] sm:$0xf]  ;;  %v5223_v1 = vor.u32 %v7106_v58, %v5222_v57 }
 0x1b4   :  { %3641 = vmatpush.bf16.msra.mxu3 %v5575_v20  ;;  %3616 = vmatpush.bf16.msra.mxu1 %v5031_v28  ;;  %v7170_v60 = vld [vmem:[#allocation4 + $0x66c] sm:$0xf0] }
 0x1b5   :  { %v4678_v62 = vld [vmem:[#allocation4 + $0x10] sm:$0xf]  ;;  %v5479_v10 = vor.u32 %v7170_v60, %v5478_v59 }
 0x1b6   :  { %3629 = vmatpush.bf16.msra.mxu2 %v5287_v29  ;;  %3604 = vmatpush.bf16.msra.mxu0 %v4743_v44  ;;  %v6970_v63 = vld [vmem:[#allocation4 + $0x2c] sm:$0xf0] }
 0x1b7   :  { %v4934_v2 = vld [vmem:[#allocation4 + $0x210] sm:$0xf]  ;;  %v4679_v19 = vor.u32 %v6970_v63, %v4678_v62  ;;  %v7766_v63 = vld [vmem:[#allocation6] sm:$0xff] }
 0x1b8   :  { %3642 = vmatpush.bf16.msra.mxu3 %v5543_v47  ;;  %3617 = vmatpush.bf16.msra.mxu1 %v4999_v49  ;;  %v7034_v3 = vld [vmem:[#allocation4 + $0x22c] sm:$0xf0] }
 0x1b9   :  { %v5190_v4 = vld [vmem:[#allocation4 + $0x410] sm:$0xf]  ;;  %v4935_v22 = vor.u32 %v7034_v3, %v4934_v2 }
 0x1ba   :  { %3630 = vmatpush.bf16.msra.mxu2 %v5255_v50  ;;  %v7098_v11 = vld [vmem:[#allocation4 + $0x42c] sm:$0xf0]  ;;  %3605 = vmatpush.bf16.msra.mxu0 %v4711_v61 }
 0x1bb   :  { %v5446_v12 = vld [vmem:[#allocation4 + $0x610] sm:$0xf]  ;;  %v5191_v23 = vor.u32 %v7098_v11, %v5190_v4 }
 0x1bc   :  { %3643 = vmatpush.bf16.msra.mxu3 %v5511_v55  ;;  %v7162_v13 = vld [vmem:[#allocation4 + $0x62c] sm:$0xf0]  ;;  %3618 = vmatpush.bf16.msra.mxu1 %v4967_v0  ;;  %v609_v0 = vperm.slane %v7766_v63, 2 }
 0x1bd   :  { %v5926_v16 = vld [vmem:[#allocation4 + $0x9d0] sm:$0xf]  ;;  %v5447_v27 = vor.u32 %v7162_v13, %v5446_v12  ;;  %v3400_v12 = vpop.f32.mrf.mxu0 }
 0x1be   :  { %v7282_v17 = vld [vmem:[#allocation4 + $0x9ec] sm:$0xf0]  ;;  %3631 = vmatpush.bf16.msra.mxu2 %v5223_v1  ;;  %3606 = vmatpush.bf16.msra.mxu0 %v4679_v19  ;;  %v3401_v19 = vadd.f32 %v3400_v12, %v609_v0 }
 0x1bf   :  { %v6182_v18 = vld [vmem:[#allocation4 + $0xbd0] sm:$0xf]  ;;  %v5927_v28 = vor.u32 %v7282_v17, %v5926_v16 }
 0x1c0   :  { %v7346_v20 = vld [vmem:[#allocation4 + $0xbec] sm:$0xf0]  ;;  %3644 = vmatpush.bf16.msra.mxu3 %v5479_v10  ;;  %3619 = vmatpush.bf16.msra.mxu1 %v4935_v22 }
 0x1c1   :  { %v6438_v6 = vld [vmem:[#allocation4 + $0xdd0] sm:$0xf]  ;;  %v6183_v29 = vor.u32 %v7346_v20, %v6182_v18  ;;  %3607 = vmatmul.bf16.vlgmr.msra.gmra.mxu0 %v7702_v9  ;;  %v3413_v20 = vpop.f32.mrf.mxu1 }
 0x1c2   :  { %v7410_v21 = vld [vmem:[#allocation4 + $0xdec] sm:$0xf0]  ;;  %3632 = vmatpush.bf16.msra.mxu2 %v5191_v23  ;;  %3651 = vmatpush.bf16.msrb.mxu0 %v5927_v28 }
 0x1c3   :  { %v6694_v24 = vld [vmem:[#allocation4 + $0xfd0] sm:$0xf]  ;;  %v6439_v30 = vor.u32 %v7410_v21, %v6438_v6  ;;  %3620 = vmatmul.bf16.vlgmr.msra.gmra.mxu1 %v7709_v25 }
 0x1c4   :  { %v7474_v26 = vld [vmem:[#allocation4 + $0xfec] sm:$0xf0]  ;;  %3645 = vmatpush.bf16.msra.mxu3 %v5447_v27  ;;  %3664 = vmatpush.bf16.msrb.mxu1 %v6183_v29  ;;  %v3414_v27 = vadd.f32 %v3413_v20, %v3401_v19  ;;  %v7022_v19 = vld [vmem:[#allocation4 + $0x1d4] sm:$0xf] }
 0x1c5   :  { %v5894_v31 = vld [vmem:[#allocation4 + $0x990] sm:$0xf]  ;;  %v6695_v47 = vor.u32 %v7474_v26, %v6694_v24  ;;  %3633 = vmatmul.bf16.vlgmr.msra.gmra.mxu2 %v7700_v8  ;;  %v4904_v20 = vld [vmem:[#allocation4 + $0x1f0] sm:$0xf0] }
 0x1c6   :  { %v7274_v32 = vld [vmem:[#allocation4 + $0x9ac] sm:$0xf0]  ;;  %3677 = vmatpush.bf16.msrb.mxu2 %v6439_v30 }
 0x1c7   :  { %v6150_v33 = vld [vmem:[#allocation4 + $0xb90] sm:$0xf]  ;;  %v5895_v42 = vor.u32 %v7274_v32, %v5894_v31  ;;  %3646 = vmatmul.bf16.vlgmr.msra.gmra.mxu3 %v7704_v15 }
 0x1c8   :  { %v7338_v35 = vld [vmem:[#allocation4 + $0xbac] sm:$0xf0]  ;;  %3690 = vmatpush.bf16.msrb.mxu3 %v6695_v47  ;;  %v3426_v47 = vpop.f32.mrf.mxu2 }
 0x1c9   :  { %v6406_v36 = vld [vmem:[#allocation4 + $0xd90] sm:$0xf]  ;;  %v6151_v43 = vor.u32 %v7338_v35, %v6150_v33  ;;  %3652 = vmatpush.bf16.msrb.mxu0 %v5895_v42  ;;  %v3439_v42 = vpop.f32.mrf.mxu3 }
 0x1ca   :  { %v7402_v7 = vld [vmem:[#allocation4 + $0xdac] sm:$0xf0] }
 0x1cb   :  { %v6662_v39 = vld [vmem:[#allocation4 + $0xf90] sm:$0xf]  ;;  %v6407_v44 = vor.u32 %v7402_v7, %v6406_v36  ;;  %3665 = vmatpush.bf16.msrb.mxu1 %v6151_v43 }
 0x1cc   :  { %v7466_v41 = vld [vmem:[#allocation4 + $0xfac] sm:$0xf0] }
 0x1cd   :  { %v5862_v46 = vld [vmem:[#allocation4 + $0x950] sm:$0xf]  ;;  %v6663_v51 = vor.u32 %v7466_v41, %v6662_v39  ;;  %3678 = vmatpush.bf16.msrb.mxu2 %v6407_v44  ;;  %v3427_v41 = vadd.f32 %v3426_v47, %v3414_v27  ;;  %v7014_v47 = vld [vmem:[#allocation4 + $0x194] sm:$0xf] }
 0x1ce   :  { %v7266_v49 = vld [vmem:[#allocation4 + $0x96c] sm:$0xf0] }
 0x1cf   :  { %v6118_v50 = vld [vmem:[#allocation4 + $0xb50] sm:$0xf]  ;;  %v5863_v57 = vor.u32 %v7266_v49, %v5862_v46  ;;  %3691 = vmatpush.bf16.msrb.mxu3 %v6663_v51  ;;  %v7769_v49 = vadd.f32 %v3439_v42, %v3427_v41  ;;  %v7142_v41 = vld [vmem:[#allocation4 + $0x594] sm:$0xf] }
 0x1d0   :  { %v7330_v52 = vld [vmem:[#allocation4 + $0xb6c] sm:$0xf0]  ;;  %v3428_v12 = vpop.f32.mrf.mxu2  ;;  %v5384_v42 = vld [vmem:[#allocation4 + $0x5b0] sm:$0xf0] }
 0x1d1   :  { %v6374_v53 = vld [vmem:[#allocation4 + $0xd50] sm:$0xf]  ;;  %v6119_v59 = vor.u32 %v7330_v52, %v6118_v50  ;;  %3653 = vmatpush.bf16.msrb.mxu0 %v5863_v57  ;;  %v3402_v50 = vpop.f32.mrf.mxu0  ;;  %v7190_v12 = vld [vmem:[#allocation4 + $0x714] sm:$0xf] }
 0x1d2   :  { %v7394_v54 = vld [vmem:[#allocation4 + $0xd6c] sm:$0xf0] }
 0x1d3   :  { %v6630_v55 = vld [vmem:[#allocation4 + $0xf50] sm:$0xf]  ;;  %v6375_v60 = vor.u32 %v7394_v54, %v6374_v53  ;;  %3666 = vmatpush.bf16.msrb.mxu1 %v6119_v59 }
 0x1d4   :  { %v7458_v56 = vld [vmem:[#allocation4 + $0xf6c] sm:$0xf0] }
 0x1d5   :  { %v5830_v58 = vld [vmem:[#allocation4 + $0x910] sm:$0xf]  ;;  %v6631_v1 = vor.u32 %v7458_v56, %v6630_v55  ;;  %3679 = vmatpush.bf16.msrb.mxu2 %v6375_v60  ;;  %v3415_v56 = vpop.f32.mrf.mxu1 }
 0x1d6   :  { %v7258_v61 = vld [vmem:[#allocation4 + $0x92c] sm:$0xf0]  ;;  %v5096_v56 = vld [vmem:[#allocation4 + $0x370] sm:$0xf0] }
 0x1d7   :  { %v6086_v62 = vld [vmem:[#allocation4 + $0xb10] sm:$0xf]  ;;  %v5831_v11 = vor.u32 %v7258_v61, %v5830_v58  ;;  %3692 = vmatpush.bf16.msrb.mxu3 %v6631_v1 }
 0x1d8   :  { %v7322_v2 = vld [vmem:[#allocation4 + $0xb2c] sm:$0xf0] }
 0x1d9   :  { %v6342_v3 = vld [vmem:[#allocation4 + $0xd10] sm:$0xf]  ;;  %v6087_v13 = vor.u32 %v7322_v2, %v6086_v62  ;;  %3654 = vmatpush.bf16.msrb.mxu0 %v5831_v11 }
 0x1da   :  { %v7386_v4 = vld [vmem:[#allocation4 + $0xd2c] sm:$0xf0] }
 0x1db   :  { %v6598_v5 = vld [vmem:[#allocation4 + $0xf10] sm:$0xf]  ;;  %v6343_v14 = vor.u32 %v7386_v4, %v6342_v3  ;;  %3667 = vmatpush.bf16.msrb.mxu1 %v6087_v13 }
 0x1dc   :  { %v7450_v10 = vld [vmem:[#allocation4 + $0xf2c] sm:$0xf0] }
 0x1dd   :  { %v5798_v16 = vld [vmem:[#allocation4 + $0x8d0] sm:$0xf]  ;;  %v6599_v6 = vor.u32 %v7450_v10, %v6598_v5  ;;  %3680 = vmatpush.bf16.msrb.mxu2 %v6343_v14 }
 0x1de   :  { %v7250_v17 = vld [vmem:[#allocation4 + $0x8ec] sm:$0xf0] }
 0x1df   :  { %v6054_v18 = vld [vmem:[#allocation4 + $0xad0] sm:$0xf]  ;;  %v5799_v28 = vor.u32 %v7250_v17, %v5798_v16  ;;  %3693 = vmatpush.bf16.msrb.mxu3 %v6599_v6  ;;  %v7086_v6 = vld [vmem:[#allocation4 + $0x3d4] sm:$0xf] }
 0x1e0   :  { %v7314_v21 = vld [vmem:[#allocation4 + $0xaec] sm:$0xf0] }
 0x1e1   :  { %v6310_v22 = vld [vmem:[#allocation4 + $0xcd0] sm:$0xf]  ;;  %v6055_v29 = vor.u32 %v7314_v21, %v6054_v18  ;;  %3655 = vmatpush.bf16.msrb.mxu0 %v5799_v28  ;;  %v3441_v18 = vpop.f32.mrf.mxu3  ;;  %v7214_v28 = vld [vmem:[#allocation4 + $0x7d4] sm:$0xf] }
 0x1e2   :  { %v7378_v23 = vld [vmem:[#allocation4 + $0xcec] sm:$0xf0] }
 0x1e3   :  { %v6566_v24 = vld [vmem:[#allocation4 + $0xed0] sm:$0xf]  ;;  %v6311_v30 = vor.u32 %v7378_v23, %v6310_v22  ;;  %3668 = vmatpush.bf16.msrb.mxu1 %v6055_v29  ;;  %v5160_v22 = vld [vmem:[#allocation4 + $0x3f0] sm:$0xf0] }
 0x1e4   :  { %v7442_v26 = vld [vmem:[#allocation4 + $0xeec] sm:$0xf0]  ;;  %v7150_v23 = vld [vmem:[#allocation4 + $0x5d4] sm:$0xf] }
 0x1e5   :  { %v5766_v31 = vld [vmem:[#allocation4 + $0x890] sm:$0xf]  ;;  %v6567_v35 = vor.u32 %v7442_v26, %v6566_v24  ;;  %3681 = vmatpush.bf16.msrb.mxu2 %v6311_v30  ;;  %v5416_v24 = vld [vmem:[#allocation4 + $0x5f0] sm:$0xf0] }
 0x1e6   :  { %v7242_v32 = vld [vmem:[#allocation4 + $0x8ac] sm:$0xf0]  ;;  %v5672_v29 = vld [vmem:[#allocation4 + $0x7f0] sm:$0xf0] }
 0x1e7   :  { %v6022_v33 = vld [vmem:[#allocation4 + $0xa90] sm:$0xf]  ;;  %v5767_v46 = vor.u32 %v7242_v32, %v5766_v31  ;;  %3694 = vmatpush.bf16.msrb.mxu3 %v6567_v35  ;;  %v4907_v31 = vor.u32 %v7022_v19, %v4904_v20  ;;  %v5163_v32 = vor.u32 %v7086_v6, %v5160_v22  ;;  %v4872_v35 = vld [vmem:[#allocation4 + $0x1b0] sm:$0xf0]  ;;  %v3465_v22 = vpop.f32.mrf.mxu1 }
 0x1e8   :  { %v7306_v36 = vld [vmem:[#allocation4 + $0xaac] sm:$0xf0]  ;;  %v6990_v19 = vld [vmem:[#allocation4 + $0xd4] sm:$0xf] }
 0x1e9   :  { %v6278_v7 = vld [vmem:[#allocation4 + $0xc90] sm:$0xf]  ;;  %v6023_v51 = vor.u32 %v7306_v36, %v6022_v33  ;;  %3656 = vmatpush.bf16.msrb.mxu0 %v5767_v46  ;;  %v5419_v33 = vor.u32 %v7150_v23, %v5416_v24  ;;  %v7078_v36 = vld [vmem:[#allocation4 + $0x394] sm:$0xf]  ;;  %v4875_v46 = vor.u32 %v7014_v47, %v4872_v35 }
 0x1ea   :  { %v7370_v39 = vld [vmem:[#allocation4 + $0xcac] sm:$0xf0]  ;;  %v4776_v20 = vld [vmem:[#allocation4 + $0xf0] sm:$0xf0] }
 0x1eb   :  { %v6534_v43 = vld [vmem:[#allocation4 + $0xe90] sm:$0xf]  ;;  %v6279_v52 = vor.u32 %v7370_v39, %v6278_v7  ;;  %3669 = vmatpush.bf16.msrb.mxu1 %v6023_v51  ;;  %v5675_v7 = vor.u32 %v7214_v28, %v5672_v29  ;;  %v5128_v39 = vld [vmem:[#allocation4 + $0x3b0] sm:$0xf0]  ;;  %v5387_v51 = vor.u32 %v7142_v41, %v5384_v42 }
 0x1ec   :  { %v7434_v44 = vld [vmem:[#allocation4 + $0xeac] sm:$0xf0]  ;;  %v5131_v50 = vor.u32 %v7078_v36, %v5128_v39  ;;  %v7054_v6 = vld [vmem:[#allocation4 + $0x2d4] sm:$0xf] }
 0x1ed   :  { %v5734_v53 = vld [vmem:[#allocation4 + $0x850] sm:$0xf]  ;;  %v6535_v57 = vor.u32 %v7434_v44, %v6534_v43  ;;  %3682 = vmatpush.bf16.msrb.mxu2 %v6279_v52  ;;  %v7206_v43 = vld [vmem:[#allocation4 + $0x794] sm:$0xf] }
 0x1ee   :  { %v7234_v54 = vld [vmem:[#allocation4 + $0x86c] sm:$0xf0]  ;;  %v5640_v44 = vld [vmem:[#allocation4 + $0x7b0] sm:$0xf0] }
 0x1ef   :  { %v5990_v55 = vld [vmem:[#allocation4 + $0xa50] sm:$0xf]  ;;  %v5735_v0 = vor.u32 %v7234_v54, %v5734_v53  ;;  %3695 = vmatpush.bf16.msrb.mxu3 %v6535_v57  ;;  %v7006_v52 = vld [vmem:[#allocation4 + $0x154] sm:$0xf] }
 0x1f0   :  { %v7298_v58 = vld [vmem:[#allocation4 + $0xa6c] sm:$0xf0]  ;;  %v4840_v53 = vld [vmem:[#allocation4 + $0x170] sm:$0xf0] }
 0x1f1   :  { %v6246_v59 = vld [vmem:[#allocation4 + $0xc50] sm:$0xf]  ;;  %v5991_v3 = vor.u32 %v7298_v58, %v5990_v55  ;;  %3657 = vmatpush.bf16.msrb.mxu0 %v5735_v0  ;;  %v7070_v54 = vld [vmem:[#allocation4 + $0x354] sm:$0xf]  ;;  %v5643_v55 = vor.u32 %v7206_v43, %v5640_v44  ;;  %v3491_v44 = vpop.f32.mrf.mxu3 }
 0x1f2   :  { %v7362_v60 = vld [vmem:[#allocation4 + $0xc6c] sm:$0xf0]  ;;  %v7134_v57 = vld [vmem:[#allocation4 + $0x554] sm:$0xf] }
 0x1f3   :  { %v6502_v61 = vld [vmem:[#allocation4 + $0xe50] sm:$0xf]  ;;  %v6247_v4 = vor.u32 %v7362_v60, %v6246_v59  ;;  %3670 = vmatpush.bf16.msrb.mxu1 %v5991_v3  ;;  %v5352_v58 = vld [vmem:[#allocation4 + $0x570] sm:$0xf0] }
 0x1f4   :  { %v7426_v62 = vld [vmem:[#allocation4 + $0xe6c] sm:$0xf0]  ;;  %v7198_v59 = vld [vmem:[#allocation4 + $0x754] sm:$0xf]  ;;  %v5355_v0 = vor.u32 %v7134_v57, %v5352_v58 }
 0x1f5   :  { %v5702_v1 = vld [vmem:[#allocation4 + $0x810] sm:$0xf]  ;;  %v6503_v13 = vor.u32 %v7426_v62, %v6502_v61  ;;  %3683 = vmatpush.bf16.msrb.mxu2 %v6247_v4  ;;  %v5608_v60 = vld [vmem:[#allocation4 + $0x770] sm:$0xf0]  ;;  %v4843_v61 = vor.u32 %v7006_v52, %v4840_v53  ;;  %v5099_v62 = vor.u32 %v7070_v54, %v5096_v56 }
 0x1f6   :  { %v7226_v2 = vld [vmem:[#allocation4 + $0x82c] sm:$0xf0]  ;;  %v7062_v3 = vld [vmem:[#allocation4 + $0x314] sm:$0xf]  ;;  %v5611_v4 = vor.u32 %v7198_v59, %v5608_v60  ;;  %v3467_v59 = vpop.f32.mrf.mxu1 }
 0x1f7   :  { %v5958_v5 = vld [vmem:[#allocation4 + $0xa10] sm:$0xf]  ;;  %v5703_v21 = vor.u32 %v7226_v2, %v5702_v1  ;;  %3696 = vmatpush.bf16.msrb.mxu3 %v6503_v13  ;;  %v6998_v1 = vld [vmem:[#allocation4 + $0x114] sm:$0xf] }
 0x1f8   :  { %v7290_v10 = vld [vmem:[#allocation4 + $0xa2c] sm:$0xf0]  ;;  %v4808_v2 = vld [vmem:[#allocation4 + $0x130] sm:$0xf0] }
 0x1f9   :  { %v6214_v11 = vld [vmem:[#allocation4 + $0xc10] sm:$0xf]  ;;  %v5959_v26 = vor.u32 %v7290_v10, %v5958_v5  ;;  %3658 = vmatpush.bf16.msrb.mxu0 %v5703_v21  ;;  %v5064_v5 = vld [vmem:[#allocation4 + $0x330] sm:$0xf0] }
 0x1fa   :  { %v7354_v14 = vld [vmem:[#allocation4 + $0xc2c] sm:$0xf0]  ;;  %v7126_v10 = vld [vmem:[#allocation4 + $0x514] sm:$0xf] }
 0x1fb   :  { %v6470_v16 = vld [vmem:[#allocation4 + $0xe10] sm:$0xf]  ;;  %v6215_v27 = vor.u32 %v7354_v14, %v6214_v11  ;;  %3671 = vmatpush.bf16.msrb.mxu1 %v5959_v26  ;;  %v5320_v11 = vld [vmem:[#allocation4 + $0x530] sm:$0xf0]  ;;  %v4811_v14 = vor.u32 %v6998_v1, %v4808_v2 }
 0x1fc   :  { %v7418_v17 = vld [vmem:[#allocation4 + $0xe2c] sm:$0xf0]  ;;  %3659 = vmatmul.bf16.vlgmr.msrb.gmra.mxu0 %v7714_v37  ;;  %v5576_v13 = vld [vmem:[#allocation4 + $0x730] sm:$0xf0]  ;;  %v5323_v18 = vor.u32 %v7126_v10, %v5320_v11 }
 0x1fd   :  { %v6471_v30 = vor.u32 %v7418_v17, %v6470_v16  ;;  %3684 = vmatpush.bf16.msrb.mxu2 %v6215_v27  ;;  %3703 = vmatpush.bf16.msra.mxu0 %v4907_v31  ;;  %v3452_v16 = vpop.f32.mrf.mxu0  ;;  %v5067_v17 = vor.u32 %v7062_v3, %v5064_v5  ;;  %v5579_v23 = vor.u32 %v7190_v12, %v5576_v13  ;;  %v5032_v24 = vld [vmem:[#allocation4 + $0x2f0] sm:$0xf0] }
 0x1fe   :  { %3672 = vmatmul.bf16.vlgmr.msrb.gmra.mxu1 %v7718_v40  ;;  %v3453_v21 = vadd.f32 %v3452_v16, %v7769_v49  ;;  %v7118_v26 = vld [vmem:[#allocation4 + $0x4d4] sm:$0xf]  ;;  %v4779_v31 = vor.u32 %v6990_v19, %v4776_v20 }
 0x1ff   :  { %3697 = vmatpush.bf16.msrb.mxu3 %v6471_v30  ;;  %3716 = vmatpush.bf16.msra.mxu1 %v5163_v32  ;;  %v5288_v27 = vld [vmem:[#allocation4 + $0x4f0] sm:$0xf0]  ;;  %v5035_v32 = vor.u32 %v7054_v6, %v5032_v24  ;;  %v3493_v6 = vpop.f32.mrf.mxu3 }
 0x200   :  { %3685 = vmatmul.bf16.vlgmr.msrb.gmra.mxu2 %v7712_v34  ;;  %v7182_v28 = vld [vmem:[#allocation4 + $0x6d4] sm:$0xf]  ;;  %v3466_v30 = vadd.f32 %v3465_v22, %v3453_v21 }
 0x201   :  { %3729 = vmatpush.bf16.msra.mxu2 %v5419_v33  ;;  %3704 = vmatpush.bf16.msra.mxu0 %v4875_v46  ;;  %v5544_v29 = vld [vmem:[#allocation4 + $0x6f0] sm:$0xf0]  ;;  %v5291_v33 = vor.u32 %v7118_v26, %v5288_v27 }
 0x202   :  { %3698 = vmatmul.bf16.vlgmr.msrb.gmra.mxu3 %v7716_v38  ;;  %v6982_v47 = vld [vmem:[#allocation4 + $0x94] sm:$0xf]  ;;  %v5547_v49 = vor.u32 %v7182_v28, %v5544_v29 }
 0x203   :  { %3742 = vmatpush.bf16.msra.mxu3 %v5675_v7  ;;  %3717 = vmatpush.bf16.msra.mxu1 %v5131_v50  ;;  %v4744_v35 = vld [vmem:[#allocation4 + $0xb0] sm:$0xf0]  ;;  %v3478_v7 = vpop.f32.mrf.mxu2 }
 0x204   :  { %v7046_v36 = vld [vmem:[#allocation4 + $0x294] sm:$0xf]  ;;  %v3479_v43 = vadd.f32 %v3478_v7, %v3466_v30 }
 0x205   :  { %3730 = vmatpush.bf16.msra.mxu2 %v5387_v51  ;;  %3705 = vmatpush.bf16.msra.mxu0 %v4843_v61  ;;  %v5000_v39 = vld [vmem:[#allocation4 + $0x2b0] sm:$0xf0]  ;;  %v4747_v51 = vor.u32 %v6982_v47, %v4744_v35  ;;  %v3454_v53 = vpop.f32.mrf.mxu0 }
 0x206   :  { %v7110_v41 = vld [vmem:[#allocation4 + $0x494] sm:$0xf]  ;;  %v7776_v52 = vadd.f32 %v3491_v44, %v3479_v43  ;;  %v5003_v54 = vor.u32 %v7046_v36, %v5000_v39 }
 0x207   :  { %3743 = vmatpush.bf16.msra.mxu3 %v5643_v55  ;;  %3718 = vmatpush.bf16.msra.mxu1 %v5099_v62  ;;  %v5256_v42 = vld [vmem:[#allocation4 + $0x4b0] sm:$0xf0] }
 0x208   :  { %v7174_v46 = vld [vmem:[#allocation4 + $0x694] sm:$0xf]  ;;  %v5259_v55 = vor.u32 %v7110_v41, %v5256_v42 }
 0x209   :  { %3731 = vmatpush.bf16.msra.mxu2 %v5355_v0  ;;  %3706 = vmatpush.bf16.msra.mxu0 %v4811_v14  ;;  %v5512_v50 = vld [vmem:[#allocation4 + $0x6b0] sm:$0xf0] }
 0x20a   :  { %v6974_v56 = vld [vmem:[#allocation4 + $0x54] sm:$0xf]  ;;  %v5515_v60 = vor.u32 %v7174_v46, %v5512_v50 }
 0x20b   :  { %3744 = vmatpush.bf16.msra.mxu3 %v5611_v4  ;;  %3719 = vmatpush.bf16.msra.mxu1 %v5067_v17  ;;  %v4712_v57 = vld [vmem:[#allocation4 + $0x70] sm:$0xf0]  ;;  %v3480_v16 = vpop.f32.mrf.mxu2 }
 0x20c   :  { %v7038_v58 = vld [vmem:[#allocation4 + $0x254] sm:$0xf]  ;;  %v4715_v3 = vor.u32 %v6974_v56, %v4712_v57 }
 0x20d   :  { %3732 = vmatpush.bf16.msra.mxu2 %v5323_v18  ;;  %3707 = vmatpush.bf16.msra.mxu0 %v4779_v31  ;;  %v4968_v61 = vld [vmem:[#allocation4 + $0x270] sm:$0xf0] }
 0x20e   :  { %v7102_v62 = vld [vmem:[#allocation4 + $0x454] sm:$0xf]  ;;  %v4971_v10 = vor.u32 %v7038_v58, %v4968_v61 }
 0x20f   :  { %3745 = vmatpush.bf16.msra.mxu3 %v5579_v23  ;;  %3720 = vmatpush.bf16.msra.mxu1 %v5035_v32  ;;  %v5224_v0 = vld [vmem:[#allocation4 + $0x470] sm:$0xf0] }
 0x210   :  { %v7166_v1 = vld [vmem:[#allocation4 + $0x654] sm:$0xf]  ;;  %v5227_v11 = vor.u32 %v7102_v62, %v5224_v0 }
 0x211   :  { %3733 = vmatpush.bf16.msra.mxu2 %v5291_v33  ;;  %v5480_v2 = vld [vmem:[#allocation4 + $0x670] sm:$0xf0]  ;;  %3708 = vmatpush.bf16.msra.mxu0 %v4747_v51 }
 0x212   :  { %v6966_v4 = vld [vmem:[#allocation4 + $0x14] sm:$0xf]  ;;  %v5483_v17 = vor.u32 %v7166_v1, %v5480_v2 }
 0x213   :  { %3746 = vmatpush.bf16.msra.mxu3 %v5547_v49  ;;  %v4680_v5 = vld [vmem:[#allocation4 + $0x30] sm:$0xf0]  ;;  %3721 = vmatpush.bf16.msra.mxu1 %v5003_v54 }
 0x214   :  { %v7030_v12 = vld [vmem:[#allocation4 + $0x214] sm:$0xf]  ;;  %v4683_v24 = vor.u32 %v6966_v4, %v4680_v5 }
 0x215   :  { %3734 = vmatpush.bf16.msra.mxu2 %v5259_v55  ;;  %v4936_v13 = vld [vmem:[#allocation4 + $0x230] sm:$0xf0]  ;;  %3709 = vmatpush.bf16.msra.mxu0 %v4715_v3 }
 0x216   :  { %v7094_v14 = vld [vmem:[#allocation4 + $0x414] sm:$0xf]  ;;  %v4939_v29 = vor.u32 %v7030_v12, %v4936_v13 }
 0x217   :  { %3747 = vmatpush.bf16.msra.mxu3 %v5515_v60  ;;  %v5192_v18 = vld [vmem:[#allocation4 + $0x430] sm:$0xf0]  ;;  %3722 = vmatpush.bf16.msra.mxu1 %v4971_v10 }
 0x218   :  { %v7158_v19 = vld [vmem:[#allocation4 + $0x614] sm:$0xf]  ;;  %v5195_v30 = vor.u32 %v7094_v14, %v5192_v18 }
 0x219   :  { %v5448_v20 = vld [vmem:[#allocation4 + $0x630] sm:$0xf0]  ;;  %3735 = vmatpush.bf16.msra.mxu2 %v5227_v11  ;;  %3710 = vmatpush.bf16.msra.mxu0 %v4683_v24  ;;  %v610_v11 = vperm.slane %v7766_v63, 3 }
 0x21a   :  { %v7278_v21 = vld [vmem:[#allocation4 + $0x9d4] sm:$0xf]  ;;  %v5451_v33 = vor.u32 %v7158_v19, %v5448_v20  ;;  %v3504_v20 = vpop.f32.mrf.mxu0 }
 0x21b   :  { %v5928_v22 = vld [vmem:[#allocation4 + $0x9f0] sm:$0xf0]  ;;  %3748 = vmatpush.bf16.msra.mxu3 %v5483_v17  ;;  %3723 = vmatpush.bf16.msra.mxu1 %v4939_v29 }
 0x21c   :  { %v7342_v23 = vld [vmem:[#allocation4 + $0xbd4] sm:$0xf]  ;;  %v5931_v47 = vor.u32 %v7278_v21, %v5928_v22  ;;  %3711 = vmatmul.bf16.vlgmr.msra.gmra.mxu0 %v7702_v9 }
 0x21d   :  { %v6184_v26 = vld [vmem:[#allocation4 + $0xbf0] sm:$0xf0]  ;;  %3736 = vmatpush.bf16.msra.mxu2 %v5195_v30 }
 0x21e   :  { %v7406_v27 = vld [vmem:[#allocation4 + $0xdd4] sm:$0xf]  ;;  %v6187_v35 = vor.u32 %v7342_v23, %v6184_v26  ;;  %3755 = vmatpush.bf16.msrb.mxu0 %v5931_v47  ;;  %3724 = vmatmul.bf16.vlgmr.msra.gmra.mxu1 %v7709_v25  ;;  %v3505_v26 = vadd.f32 %v3504_v20, %v610_v11 }
 0x21f   :  { %v6440_v28 = vld [vmem:[#allocation4 + $0xdf0] sm:$0xf0]  ;;  %3749 = vmatpush.bf16.msra.mxu3 %v5451_v33 }
 0x220   :  { %v7470_v31 = vld [vmem:[#allocation4 + $0xfd4] sm:$0xf]  ;;  %v6443_v36 = vor.u32 %v7406_v27, %v6440_v28  ;;  %3768 = vmatpush.bf16.msrb.mxu1 %v6187_v35  ;;  %3737 = vmatmul.bf16.vlgmr.msra.gmra.mxu2 %v7700_v8  ;;  %v3517_v27 = vpop.f32.mrf.mxu1 }
 0x221   :  { %v6696_v32 = vld [vmem:[#allocation4 + $0xff0] sm:$0xf0]  ;;  %v3518_v33 = vadd.f32 %v3517_v27, %v3505_v26  ;;  %v4910_v26 = vld [vmem:[#allocation4 + $0x1d8] sm:$0xf] }
 0x222   :  { %v7270_v7 = vld [vmem:[#allocation4 + $0x994] sm:$0xf]  ;;  %v6699_v41 = vor.u32 %v7470_v31, %v6696_v32  ;;  %3781 = vmatpush.bf16.msrb.mxu2 %v6443_v36  ;;  %3750 = vmatmul.bf16.vlgmr.msra.gmra.mxu3 %v7704_v15  ;;  %v7027_v27 = vld [vmem:[#allocation4 + $0x1f4] sm:$0xf0] }
 0x223   :  { %v5896_v49 = vld [vmem:[#allocation4 + $0x9b0] sm:$0xf0] }
 0x224   :  { %v7334_v39 = vld [vmem:[#allocation4 + $0xb94] sm:$0xf]  ;;  %v5899_v51 = vor.u32 %v7270_v7, %v5896_v49  ;;  %3794 = vmatpush.bf16.msrb.mxu3 %v6699_v41  ;;  %v3530_v41 = vpop.f32.mrf.mxu2 }
 0x225   :  { %v6152_v42 = vld [vmem:[#allocation4 + $0xbb0] sm:$0xf0] }
 0x226   :  { %v7398_v43 = vld [vmem:[#allocation4 + $0xd94] sm:$0xf]  ;;  %v6155_v53 = vor.u32 %v7334_v39, %v6152_v42  ;;  %3756 = vmatpush.bf16.msrb.mxu0 %v5899_v51  ;;  %v3543_v51 = vpop.f32.mrf.mxu3 }
 0x227   :  { %v6408_v44 = vld [vmem:[#allocation4 + $0xdb0] sm:$0xf0] }
 0x228   :  { %v7462_v46 = vld [vmem:[#allocation4 + $0xf94] sm:$0xf]  ;;  %v6411_v54 = vor.u32 %v7398_v43, %v6408_v44  ;;  %3769 = vmatpush.bf16.msrb.mxu1 %v6155_v53 }
 0x229   :  { %v6664_v50 = vld [vmem:[#allocation4 + $0xfb0] sm:$0xf0] }
 0x22a   :  { %v7262_v55 = vld [vmem:[#allocation4 + $0x954] sm:$0xf]  ;;  %v6667_v58 = vor.u32 %v7462_v46, %v6664_v50  ;;  %3782 = vmatpush.bf16.msrb.mxu2 %v6411_v54  ;;  %v3531_v50 = vadd.f32 %v3530_v41, %v3518_v33  ;;  %v4878_v41 = vld [vmem:[#allocation4 + $0x198] sm:$0xf] }
 0x22b   :  { %v5864_v56 = vld [vmem:[#allocation4 + $0x970] sm:$0xf0] }
 0x22c   :  { %v7326_v57 = vld [vmem:[#allocation4 + $0xb54] sm:$0xf]  ;;  %v5867_v1 = vor.u32 %v7262_v55, %v5864_v56  ;;  %3795 = vmatpush.bf16.msrb.mxu3 %v6667_v58  ;;  %v7783_v56 = vadd.f32 %v3543_v51, %v3531_v50  ;;  %v3532_v20 = vpop.f32.mrf.mxu2  ;;  %v5390_v50 = vld [vmem:[#allocation4 + $0x598] sm:$0xf] }
 0x22d   :  { %v6120_v59 = vld [vmem:[#allocation4 + $0xb70] sm:$0xf0]  ;;  %v7147_v51 = vld [vmem:[#allocation4 + $0x5b4] sm:$0xf0] }
 0x22e   :  { %v7390_v60 = vld [vmem:[#allocation4 + $0xd54] sm:$0xf]  ;;  %v6123_v3 = vor.u32 %v7326_v57, %v6120_v59  ;;  %3757 = vmatpush.bf16.msrb.mxu0 %v5867_v1  ;;  %v3506_v57 = vpop.f32.mrf.mxu0  ;;  %v5582_v20 = vld [vmem:[#allocation4 + $0x718] sm:$0xf] }
 0x22f   :  { %v6376_v61 = vld [vmem:[#allocation4 + $0xd70] sm:$0xf0] }
 0x230   :  { %v7454_v62 = vld [vmem:[#allocation4 + $0xf54] sm:$0xf]  ;;  %v6379_v4 = vor.u32 %v7390_v60, %v6376_v61  ;;  %3770 = vmatpush.bf16.msrb.mxu1 %v6123_v3 }
 0x231   :  { %v6632_v0 = vld [vmem:[#allocation4 + $0xf70] sm:$0xf0] }
 0x232   :  { %v7254_v2 = vld [vmem:[#allocation4 + $0x914] sm:$0xf]  ;;  %v6635_v12 = vor.u32 %v7454_v62, %v6632_v0  ;;  %3783 = vmatpush.bf16.msrb.mxu2 %v6379_v4  ;;  %v3519_v0 = vpop.f32.mrf.mxu1 }
 0x233   :  { %v5832_v5 = vld [vmem:[#allocation4 + $0x930] sm:$0xf0]  ;;  %v7075_v0 = vld [vmem:[#allocation4 + $0x374] sm:$0xf0] }
 0x234   :  { %v7318_v10 = vld [vmem:[#allocation4 + $0xb14] sm:$0xf]  ;;  %v5835_v19 = vor.u32 %v7254_v2, %v5832_v5  ;;  %3796 = vmatpush.bf16.msrb.mxu3 %v6635_v12 }
 0x235   :  { %v6088_v13 = vld [vmem:[#allocation4 + $0xb30] sm:$0xf0] }
 0x236   :  { %v7382_v14 = vld [vmem:[#allocation4 + $0xd14] sm:$0xf]  ;;  %v6091_v6 = vor.u32 %v7318_v10, %v6088_v13  ;;  %3758 = vmatpush.bf16.msrb.mxu0 %v5835_v19 }
 0x237   :  { %v6344_v16 = vld [vmem:[#allocation4 + $0xd30] sm:$0xf0] }
 0x238   :  { %v7446_v17 = vld [vmem:[#allocation4 + $0xf14] sm:$0xf]  ;;  %v6347_v21 = vor.u32 %v7382_v14, %v6344_v16  ;;  %3771 = vmatpush.bf16.msrb.mxu1 %v6091_v6 }
 0x239   :  { %v6600_v18 = vld [vmem:[#allocation4 + $0xf30] sm:$0xf0] }
 0x23a   :  { %v7246_v22 = vld [vmem:[#allocation4 + $0x8d4] sm:$0xf]  ;;  %v6603_v63 = vor.u32 %v7446_v17, %v6600_v18  ;;  %3784 = vmatpush.bf16.msrb.mxu2 %v6347_v21 }
 0x23b   :  { %v5800_v23 = vld [vmem:[#allocation4 + $0x8f0] sm:$0xf0] }
 0x23c   :  { %v7310_v24 = vld [vmem:[#allocation4 + $0xad4] sm:$0xf]  ;;  %v5803_v47 = vor.u32 %v7246_v22, %v5800_v23  ;;  %3797 = vmatpush.bf16.msrb.mxu3 %v6603_v63  ;;  %v5166_v63 = vld [vmem:[#allocation4 + $0x3d8] sm:$0xf] }
 0x23d   :  { %v6056_v28 = vld [vmem:[#allocation4 + $0xaf0] sm:$0xf0] }
 0x23e   :  { %v7374_v29 = vld [vmem:[#allocation4 + $0xcd4] sm:$0xf]  ;;  %v6059_v35 = vor.u32 %v7310_v24, %v6056_v28  ;;  %3759 = vmatpush.bf16.msrb.mxu0 %v5803_v47  ;;  %v3545_v24 = vpop.f32.mrf.mxu3  ;;  %v5678_v47 = vld [vmem:[#allocation4 + $0x7d8] sm:$0xf] }
 0x23f   :  { %v6312_v30 = vld [vmem:[#allocation4 + $0xcf0] sm:$0xf0] }
 0x240   :  { %v7438_v31 = vld [vmem:[#allocation4 + $0xed4] sm:$0xf]  ;;  %v6315_v36 = vor.u32 %v7374_v29, %v6312_v30  ;;  %3772 = vmatpush.bf16.msrb.mxu1 %v6059_v35  ;;  %v7091_v29 = vld [vmem:[#allocation4 + $0x3f4] sm:$0xf0] }
 0x241   :  { %v6568_v32 = vld [vmem:[#allocation4 + $0xef0] sm:$0xf0]  ;;  %v5422_v30 = vld [vmem:[#allocation4 + $0x5d8] sm:$0xf] }
 0x242   :  { %v7238_v7 = vld [vmem:[#allocation4 + $0x894] sm:$0xf]  ;;  %v6571_v42 = vor.u32 %v7438_v31, %v6568_v32  ;;  %3785 = vmatpush.bf16.msrb.mxu2 %v6315_v36  ;;  %v7155_v31 = vld [vmem:[#allocation4 + $0x5f4] sm:$0xf0] }
 0x243   :  { %v5768_v49 = vld [vmem:[#allocation4 + $0x8b0] sm:$0xf0]  ;;  %v7219_v35 = vld [vmem:[#allocation4 + $0x7f4] sm:$0xf0] }
 0x244   :  { %v7302_v39 = vld [vmem:[#allocation4 + $0xa94] sm:$0xf]  ;;  %v5771_v55 = vor.u32 %v7238_v7, %v5768_v49  ;;  %3798 = vmatpush.bf16.msrb.mxu3 %v6571_v42  ;;  %v4911_v7 = vor.u32 %v7027_v27, %v4910_v26  ;;  %v5167_v49 = vor.u32 %v7091_v29, %v5166_v63  ;;  %v7019_v42 = vld [vmem:[#allocation4 + $0x1b4] sm:$0xf0]  ;;  %v3569_v29 = vpop.f32.mrf.mxu1 }
 0x245   :  { %v6024_v43 = vld [vmem:[#allocation4 + $0xab0] sm:$0xf0]  ;;  %v4782_v26 = vld [vmem:[#allocation4 + $0xd8] sm:$0xf] }
 0x246   :  { %v7366_v44 = vld [vmem:[#allocation4 + $0xc94] sm:$0xf]  ;;  %v6027_v58 = vor.u32 %v7302_v39, %v6024_v43  ;;  %3760 = vmatpush.bf16.msrb.mxu0 %v5771_v55  ;;  %v5423_v39 = vor.u32 %v7155_v31, %v5422_v30  ;;  %v5134_v43 = vld [vmem:[#allocation4 + $0x398] sm:$0xf]  ;;  %v4879_v55 = vor.u32 %v7019_v42, %v4878_v41 }
 0x247   :  { %v6280_v46 = vld [vmem:[#allocation4 + $0xcb0] sm:$0xf0]  ;;  %v6995_v27 = vld [vmem:[#allocation4 + $0xf4] sm:$0xf0] }
 0x248   :  { %v7430_v53 = vld [vmem:[#allocation4 + $0xe94] sm:$0xf]  ;;  %v6283_v59 = vor.u32 %v7366_v44, %v6280_v46  ;;  %3773 = vmatpush.bf16.msrb.mxu1 %v6027_v58  ;;  %v5679_v44 = vor.u32 %v7219_v35, %v5678_v47  ;;  %v7083_v46 = vld [vmem:[#allocation4 + $0x3b4] sm:$0xf0]  ;;  %v5391_v58 = vor.u32 %v7147_v51, %v5390_v50 }
 0x249   :  { %v6536_v54 = vld [vmem:[#allocation4 + $0xeb0] sm:$0xf0]  ;;  %v5135_v57 = vor.u32 %v7083_v46, %v5134_v43  ;;  %v5038_v63 = vld [vmem:[#allocation4 + $0x2d8] sm:$0xf] }
 0x24a   :  { %v7230_v60 = vld [vmem:[#allocation4 + $0x854] sm:$0xf]  ;;  %v6539_v1 = vor.u32 %v7430_v53, %v6536_v54  ;;  %3786 = vmatpush.bf16.msrb.mxu2 %v6283_v59  ;;  %v5646_v53 = vld [vmem:[#allocation4 + $0x798] sm:$0xf] }
 0x24b   :  { %v5736_v61 = vld [vmem:[#allocation4 + $0x870] sm:$0xf0]  ;;  %v7211_v54 = vld [vmem:[#allocation4 + $0x7b4] sm:$0xf0] }
 0x24c   :  { %v7294_v62 = vld [vmem:[#allocation4 + $0xa54] sm:$0xf]  ;;  %v5739_v11 = vor.u32 %v7230_v60, %v5736_v61  ;;  %3799 = vmatpush.bf16.msrb.mxu3 %v6539_v1  ;;  %v4846_v59 = vld [vmem:[#allocation4 + $0x158] sm:$0xf] }
 0x24d   :  { %v5992_v2 = vld [vmem:[#allocation4 + $0xa70] sm:$0xf0]  ;;  %v7011_v60 = vld [vmem:[#allocation4 + $0x174] sm:$0xf0] }
 0x24e   :  { %v7358_v3 = vld [vmem:[#allocation4 + $0xc54] sm:$0xf]  ;;  %v5995_v14 = vor.u32 %v7294_v62, %v5992_v2  ;;  %3761 = vmatpush.bf16.msrb.mxu0 %v5739_v11  ;;  %v5102_v61 = vld [vmem:[#allocation4 + $0x358] sm:$0xf]  ;;  %v5647_v62 = vor.u32 %v7211_v54, %v5646_v53  ;;  %v3595_v54 = vpop.f32.mrf.mxu3 }
 0x24f   :  { %v6248_v4 = vld [vmem:[#allocation4 + $0xc70] sm:$0xf0]  ;;  %v5358_v1 = vld [vmem:[#allocation4 + $0x558] sm:$0xf] }
 0x250   :  { %v7422_v5 = vld [vmem:[#allocation4 + $0xe54] sm:$0xf]  ;;  %v6251_v16 = vor.u32 %v7358_v3, %v6248_v4  ;;  %3774 = vmatpush.bf16.msrb.mxu1 %v5995_v14  ;;  %v7139_v2 = vld [vmem:[#allocation4 + $0x574] sm:$0xf0] }
 0x251   :  { %v6504_v10 = vld [vmem:[#allocation4 + $0xe70] sm:$0xf0]  ;;  %v5614_v3 = vld [vmem:[#allocation4 + $0x758] sm:$0xf]  ;;  %v5359_v11 = vor.u32 %v7139_v2, %v5358_v1 }
 0x252   :  { %v7222_v12 = vld [vmem:[#allocation4 + $0x814] sm:$0xf]  ;;  %v6507_v6 = vor.u32 %v7422_v5, %v6504_v10  ;;  %3787 = vmatpush.bf16.msrb.mxu2 %v6251_v16  ;;  %v7203_v4 = vld [vmem:[#allocation4 + $0x774] sm:$0xf0]  ;;  %v4847_v5 = vor.u32 %v7011_v60, %v4846_v59  ;;  %v5103_v10 = vor.u32 %v7075_v0, %v5102_v61 }
 0x253   :  { %v5704_v13 = vld [vmem:[#allocation4 + $0x830] sm:$0xf0]  ;;  %v5070_v14 = vld [vmem:[#allocation4 + $0x318] sm:$0xf]  ;;  %v5615_v16 = vor.u32 %v7203_v4, %v5614_v3  ;;  %v3571_v3 = vpop.f32.mrf.mxu1 }
 0x254   :  { %v7286_v17 = vld [vmem:[#allocation4 + $0xa14] sm:$0xf]  ;;  %v5707_v28 = vor.u32 %v7222_v12, %v5704_v13  ;;  %3800 = vmatpush.bf16.msrb.mxu3 %v6507_v6  ;;  %v4814_v12 = vld [vmem:[#allocation4 + $0x118] sm:$0xf] }
 0x255   :  { %v5960_v18 = vld [vmem:[#allocation4 + $0xa30] sm:$0xf0]  ;;  %v7003_v13 = vld [vmem:[#allocation4 + $0x134] sm:$0xf0] }
 0x256   :  { %v7350_v19 = vld [vmem:[#allocation4 + $0xc14] sm:$0xf]  ;;  %v5963_v32 = vor.u32 %v7286_v17, %v5960_v18  ;;  %3762 = vmatpush.bf16.msrb.mxu0 %v5707_v28  ;;  %v7067_v17 = vld [vmem:[#allocation4 + $0x334] sm:$0xf0] }
 0x257   :  { %v6216_v21 = vld [vmem:[#allocation4 + $0xc30] sm:$0xf0]  ;;  %v5326_v18 = vld [vmem:[#allocation4 + $0x518] sm:$0xf] }
 0x258   :  { %v7414_v22 = vld [vmem:[#allocation4 + $0xe14] sm:$0xf]  ;;  %v6219_v33 = vor.u32 %v7350_v19, %v6216_v21  ;;  %3775 = vmatpush.bf16.msrb.mxu1 %v5963_v32  ;;  %v7131_v19 = vld [vmem:[#allocation4 + $0x534] sm:$0xf0]  ;;  %v4815_v21 = vor.u32 %v7003_v13, %v4814_v12 }
 0x259   :  { %v6472_v23 = vld [vmem:[#allocation4 + $0xe30] sm:$0xf0]  ;;  %3763 = vmatmul.bf16.vlgmr.msrb.gmra.mxu0 %v7714_v37  ;;  %v7195_v6 = vld [vmem:[#allocation4 + $0x734] sm:$0xf0]  ;;  %v5327_v24 = vor.u32 %v7131_v19, %v5326_v18 }
 0x25a   :  { %v6475_v36 = vor.u32 %v7414_v22, %v6472_v23  ;;  %3788 = vmatpush.bf16.msrb.mxu2 %v6219_v33  ;;  %3807 = vmatpush.bf16.msra.mxu0 %v4911_v7  ;;  %v3556_v22 = vpop.f32.mrf.mxu0  ;;  %v5071_v23 = vor.u32 %v7067_v17, %v5070_v14  ;;  %v5583_v30 = vor.u32 %v7195_v6, %v5582_v20  ;;  %v7059_v31 = vld [vmem:[#allocation4 + $0x2f4] sm:$0xf0] }
 0x25b   :  { %3776 = vmatmul.bf16.vlgmr.msrb.gmra.mxu1 %v7718_v40  ;;  %v3557_v28 = vadd.f32 %v3556_v22, %v7783_v56  ;;  %v5294_v32 = vld [vmem:[#allocation4 + $0x4d8] sm:$0xf]  ;;  %v4783_v7 = vor.u32 %v6995_v27, %v4782_v26 }
 0x25c   :  { %3801 = vmatpush.bf16.msrb.mxu3 %v6475_v36  ;;  %3820 = vmatpush.bf16.msra.mxu1 %v5167_v49  ;;  %v7123_v33 = vld [vmem:[#allocation4 + $0x4f4] sm:$0xf0]  ;;  %v5039_v49 = vor.u32 %v7059_v31, %v5038_v63  ;;  %v3597_v63 = vpop.f32.mrf.mxu3 }
 0x25d   :  { %3789 = vmatmul.bf16.vlgmr.msrb.gmra.mxu2 %v7712_v34  ;;  %v5550_v47 = vld [vmem:[#allocation4 + $0x6d8] sm:$0xf]  ;;  %v3570_v36 = vadd.f32 %v3569_v29, %v3557_v28 }
 0x25e   :  { %3833 = vmatpush.bf16.msra.mxu2 %v5423_v39  ;;  %3808 = vmatpush.bf16.msra.mxu0 %v4879_v55  ;;  %v7187_v35 = vld [vmem:[#allocation4 + $0x6f4] sm:$0xf0]  ;;  %v5295_v39 = vor.u32 %v7123_v33, %v5294_v32 }
 0x25f   :  { %3802 = vmatmul.bf16.vlgmr.msrb.gmra.mxu3 %v7716_v38  ;;  %v4750_v41 = vld [vmem:[#allocation4 + $0x98] sm:$0xf]  ;;  %v5551_v56 = vor.u32 %v7187_v35, %v5550_v47 }
 0x260   :  { %3846 = vmatpush.bf16.msra.mxu3 %v5679_v44  ;;  %3821 = vmatpush.bf16.msra.mxu1 %v5135_v57  ;;  %v6987_v42 = vld [vmem:[#allocation4 + $0xb4] sm:$0xf0]  ;;  %v3582_v44 = vpop.f32.mrf.mxu2 }
 0x261   :  { %v5006_v43 = vld [vmem:[#allocation4 + $0x298] sm:$0xf]  ;;  %v3583_v53 = vadd.f32 %v3582_v44, %v3570_v36 }
 0x262   :  { %3834 = vmatpush.bf16.msra.mxu2 %v5391_v58  ;;  %3809 = vmatpush.bf16.msra.mxu0 %v4847_v5  ;;  %v7051_v46 = vld [vmem:[#allocation4 + $0x2b4] sm:$0xf0]  ;;  %v4751_v58 = vor.u32 %v6987_v42, %v4750_v41  ;;  %v3558_v60 = vpop.f32.mrf.mxu0 }
 0x263   :  { %v5262_v50 = vld [vmem:[#allocation4 + $0x498] sm:$0xf]  ;;  %v7790_v59 = vadd.f32 %v3595_v54, %v3583_v53  ;;  %v5007_v61 = vor.u32 %v7051_v46, %v5006_v43 }
 0x264   :  { %3847 = vmatpush.bf16.msra.mxu3 %v5647_v62  ;;  %3822 = vmatpush.bf16.msra.mxu1 %v5103_v10  ;;  %v7115_v51 = vld [vmem:[#allocation4 + $0x4b4] sm:$0xf0] }
 0x265   :  { %v5518_v55 = vld [vmem:[#allocation4 + $0x698] sm:$0xf]  ;;  %v5263_v62 = vor.u32 %v7115_v51, %v5262_v50 }
 0x266   :  { %3835 = vmatpush.bf16.msra.mxu2 %v5359_v11  ;;  %3810 = vmatpush.bf16.msra.mxu0 %v4815_v21  ;;  %v7179_v57 = vld [vmem:[#allocation4 + $0x6b4] sm:$0xf0] }
 0x267   :  { %v4718_v0 = vld [vmem:[#allocation4 + $0x58] sm:$0xf]  ;;  %v5519_v4 = vor.u32 %v7179_v57, %v5518_v55 }
 0x268   :  { %3848 = vmatpush.bf16.msra.mxu3 %v5615_v16  ;;  %3823 = vmatpush.bf16.msra.mxu1 %v5071_v23  ;;  %v6979_v1 = vld [vmem:[#allocation4 + $0x74] sm:$0xf0]  ;;  %v3584_v22 = vpop.f32.mrf.mxu2 }
 0x269   :  { %v4974_v2 = vld [vmem:[#allocation4 + $0x258] sm:$0xf]  ;;  %v4719_v14 = vor.u32 %v6979_v1, %v4718_v0 }
 0x26a   :  { %3836 = vmatpush.bf16.msra.mxu2 %v5327_v24  ;;  %3811 = vmatpush.bf16.msra.mxu0 %v4783_v7  ;;  %v7043_v5 = vld [vmem:[#allocation4 + $0x274] sm:$0xf0]  ;;  %v3608_v63 = vpop.f32.mrf.mxu0 }
 0x26b   :  { %v5230_v10 = vld [vmem:[#allocation4 + $0x458] sm:$0xf]  ;;  %v4975_v18 = vor.u32 %v7043_v5, %v4974_v2 }
 0x26c   :  { %3849 = vmatpush.bf16.msra.mxu3 %v5583_v30  ;;  %3824 = vmatpush.bf16.msra.mxu1 %v5039_v49  ;;  %v7107_v11 = vld [vmem:[#allocation4 + $0x474] sm:$0xf0] }
 0x26d   :  { %v5486_v12 = vld [vmem:[#allocation4 + $0x658] sm:$0xf]  ;;  %v5231_v19 = vor.u32 %v7107_v11, %v5230_v10 }
 0x26e   :  { %3837 = vmatpush.bf16.msra.mxu2 %v5295_v39  ;;  %v7171_v13 = vld [vmem:[#allocation4 + $0x674] sm:$0xf0]  ;;  %3812 = vmatpush.bf16.msra.mxu0 %v4751_v58 }
 0x26f   :  { %v4686_v16 = vld [vmem:[#allocation4 + $0x18] sm:$0xf]  ;;  %v5487_v23 = vor.u32 %v7171_v13, %v5486_v12 }
 0x270   :  { %3850 = vmatpush.bf16.msra.mxu3 %v5551_v56  ;;  %v6971_v17 = vld [vmem:[#allocation4 + $0x34] sm:$0xf0]  ;;  %3825 = vmatpush.bf16.msra.mxu1 %v5007_v61 }
 0x271   :  { %v4942_v20 = vld [vmem:[#allocation4 + $0x218] sm:$0xf]  ;;  %v4687_v31 = vor.u32 %v6971_v17, %v4686_v16 }
 0x272   :  { %3838 = vmatpush.bf16.msra.mxu2 %v5263_v62  ;;  %v7035_v6 = vld [vmem:[#allocation4 + $0x234] sm:$0xf0]  ;;  %3813 = vmatpush.bf16.msra.mxu0 %v4719_v14 }
 0x273   :  { %v5198_v21 = vld [vmem:[#allocation4 + $0x418] sm:$0xf]  ;;  %v4943_v35 = vor.u32 %v7035_v6, %v4942_v20 }
 0x274   :  { %3851 = vmatpush.bf16.msra.mxu3 %v5519_v4  ;;  %v7099_v24 = vld [vmem:[#allocation4 + $0x434] sm:$0xf0]  ;;  %3826 = vmatpush.bf16.msra.mxu1 %v4975_v18 }
 0x275   :  { %v5454_v26 = vld [vmem:[#allocation4 + $0x618] sm:$0xf]  ;;  %v5199_v36 = vor.u32 %v7099_v24, %v5198_v21 }
 0x276   :  { %v7163_v27 = vld [vmem:[#allocation4 + $0x634] sm:$0xf0]  ;;  %3839 = vmatpush.bf16.msra.mxu2 %v5231_v19  ;;  %3814 = vmatpush.bf16.msra.mxu0 %v4687_v31  ;;  %v7796_v19 = vld [vmem:[#allocation6] sm:$0xff] }
 0x277   :  { %v5934_v28 = vld [vmem:[#allocation4 + $0x9d8] sm:$0xf]  ;;  %v5455_v39 = vor.u32 %v7163_v27, %v5454_v26  ;;  %v611_v20 = vperm.slane %v7796_v19, 4 }
 0x278   :  { %v7283_v29 = vld [vmem:[#allocation4 + $0x9f4] sm:$0xf0]  ;;  %3852 = vmatpush.bf16.msra.mxu3 %v5487_v23  ;;  %3827 = vmatpush.bf16.msra.mxu1 %v4943_v35 }
 0x279   :  { %v6190_v30 = vld [vmem:[#allocation4 + $0xbd8] sm:$0xf]  ;;  %v5935_v41 = vor.u32 %v7283_v29, %v5934_v28  ;;  %3815 = vmatmul.bf16.vlgmr.msra.gmra.mxu0 %v7702_v9 }
 0x27a   :  { %v7347_v32 = vld [vmem:[#allocation4 + $0xbf4] sm:$0xf0]  ;;  %3840 = vmatpush.bf16.msra.mxu2 %v5199_v36 }
 0x27b   :  { %v6446_v33 = vld [vmem:[#allocation4 + $0xdd8] sm:$0xf]  ;;  %v6191_v42 = vor.u32 %v7347_v32, %v6190_v30  ;;  %3859 = vmatpush.bf16.msrb.mxu0 %v5935_v41  ;;  %3828 = vmatmul.bf16.vlgmr.msra.gmra.mxu1 %v7709_v25 }
 0x27c   :  { %v7411_v47 = vld [vmem:[#allocation4 + $0xdf4] sm:$0xf0]  ;;  %3853 = vmatpush.bf16.msra.mxu3 %v5455_v39 }
 0x27d   :  { %v6702_v7 = vld [vmem:[#allocation4 + $0xfd8] sm:$0xf]  ;;  %v6447_v43 = vor.u32 %v7411_v47, %v6446_v33  ;;  %3872 = vmatpush.bf16.msrb.mxu1 %v6191_v42  ;;  %3841 = vmatmul.bf16.vlgmr.msra.gmra.mxu2 %v7700_v8  ;;  %v3609_v33 = vadd.f32 %v3608_v63, %v611_v20  ;;  %v3621_v47 = vpop.f32.mrf.mxu1 }
 0x27e   :  { %v7475_v49 = vld [vmem:[#allocation4 + $0xff4] sm:$0xf0] }
 0x27f   :  { %v5902_v44 = vld [vmem:[#allocation4 + $0x998] sm:$0xf]  ;;  %v6703_v50 = vor.u32 %v7475_v49, %v6702_v7  ;;  %3885 = vmatpush.bf16.msrb.mxu2 %v6447_v43  ;;  %3854 = vmatmul.bf16.vlgmr.msra.gmra.mxu3 %v7704_v15  ;;  %v3622_v42 = vadd.f32 %v3621_v47, %v3609_v33 }
 0x280   :  { %v7275_v56 = vld [vmem:[#allocation4 + $0x9b4] sm:$0xf0] }
 0x281   :  { %v6158_v46 = vld [vmem:[#allocation4 + $0xb98] sm:$0xf]  ;;  %v5903_v58 = vor.u32 %v7275_v56, %v5902_v44  ;;  %3898 = vmatpush.bf16.msrb.mxu3 %v6703_v50 }
 0x282   :  { %v7339_v51 = vld [vmem:[#allocation4 + $0xbb4] sm:$0xf0] }
 0x283   :  { %v6414_v53 = vld [vmem:[#allocation4 + $0xd98] sm:$0xf]  ;;  %v6159_v60 = vor.u32 %v7339_v51, %v6158_v46  ;;  %3860 = vmatpush.bf16.msrb.mxu0 %v5903_v58 }
 0x284   :  { %v7403_v54 = vld [vmem:[#allocation4 + $0xdb4] sm:$0xf0] }
 0x285   :  { %v6670_v55 = vld [vmem:[#allocation4 + $0xf98] sm:$0xf]  ;;  %v6415_v61 = vor.u32 %v7403_v54, %v6414_v53  ;;  %3873 = vmatpush.bf16.msrb.mxu1 %v6159_v60  ;;  %v3634_v53 = vpop.f32.mrf.mxu2 }
 0x286   :  { %v7467_v57 = vld [vmem:[#allocation4 + $0xfb4] sm:$0xf0]  ;;  %v3635_v60 = vadd.f32 %v3634_v53, %v3622_v42  ;;  %v5424_v42 = vld [vmem:[#allocation4 + $0x5f8] sm:$0xf0] }
 0x287   :  { %v5870_v62 = vld [vmem:[#allocation4 + $0x958] sm:$0xf]  ;;  %v6671_v2 = vor.u32 %v7467_v57, %v6670_v55  ;;  %3886 = vmatpush.bf16.msrb.mxu2 %v6415_v61  ;;  %v3647_v61 = vpop.f32.mrf.mxu3 }
 0x288   :  { %v7267_v0 = vld [vmem:[#allocation4 + $0x974] sm:$0xf0] }
 0x289   :  { %v6126_v1 = vld [vmem:[#allocation4 + $0xb58] sm:$0xf]  ;;  %v5871_v12 = vor.u32 %v7267_v0, %v5870_v62  ;;  %3899 = vmatpush.bf16.msrb.mxu3 %v6671_v2  ;;  %v7799_v2 = vadd.f32 %v3647_v61, %v3635_v60  ;;  %v5136_v61 = vld [vmem:[#allocation4 + $0x3b8] sm:$0xf0] }
 0x28a   :  { %v7331_v3 = vld [vmem:[#allocation4 + $0xb74] sm:$0xf0] }
 0x28b   :  { %v6382_v4 = vld [vmem:[#allocation4 + $0xd58] sm:$0xf]  ;;  %v6127_v14 = vor.u32 %v7331_v3, %v6126_v1  ;;  %3861 = vmatpush.bf16.msrb.mxu0 %v5871_v12  ;;  %v3610_v3 = vpop.f32.mrf.mxu0 }
 0x28c   :  { %v7395_v5 = vld [vmem:[#allocation4 + $0xd74] sm:$0xf0]  ;;  %v5648_v3 = vld [vmem:[#allocation4 + $0x7b8] sm:$0xf0] }
 0x28d   :  { %v6638_v10 = vld [vmem:[#allocation4 + $0xf58] sm:$0xf]  ;;  %v6383_v16 = vor.u32 %v7395_v5, %v6382_v4  ;;  %3874 = vmatpush.bf16.msrb.mxu1 %v6127_v14 }
 0x28e   :  { %v7459_v11 = vld [vmem:[#allocation4 + $0xf74] sm:$0xf0] }
 0x28f   :  { %v5838_v13 = vld [vmem:[#allocation4 + $0x918] sm:$0xf]  ;;  %v6639_v6 = vor.u32 %v7459_v11, %v6638_v10  ;;  %3887 = vmatpush.bf16.msrb.mxu2 %v6383_v16  ;;  %v3649_v47 = vpop.f32.mrf.mxu3 }
 0x290   :  { %v7259_v17 = vld [vmem:[#allocation4 + $0x934] sm:$0xf0] }
 0x291   :  { %v6094_v18 = vld [vmem:[#allocation4 + $0xb18] sm:$0xf]  ;;  %v5839_v27 = vor.u32 %v7259_v17, %v5838_v13  ;;  %3900 = vmatpush.bf16.msrb.mxu3 %v6639_v6  ;;  %v3623_v13 = vpop.f32.mrf.mxu1 }
 0x292   :  { %v7323_v21 = vld [vmem:[#allocation4 + $0xb34] sm:$0xf0]  ;;  %v7071_v13 = vld [vmem:[#allocation4 + $0x35c] sm:$0xf] }
 0x293   :  { %v6350_v22 = vld [vmem:[#allocation4 + $0xd18] sm:$0xf]  ;;  %v6095_v28 = vor.u32 %v7323_v21, %v6094_v18  ;;  %3862 = vmatpush.bf16.msrb.mxu0 %v5839_v27  ;;  %v3660_v47 = vpop.f32.mrf.mxu0 }
 0x294   :  { %v7387_v23 = vld [vmem:[#allocation4 + $0xd34] sm:$0xf0] }
 0x295   :  { %v6606_v24 = vld [vmem:[#allocation4 + $0xf18] sm:$0xf]  ;;  %v6351_v29 = vor.u32 %v7387_v23, %v6350_v22  ;;  %3875 = vmatpush.bf16.msrb.mxu1 %v6095_v28 }
 0x296   :  { %v7451_v26 = vld [vmem:[#allocation4 + $0xf34] sm:$0xf0] }
 0x297   :  { %v5806_v30 = vld [vmem:[#allocation4 + $0x8d8] sm:$0xf]  ;;  %v6607_v35 = vor.u32 %v7451_v26, %v6606_v24  ;;  %3888 = vmatpush.bf16.msrb.mxu2 %v6351_v29  ;;  %v3636_v29 = vpop.f32.mrf.mxu2 }
 0x298   :  { %v7251_v31 = vld [vmem:[#allocation4 + $0x8f4] sm:$0xf0]  ;;  %v7127_v29 = vld [vmem:[#allocation4 + $0x51c] sm:$0xf] }
 0x299   :  { %v6062_v32 = vld [vmem:[#allocation4 + $0xad8] sm:$0xf]  ;;  %v5807_v43 = vor.u32 %v7251_v31, %v5806_v30  ;;  %3901 = vmatpush.bf16.msrb.mxu3 %v6607_v35  ;;  %v7023_v35 = vld [vmem:[#allocation4 + $0x1dc] sm:$0xf] }
 0x29a   :  { %v7315_v36 = vld [vmem:[#allocation4 + $0xaf4] sm:$0xf0] }
 0x29b   :  { %v6318_v7 = vld [vmem:[#allocation4 + $0xcd8] sm:$0xf]  ;;  %v6063_v44 = vor.u32 %v7315_v36, %v6062_v32  ;;  %3863 = vmatpush.bf16.msrb.mxu0 %v5807_v43  ;;  %v4912_v36 = vld [vmem:[#allocation4 + $0x1f8] sm:$0xf0] }
 0x29c   :  { %v7379_v49 = vld [vmem:[#allocation4 + $0xcf4] sm:$0xf0] }
 0x29d   :  { %v6574_v39 = vld [vmem:[#allocation4 + $0xed8] sm:$0xf]  ;;  %v6319_v56 = vor.u32 %v7379_v49, %v6318_v7  ;;  %3876 = vmatpush.bf16.msrb.mxu1 %v6063_v44  ;;  %v7087_v7 = vld [vmem:[#allocation4 + $0x3dc] sm:$0xf] }
 0x29e   :  { %v7443_v41 = vld [vmem:[#allocation4 + $0xef4] sm:$0xf0] }
 0x29f   :  { %v5774_v46 = vld [vmem:[#allocation4 + $0x898] sm:$0xf]  ;;  %v6575_v54 = vor.u32 %v7443_v41, %v6574_v39  ;;  %3889 = vmatpush.bf16.msrb.mxu2 %v6319_v56  ;;  %v5168_v39 = vld [vmem:[#allocation4 + $0x3f8] sm:$0xf0] }
 0x2a0   :  { %v7243_v50 = vld [vmem:[#allocation4 + $0x8b4] sm:$0xf0]  ;;  %v7151_v41 = vld [vmem:[#allocation4 + $0x5dc] sm:$0xf]  ;;  %v5171_v53 = vor.u32 %v7087_v7, %v5168_v39 }
 0x2a1   :  { %v6030_v51 = vld [vmem:[#allocation4 + $0xa98] sm:$0xf]  ;;  %v5775_v1 = vor.u32 %v7243_v50, %v5774_v46  ;;  %3902 = vmatpush.bf16.msrb.mxu3 %v6575_v54  ;;  %v7215_v56 = vld [vmem:[#allocation4 + $0x7dc] sm:$0xf]  ;;  %v5427_v54 = vor.u32 %v7151_v41, %v5424_v42  ;;  %v3661_v41 = vadd.f32 %v3660_v47, %v7799_v2  ;;  %v3673_v42 = vpop.f32.mrf.mxu1 }
 0x2a2   :  { %v7307_v55 = vld [vmem:[#allocation4 + $0xab4] sm:$0xf0]  ;;  %v5680_v46 = vld [vmem:[#allocation4 + $0x7f8] sm:$0xf0] }
 0x2a3   :  { %v6286_v57 = vld [vmem:[#allocation4 + $0xc98] sm:$0xf]  ;;  %v6031_v4 = vor.u32 %v7307_v55, %v6030_v51  ;;  %3864 = vmatpush.bf16.msrb.mxu0 %v5775_v1  ;;  %v4915_v51 = vor.u32 %v7023_v35, %v4912_v36  ;;  %v7015_v55 = vld [vmem:[#allocation4 + $0x19c] sm:$0xf]  ;;  %v5683_v60 = vor.u32 %v7215_v56, %v5680_v46 }
 0x2a4   :  { %v7371_v58 = vld [vmem:[#allocation4 + $0xcb4] sm:$0xf0]  ;;  %v7207_v1 = vld [vmem:[#allocation4 + $0x79c] sm:$0xf] }
 0x2a5   :  { %v6542_v62 = vld [vmem:[#allocation4 + $0xe98] sm:$0xf]  ;;  %v6287_v5 = vor.u32 %v7371_v58, %v6286_v57  ;;  %3877 = vmatpush.bf16.msrb.mxu1 %v6031_v4  ;;  %v4880_v57 = vld [vmem:[#allocation4 + $0x1b8] sm:$0xf0] }
 0x2a6   :  { %v7435_v0 = vld [vmem:[#allocation4 + $0xeb4] sm:$0xf0]  ;;  %v7079_v58 = vld [vmem:[#allocation4 + $0x39c] sm:$0xf]  ;;  %v4883_v4 = vor.u32 %v7015_v55, %v4880_v57 }
 0x2a7   :  { %v5742_v10 = vld [vmem:[#allocation4 + $0x858] sm:$0xf]  ;;  %v6543_v14 = vor.u32 %v7435_v0, %v6542_v62  ;;  %3890 = vmatpush.bf16.msrb.mxu2 %v6287_v5  ;;  %v7143_v62 = vld [vmem:[#allocation4 + $0x59c] sm:$0xf]  ;;  %v5139_v5 = vor.u32 %v7079_v58, %v5136_v61 }
 0x2a8   :  { %v7235_v11 = vld [vmem:[#allocation4 + $0x874] sm:$0xf0]  ;;  %v5392_v0 = vld [vmem:[#allocation4 + $0x5b8] sm:$0xf0] }
 0x2a9   :  { %v5998_v12 = vld [vmem:[#allocation4 + $0xa58] sm:$0xf]  ;;  %v5743_v21 = vor.u32 %v7235_v11, %v5742_v10  ;;  %3903 = vmatpush.bf16.msrb.mxu3 %v6543_v14  ;;  %v5395_v10 = vor.u32 %v7143_v62, %v5392_v0  ;;  %v7007_v11 = vld [vmem:[#allocation4 + $0x15c] sm:$0xf]  ;;  %v5651_v14 = vor.u32 %v7207_v1, %v5648_v3  ;;  %v3686_v62 = vpop.f32.mrf.mxu2 }
 0x2aa   :  { %v7299_v16 = vld [vmem:[#allocation4 + $0xa74] sm:$0xf0]  ;;  %v6991_v7 = vld [vmem:[#allocation4 + $0xdc] sm:$0xf] }
 0x2ab   :  { %v6254_v17 = vld [vmem:[#allocation4 + $0xc58] sm:$0xf]  ;;  %v5999_v24 = vor.u32 %v7299_v16, %v5998_v12  ;;  %3865 = vmatpush.bf16.msrb.mxu0 %v5743_v21  ;;  %v4848_v12 = vld [vmem:[#allocation4 + $0x178] sm:$0xf0] }
 0x2ac   :  { %v7363_v18 = vld [vmem:[#allocation4 + $0xc74] sm:$0xf0]  ;;  %v5104_v16 = vld [vmem:[#allocation4 + $0x378] sm:$0xf0]  ;;  %v4851_v21 = vor.u32 %v7007_v11, %v4848_v12 }
 0x2ad   :  { %v6510_v20 = vld [vmem:[#allocation4 + $0xe58] sm:$0xf]  ;;  %v6255_v26 = vor.u32 %v7363_v18, %v6254_v17  ;;  %3878 = vmatpush.bf16.msrb.mxu1 %v5999_v24  ;;  %v7135_v17 = vld [vmem:[#allocation4 + $0x55c] sm:$0xf] }
 0x2ae   :  { %v7427_v6 = vld [vmem:[#allocation4 + $0xe74] sm:$0xf0]  ;;  %v5360_v18 = vld [vmem:[#allocation4 + $0x578] sm:$0xf0] }
 0x2af   :  { %v5710_v22 = vld [vmem:[#allocation4 + $0x818] sm:$0xf]  ;;  %v6511_v30 = vor.u32 %v7427_v6, %v6510_v20  ;;  %3891 = vmatpush.bf16.msrb.mxu2 %v6255_v26  ;;  %v7199_v20 = vld [vmem:[#allocation4 + $0x75c] sm:$0xf] }
 0x2b0   :  { %v7227_v23 = vld [vmem:[#allocation4 + $0x834] sm:$0xf0]  ;;  %v5616_v6 = vld [vmem:[#allocation4 + $0x778] sm:$0xf0] }
 0x2b1   :  { %v5966_v27 = vld [vmem:[#allocation4 + $0xa18] sm:$0xf]  ;;  %v5711_v49 = vor.u32 %v7227_v23, %v5710_v22  ;;  %3904 = vmatpush.bf16.msrb.mxu3 %v6511_v30  ;;  %v5107_v22 = vor.u32 %v7071_v13, %v5104_v16  ;;  %v5363_v23 = vor.u32 %v7135_v17, %v5360_v18  ;;  %v6999_v24 = vld [vmem:[#allocation4 + $0x11c] sm:$0xf] }
 0x2b2   :  { %v7291_v63 = vld [vmem:[#allocation4 + $0xa34] sm:$0xf0]  ;;  %v4816_v26 = vld [vmem:[#allocation4 + $0x138] sm:$0xf0] }
 0x2b3   :  { %v6222_v28 = vld [vmem:[#allocation4 + $0xc18] sm:$0xf]  ;;  %v5967_v43 = vor.u32 %v7291_v63, %v5966_v27  ;;  %3866 = vmatpush.bf16.msrb.mxu0 %v5711_v49  ;;  %v7063_v27 = vld [vmem:[#allocation4 + $0x31c] sm:$0xf]  ;;  %v5619_v63 = vor.u32 %v7199_v20, %v5616_v6 }
 0x2b4   :  { %v7355_v31 = vld [vmem:[#allocation4 + $0xc34] sm:$0xf0]  ;;  %v5328_v30 = vld [vmem:[#allocation4 + $0x538] sm:$0xf0] }
 0x2b5   :  { %v6478_v32 = vld [vmem:[#allocation4 + $0xe18] sm:$0xf]  ;;  %v6223_v44 = vor.u32 %v7355_v31, %v6222_v28  ;;  %3879 = vmatpush.bf16.msrb.mxu1 %v5967_v43  ;;  %v5072_v28 = vld [vmem:[#allocation4 + $0x338] sm:$0xf0]  ;;  %v5331_v36 = vor.u32 %v7127_v29, %v5328_v30 }
 0x2b6   :  { %v7419_v33 = vld [vmem:[#allocation4 + $0xe34] sm:$0xf0]  ;;  %3867 = vmatmul.bf16.vlgmr.msrb.gmra.mxu0 %v7714_v37  ;;  %v7191_v31 = vld [vmem:[#allocation4 + $0x71c] sm:$0xf]  ;;  %v5075_v35 = vor.u32 %v7063_v27, %v5072_v28 }
 0x2b7   :  { %v6479_v50 = vor.u32 %v7419_v33, %v6478_v32  ;;  %3892 = vmatpush.bf16.msrb.mxu2 %v6223_v44  ;;  %3911 = vmatpush.bf16.msra.mxu0 %v4915_v51  ;;  %v5584_v32 = vld [vmem:[#allocation4 + $0x738] sm:$0xf0]  ;;  %v4819_v33 = vor.u32 %v6999_v24, %v4816_v26 }
 0x2b8   :  { %3880 = vmatmul.bf16.vlgmr.msrb.gmra.mxu1 %v7718_v40  ;;  %v4784_v49 = vld [vmem:[#allocation4 + $0xf8] sm:$0xf0]  ;;  %v5587_v43 = vor.u32 %v7191_v31, %v5584_v32 }
 0x2b9   :  { %3905 = vmatpush.bf16.msrb.mxu3 %v6479_v50  ;;  %3924 = vmatpush.bf16.msra.mxu1 %v5171_v53  ;;  %v7055_v39 = vld [vmem:[#allocation4 + $0x2dc] sm:$0xf]  ;;  %v3674_v53 = vadd.f32 %v3673_v42, %v3661_v41 }
 0x2ba   :  { %3893 = vmatmul.bf16.vlgmr.msrb.gmra.mxu2 %v7712_v34  ;;  %v5040_v44 = vld [vmem:[#allocation4 + $0x2f8] sm:$0xf0] }
 0x2bb   :  { %3937 = vmatpush.bf16.msra.mxu2 %v5427_v54  ;;  %3912 = vmatpush.bf16.msra.mxu0 %v4883_v4  ;;  %v7119_v56 = vld [vmem:[#allocation4 + $0x4dc] sm:$0xf]  ;;  %v4787_v54 = vor.u32 %v6991_v7, %v4784_v49  ;;  %v5043_v55 = vor.u32 %v7055_v39, %v5040_v44  ;;  %v3687_v4 = vadd.f32 %v3686_v62, %v3674_v53 }
 0x2bc   :  { %3906 = vmatmul.bf16.vlgmr.msrb.gmra.mxu3 %v7716_v38  ;;  %v5296_v46 = vld [vmem:[#allocation4 + $0x4f8] sm:$0xf0] }
 0x2bd   :  { %3950 = vmatpush.bf16.msra.mxu3 %v5683_v60  ;;  %3925 = vmatpush.bf16.msra.mxu1 %v5139_v5  ;;  %v7183_v50 = vld [vmem:[#allocation4 + $0x6dc] sm:$0xf]  ;;  %v5299_v57 = vor.u32 %v7119_v56, %v5296_v46  ;;  %v3699_v5 = vpop.f32.mrf.mxu3 }
 0x2be   :  { %v5552_v51 = vld [vmem:[#allocation4 + $0x6f8] sm:$0xf0]  ;;  %v7806_v13 = vadd.f32 %v3699_v5, %v3687_v4 }
 0x2bf   :  { %3938 = vmatpush.bf16.msra.mxu2 %v5395_v10  ;;  %3913 = vmatpush.bf16.msra.mxu0 %v4851_v21  ;;  %v6983_v58 = vld [vmem:[#allocation4 + $0x9c] sm:$0xf]  ;;  %v5555_v2 = vor.u32 %v7183_v50, %v5552_v51  ;;  %v3675_v21 = vpop.f32.mrf.mxu1 }
 0x2c0   :  { %v4752_v60 = vld [vmem:[#allocation4 + $0xb8] sm:$0xf0] }
 0x2c1   :  { %3951 = vmatpush.bf16.msra.mxu3 %v5651_v14  ;;  %3926 = vmatpush.bf16.msra.mxu1 %v5107_v22  ;;  %v7047_v61 = vld [vmem:[#allocation4 + $0x29c] sm:$0xf]  ;;  %v4755_v12 = vor.u32 %v6983_v58, %v4752_v60  ;;  %v3662_v14 = vpop.f32.mrf.mxu0 }
 0x2c2   :  { %v5008_v0 = vld [vmem:[#allocation4 + $0x2b8] sm:$0xf0] }
 0x2c3   :  { %3939 = vmatpush.bf16.msra.mxu2 %v5363_v23  ;;  %3914 = vmatpush.bf16.msra.mxu0 %v4819_v33  ;;  %v7111_v1 = vld [vmem:[#allocation4 + $0x49c] sm:$0xf]  ;;  %v5011_v16 = vor.u32 %v7047_v61, %v5008_v0 }
 0x2c4   :  { %v5264_v3 = vld [vmem:[#allocation4 + $0x4b8] sm:$0xf0] }
 0x2c5   :  { %3952 = vmatpush.bf16.msra.mxu3 %v5619_v63  ;;  %3927 = vmatpush.bf16.msra.mxu1 %v5075_v35  ;;  %v7175_v10 = vld [vmem:[#allocation4 + $0x69c] sm:$0xf]  ;;  %v5267_v17 = vor.u32 %v7111_v1, %v5264_v3  ;;  %v3701_v42 = vpop.f32.mrf.mxu3 }
 0x2c6   :  { %v5520_v11 = vld [vmem:[#allocation4 + $0x6b8] sm:$0xf0] }
 0x2c7   :  { %3940 = vmatpush.bf16.msra.mxu2 %v5331_v36  ;;  %3915 = vmatpush.bf16.msra.mxu0 %v4787_v54  ;;  %v6975_v18 = vld [vmem:[#allocation4 + $0x5c] sm:$0xf]  ;;  %v5523_v22 = vor.u32 %v7175_v10, %v5520_v11  ;;  %v3688_v36 = vpop.f32.mrf.mxu2 }
 0x2c8   :  { %v4720_v20 = vld [vmem:[#allocation4 + $0x78] sm:$0xf0] }
 0x2c9   :  { %3953 = vmatpush.bf16.msra.mxu3 %v5587_v43  ;;  %3928 = vmatpush.bf16.msra.mxu1 %v5043_v55  ;;  %v7039_v6 = vld [vmem:[#allocation4 + $0x25c] sm:$0xf]  ;;  %v4723_v28 = vor.u32 %v6975_v18, %v4720_v20 }
 0x2ca   :  { %v4976_v23 = vld [vmem:[#allocation4 + $0x278] sm:$0xf0] }
 0x2cb   :  { %3941 = vmatpush.bf16.msra.mxu2 %v5299_v57  ;;  %v7103_v24 = vld [vmem:[#allocation4 + $0x45c] sm:$0xf]  ;;  %3916 = vmatpush.bf16.msra.mxu0 %v4755_v12  ;;  %v4979_v31 = vor.u32 %v7039_v6, %v4976_v23 }
 0x2cc   :  { %v5232_v26 = vld [vmem:[#allocation4 + $0x478] sm:$0xf0] }
 0x2cd   :  { %3954 = vmatpush.bf16.msra.mxu3 %v5555_v2  ;;  %v7167_v27 = vld [vmem:[#allocation4 + $0x65c] sm:$0xf]  ;;  %3929 = vmatpush.bf16.msra.mxu1 %v5011_v16  ;;  %v5235_v32 = vor.u32 %v7103_v24, %v5232_v26 }
 0x2ce   :  { %v5488_v63 = vld [vmem:[#allocation4 + $0x678] sm:$0xf0] }
 0x2cf   :  { %v6967_v29 = vld [vmem:[#allocation4 + $0x1c] sm:$0xf]  ;;  %3942 = vmatpush.bf16.msra.mxu2 %v5267_v17  ;;  %v5491_v7 = vor.u32 %v7167_v27, %v5488_v63  ;;  %3917 = vmatpush.bf16.msra.mxu0 %v4723_v28 }
 0x2d0   :  { %v4688_v30 = vld [vmem:[#allocation4 + $0x38] sm:$0xf0] }
 0x2d1   :  { %v7031_v33 = vld [vmem:[#allocation4 + $0x21c] sm:$0xf]  ;;  %3955 = vmatpush.bf16.msra.mxu3 %v5523_v22  ;;  %v4691_v46 = vor.u32 %v6967_v29, %v4688_v30  ;;  %3930 = vmatpush.bf16.msra.mxu1 %v4979_v31 }
 0x2d2   :  { %v4944_v47 = vld [vmem:[#allocation4 + $0x238] sm:$0xf0] }
 0x2d3   :  { %v7095_v35 = vld [vmem:[#allocation4 + $0x41c] sm:$0xf]  ;;  %3943 = vmatpush.bf16.msra.mxu2 %v5235_v32  ;;  %v4947_v54 = vor.u32 %v7031_v33, %v4944_v47  ;;  %3918 = vmatpush.bf16.msra.mxu0 %v4691_v46 }
 0x2d4   :  { %v5200_v49 = vld [vmem:[#allocation4 + $0x438] sm:$0xf0] }
 0x2d5   :  { %v7159_v39 = vld [vmem:[#allocation4 + $0x61c] sm:$0xf]  ;;  %v5203_v55 = vor.u32 %v7095_v35, %v5200_v49  ;;  %3956 = vmatpush.bf16.msra.mxu3 %v5491_v7  ;;  %3931 = vmatpush.bf16.msra.mxu1 %v4947_v54  ;;  %v7812_v49 = vpop.f32.mrf.mxu0 }
 0x2d6   :  { %v5456_v41 = vld [vmem:[#allocation4 + $0x638] sm:$0xf0]  ;;  %3919 = vmatmul.bf16.vlgmr.msra.gmra.mxu0 %v7702_v9 }
 0x2d7   :  { %v7279_v43 = vld [vmem:[#allocation4 + $0x9dc] sm:$0xf]  ;;  %v5459_v60 = vor.u32 %v7159_v39, %v5456_v41  ;;  %3944 = vmatpush.bf16.msra.mxu2 %v5203_v55 }
 0x2d8   :  { %v5936_v44 = vld [vmem:[#allocation4 + $0x9f8] sm:$0xf0]  ;;  %3932 = vmatmul.bf16.vlgmr.msra.gmra.mxu1 %v7709_v25 }
 0x2d9   :  { %v7343_v56 = vld [vmem:[#allocation4 + $0xbdc] sm:$0xf]  ;;  %v5939_v61 = vor.u32 %v7279_v43, %v5936_v44  ;;  %3957 = vmatpush.bf16.msra.mxu3 %v5459_v60  ;;  %v7814_v44 = vpop.f32.mrf.mxu1 }
 0x2da   :  { %v6192_v50 = vld [vmem:[#allocation4 + $0xbf8] sm:$0xf0]  ;;  %3945 = vmatmul.bf16.vlgmr.msra.gmra.mxu2 %v7700_v8 }
 0x2db   :  { %v7407_v51 = vld [vmem:[#allocation4 + $0xddc] sm:$0xf]  ;;  %v6195_v62 = vor.u32 %v7343_v56, %v6192_v50  ;;  %3963 = vmatpush.bf16.msrb.mxu0 %v5939_v61 }
 0x2dc   :  { %v6448_v53 = vld [vmem:[#allocation4 + $0xdf8] sm:$0xf0]  ;;  %3958 = vmatmul.bf16.vlgmr.msra.gmra.mxu3 %v7704_v15 }
 0x2dd   :  { %v7471_v57 = vld [vmem:[#allocation4 + $0xfdc] sm:$0xf]  ;;  %v6451_v2 = vor.u32 %v7407_v51, %v6448_v53  ;;  %3976 = vmatpush.bf16.msrb.mxu1 %v6195_v62 }
 0x2de   :  { %v6704_v58 = vld [vmem:[#allocation4 + $0xff8] sm:$0xf0] }
 0x2df   :  { %v7271_v0 = vld [vmem:[#allocation4 + $0x99c] sm:$0xf]  ;;  %v6707_v4 = vor.u32 %v7471_v57, %v6704_v58  ;;  %3989 = vmatpush.bf16.msrb.mxu2 %v6451_v2  ;;  %v7816_v2 = vpop.f32.mrf.mxu2 }
 0x2e0   :  { %v5904_v1 = vld [vmem:[#allocation4 + $0x9b8] sm:$0xf0] }
 0x2e1   :  { %v7335_v3 = vld [vmem:[#allocation4 + $0xb9c] sm:$0xf]  ;;  %v5907_v16 = vor.u32 %v7271_v0, %v5904_v1  ;;  %4002 = vmatpush.bf16.msrb.mxu3 %v6707_v4 }
 0x2e2   :  { %v6160_v5 = vld [vmem:[#allocation4 + $0xbb8] sm:$0xf0] }
 0x2e3   :  { %v7399_v10 = vld [vmem:[#allocation4 + $0xd9c] sm:$0xf]  ;;  %v6163_v17 = vor.u32 %v7335_v3, %v6160_v5  ;;  %3964 = vmatpush.bf16.msrb.mxu0 %v5907_v16  ;;  %v7818_v5 = vpop.f32.mrf.mxu3 }
 0x2e4   :  { %v6416_v11 = vld [vmem:[#allocation4 + $0xdb8] sm:$0xf0] }
 0x2e5   :  { %v7463_v12 = vld [vmem:[#allocation4 + $0xf9c] sm:$0xf]  ;;  %v6419_v18 = vor.u32 %v7399_v10, %v6416_v11  ;;  %3977 = vmatpush.bf16.msrb.mxu1 %v6163_v17 }
 0x2e6   :  { %v6672_v14 = vld [vmem:[#allocation4 + $0xfb8] sm:$0xf0] }
 0x2e7   :  { %v7263_v20 = vld [vmem:[#allocation4 + $0x95c] sm:$0xf]  ;;  %v6675_v22 = vor.u32 %v7463_v12, %v6672_v14  ;;  %3990 = vmatpush.bf16.msrb.mxu2 %v6419_v18  ;;  %v3714_v14 = vpop.f32.mrf.mxu0 }
 0x2e8   :  { %v5872_v6 = vld [vmem:[#allocation4 + $0x978] sm:$0xf0] }
 0x2e9   :  { %v7327_v21 = vld [vmem:[#allocation4 + $0xb5c] sm:$0xf]  ;;  %v5875_v28 = vor.u32 %v7263_v20, %v5872_v6  ;;  %4003 = vmatpush.bf16.msrb.mxu3 %v6675_v22 }
 0x2ea   :  { %v6128_v23 = vld [vmem:[#allocation4 + $0xb78] sm:$0xf0] }
 0x2eb   :  { %v7391_v24 = vld [vmem:[#allocation4 + $0xd5c] sm:$0xf]  ;;  %v6131_v29 = vor.u32 %v7327_v21, %v6128_v23  ;;  %3965 = vmatpush.bf16.msrb.mxu0 %v5875_v28  ;;  %v3727_v21 = vpop.f32.mrf.mxu1 }
 0x2ec   :  { %v6384_v26 = vld [vmem:[#allocation4 + $0xd78] sm:$0xf0]  ;;  %v7502_v21 = vld [vmem:[%s8048_s3 + $0xd0] sm:$0xff] }
 0x2ed   :  { %v7455_v27 = vld [vmem:[#allocation4 + $0xf5c] sm:$0xf]  ;;  %v6387_v30 = vor.u32 %v7391_v24, %v6384_v26  ;;  %3978 = vmatpush.bf16.msrb.mxu1 %v6131_v29 }
 0x2ee   :  { %v6640_v63 = vld [vmem:[#allocation4 + $0xf78] sm:$0xf0] }
 0x2ef   :  { %v7255_v31 = vld [vmem:[#allocation4 + $0x91c] sm:$0xf]  ;;  %v6643_v33 = vor.u32 %v7455_v27, %v6640_v63  ;;  %3991 = vmatpush.bf16.msrb.mxu2 %v6387_v30 }
 0x2f0   :  { %v5840_v32 = vld [vmem:[#allocation4 + $0x938] sm:$0xf0] }
 0x2f1   :  { %v7319_v8 = vld [vmem:[#allocation4 + $0xb1c] sm:$0xf]  ;;  %v5843_v15 = vor.u32 %v7255_v31, %v5840_v32  ;;  %4004 = vmatpush.bf16.msrb.mxu3 %v6643_v33  ;;  %v3740_v33 = vpop.f32.mrf.mxu2 }
 0x2f2   :  { %v6096_v47 = vld [vmem:[#allocation4 + $0xb38] sm:$0xf0]  ;;  %v7500_v33 = vld [vmem:[%s8048_s3 + $0xc0] sm:$0xff] }
 0x2f3   :  { %v7383_v35 = vld [vmem:[#allocation4 + $0xd1c] sm:$0xf]  ;;  %v6099_v25 = vor.u32 %v7319_v8, %v6096_v47  ;;  %3966 = vmatpush.bf16.msrb.mxu0 %v5843_v15 }
 0x2f4   :  { %v6352_v36 = vld [vmem:[#allocation4 + $0xd38] sm:$0xf0] }
 0x2f5   :  { %v7447_v7 = vld [vmem:[#allocation4 + $0xf1c] sm:$0xf]  ;;  %v6355_v39 = vor.u32 %v7383_v35, %v6352_v36  ;;  %3979 = vmatpush.bf16.msrb.mxu1 %v6099_v25 }
 0x2f6   :  { %v6608_v9 = vld [vmem:[#allocation4 + $0xf38] sm:$0xf0] }
 0x2f7   :  { %v7247_v41 = vld [vmem:[#allocation4 + $0x8dc] sm:$0xf]  ;;  %v6611_v56 = vor.u32 %v7447_v7, %v6608_v9  ;;  %3992 = vmatpush.bf16.msrb.mxu2 %v6355_v39  ;;  %v3753_v9 = vpop.f32.mrf.mxu3 }
 0x2f8   :  { %v5808_v42 = vld [vmem:[#allocation4 + $0x8f8] sm:$0xf0] }
 0x2f9   :  { %v7311_v43 = vld [vmem:[#allocation4 + $0xadc] sm:$0xf]  ;;  %v5811_v55 = vor.u32 %v7247_v41, %v5808_v42  ;;  %4005 = vmatpush.bf16.msrb.mxu3 %v6611_v56 }
 0x2fa   :  { %v6064_v46 = vld [vmem:[#allocation4 + $0xaf8] sm:$0xf0] }
 0x2fb   :  { %v7375_v50 = vld [vmem:[#allocation4 + $0xcdc] sm:$0xf]  ;;  %v6067_v57 = vor.u32 %v7311_v43, %v6064_v46  ;;  %3967 = vmatpush.bf16.msrb.mxu0 %v5811_v55  ;;  %v7498_v55 = vld [vmem:[%s8048_s3 + $0xb0] sm:$0xff] }
 0x2fc   :  { %v6320_v51 = vld [vmem:[#allocation4 + $0xcf8] sm:$0xf0] }
 0x2fd   :  { %v7439_v53 = vld [vmem:[#allocation4 + $0xedc] sm:$0xf]  ;;  %v6323_v58 = vor.u32 %v7375_v50, %v6320_v51  ;;  %3980 = vmatpush.bf16.msrb.mxu1 %v6067_v57  ;;  %v7506_v57 = vld [vmem:[%s8048_s3 + $0xf0] sm:$0xff] }
 0x2fe   :  { %v6576_v54 = vld [vmem:[#allocation4 + $0xef8] sm:$0xf0] }
 0x2ff   :  { %v7239_v60 = vld [vmem:[#allocation4 + $0x89c] sm:$0xf]  ;;  %v6579_v0 = vor.u32 %v7439_v53, %v6576_v54  ;;  %3993 = vmatpush.bf16.msrb.mxu2 %v6323_v58  ;;  %v7482_v53 = vld [vmem:[%s8048_s3 + $0x30] sm:$0xff]  ;;  %v7481_v58 = vld [vmem:[%s8048_s3 + $0x28] sm:$0xff]  ;;  %v7890_v14 = vpop.f32.mrf.mxu3 }
 0x300   :  { %v5776_v61 = vld [vmem:[#allocation4 + $0x8b8] sm:$0xf0]  ;;  %v7490_v54 = vld [vmem:[%s8048_s3 + $0x70] sm:$0xff] }
 0x301   :  { %v7303_v62 = vld [vmem:[#allocation4 + $0xa9c] sm:$0xf]  ;;  %v5779_v12 = vor.u32 %v7239_v60, %v5776_v61  ;;  %4006 = vmatpush.bf16.msrb.mxu3 %v6579_v0  ;;  %v7497_v60 = vld [vmem:[%s8048_s3 + $0xa8] sm:$0xff]  ;;  %v7488_v61 = vld [vmem:[%s8048_s3 + $0x60] sm:$0xff]  ;;  %v7871_v0 = vpop.f32.mrf.mxu1 }
 0x302   :  { %v6032_v1 = vld [vmem:[#allocation4 + $0xab8] sm:$0xf0] }
 0x303   :  { %v7367_v3 = vld [vmem:[#allocation4 + $0xc9c] sm:$0xf]  ;;  %v6035_v16 = vor.u32 %v7303_v62, %v6032_v1  ;;  %3968 = vmatpush.bf16.msrb.mxu0 %v5779_v12  ;;  %v7496_v62 = vld [vmem:[%s8048_s3 + $0xa0] sm:$0xff] }
 0x304   :  { %v6288_v4 = vld [vmem:[#allocation4 + $0xcb8] sm:$0xf0]  ;;  %v7504_v1 = vld [vmem:[%s8048_s3 + $0xe0] sm:$0xff] }
 0x305   :  { %v7431_v10 = vld [vmem:[#allocation4 + $0xe9c] sm:$0xf]  ;;  %v6291_v17 = vor.u32 %v7367_v3, %v6288_v4  ;;  %3981 = vmatpush.bf16.msrb.mxu1 %v6035_v16  ;;  %v7478_v16 = vld [vmem:[%s8048_s3 + $0x10] sm:$0xff] }
 0x306   :  { %v6544_v11 = vld [vmem:[#allocation4 + $0xeb8] sm:$0xf0] }
 0x307   :  { %v7231_v18 = vld [vmem:[#allocation4 + $0x85c] sm:$0xf]  ;;  %v6547_v22 = vor.u32 %v7431_v10, %v6544_v11  ;;  %3994 = vmatpush.bf16.msrb.mxu2 %v6291_v17  ;;  %v7885_v11 = vpop.f32.mrf.mxu2 }
 0x308   :  { %v5744_v20 = vld [vmem:[#allocation4 + $0x878] sm:$0xf0] }
 0x309   :  { %v7295_v6 = vld [vmem:[#allocation4 + $0xa5c] sm:$0xf]  ;;  %v5747_v28 = vor.u32 %v7231_v18, %v5744_v20  ;;  %4007 = vmatpush.bf16.msrb.mxu3 %v6547_v22  ;;  %v7486_v18 = vld [vmem:[%s8048_s3 + $0x50] sm:$0xff]  ;;  %v612_v22 = vperm.slane %v7796_v19, 5  ;;  %v7501_v19 = vld [vmem:[%s8048_s3 + $0xc8] sm:$0xff] }
 0x30a   :  { %v6000_v23 = vld [vmem:[#allocation4 + $0xa78] sm:$0xf0]  ;;  %v7494_v20 = vld [vmem:[%s8048_s3 + $0x90] sm:$0xff] }
 0x30b   :  { %v7359_v24 = vld [vmem:[#allocation4 + $0xc5c] sm:$0xf]  ;;  %v6003_v29 = vor.u32 %v7295_v6, %v6000_v23  ;;  %3969 = vmatpush.bf16.msrb.mxu0 %v5747_v28  ;;  %v3779_v6 = vpop.f32.mrf.mxu1  ;;  %v7477_v23 = vld [vmem:[%s8048_s3 + $0x8] sm:$0xff]  ;;  %v3713_v28 = vadd.f32 %v7812_v49, %v612_v22  ;;  %v4017_v49 = vmax.f32 %v7776_v52, 0.0 }
 0x30c   :  { %v6256_v26 = vld [vmem:[#allocation4 + $0xc78] sm:$0xf0]  ;;  %v4019_v6 = vmax.f32 %v7806_v13, 0.0 }
 0x30d   :  { %v7423_v27 = vld [vmem:[#allocation4 + $0xe5c] sm:$0xf]  ;;  %v6259_v30 = vor.u32 %v7359_v24, %v6256_v26  ;;  %3982 = vmatpush.bf16.msrb.mxu1 %v6003_v29  ;;  %v7485_v24 = vld [vmem:[%s8048_s3 + $0x48] sm:$0xff]  ;;  %v7476_v29 = vld [vmem:[%s8048_s3] sm:$0xff]  ;;  %v4025_v9 = vpack.c.bf16 %v4017_v49, %v4017_v49 }
 0x30e   :  { %v6512_v63 = vld [vmem:[#allocation4 + $0xe78] sm:$0xf0]  ;;  %v7493_v26 = vld [vmem:[%s8048_s3 + $0x88] sm:$0xff] }
 0x30f   :  { %v7223_v31 = vld [vmem:[#allocation4 + $0x81c] sm:$0xf]  ;;  %v6515_v47 = vor.u32 %v7423_v27, %v6512_v63  ;;  %3995 = vmatpush.bf16.msrb.mxu2 %v6259_v30  ;;  %v3792_v27 = vpop.f32.mrf.mxu2  ;;  %v3805_v63 = vpop.f32.mrf.mxu3  ;;  %v4015_v30 = vmax.f32 %v7746_v48, 0.0 }
 0x310   :  { %v5712_v32 = vld [vmem:[#allocation4 + $0x838] sm:$0xf0] }
 0x311   :  { %v7287_v8 = vld [vmem:[#allocation4 + $0xa1c] sm:$0xf]  ;;  %v5715_v39 = vor.u32 %v7223_v31, %v5712_v32  ;;  %4008 = vmatpush.bf16.msrb.mxu3 %v6515_v47  ;;  %v7484_v31 = vld [vmem:[%s8048_s3 + $0x40] sm:$0xff]  ;;  %v4018_v47 = vmax.f32 %v7790_v59, 0.0  ;;  %v7514_v59 = vld [vmem:[%s8048_s3 + $0x130] sm:$0xff] }
 0x312   :  { %v5968_v35 = vld [vmem:[#allocation4 + $0xa38] sm:$0xf0]  ;;  %v7492_v32 = vld [vmem:[%s8048_s3 + $0x80] sm:$0xff] }
 0x313   :  { %v7351_v36 = vld [vmem:[#allocation4 + $0xc1c] sm:$0xf]  ;;  %v5971_v41 = vor.u32 %v7287_v8, %v5968_v35  ;;  %3970 = vmatpush.bf16.msrb.mxu0 %v5715_v39  ;;  %v4016_v8 = vmax.f32 %v7760_v45, 0.0  ;;  %v4023_v45 = vpack.c.bf16 %v4015_v30, %v4015_v30  ;;  %v7530_v39 = vld [vmem:[%s8048_s3 + $0x1b0] sm:$0xff] }
 0x314   :  { %v6224_v7 = vld [vmem:[#allocation4 + $0xc38] sm:$0xf0] }
 0x315   :  { %v7415_v15 = vld [vmem:[#allocation4 + $0xe1c] sm:$0xf]  ;;  %v6227_v42 = vor.u32 %v7351_v36, %v6224_v7  ;;  %3983 = vmatpush.bf16.msrb.mxu1 %v5971_v41  ;;  %v3726_v36 = vadd.f32 %v7814_v44, %v3713_v28  ;;  %v4024_v7 = vpack.c.bf16 %v4016_v8, %v4016_v8  ;;  %v7522_v44 = vld [vmem:[%s8048_s3 + $0x170] sm:$0xff]  ;;  %v7513_v41 = vld [vmem:[%s8048_s3 + $0x128] sm:$0xff] }
 0x316   :  { %v6480_v25 = vld [vmem:[#allocation4 + $0xe38] sm:$0xf0]  ;;  %3971 = vmatmul.bf16.vlgmr.msrb.gmra.mxu0 %v7714_v37  ;;  %v7489_v37 = vld [vmem:[%s8048_s3 + $0x68] sm:$0xff] }
 0x317   :  { %v6483_v43 = vor.u32 %v7415_v15, %v6480_v25  ;;  %v7483_v56 = vld [vmem:[%s8048_s3 + $0x38] sm:$0xff]  ;;  %3996 = vmatpush.bf16.msrb.mxu2 %v6227_v42  ;;  %v4026_v15 = vpack.c.bf16 %v4018_v47, %v4018_v47  ;;  %v3739_v25 = vadd.f32 %v7816_v2, %v3726_v36  ;;  %v7521_v42 = vld [vmem:[%s8048_s3 + $0x168] sm:$0xff] }
 0x318   :  { %v7491_v46 = vld [vmem:[%s8048_s3 + $0x78] sm:$0xff]  ;;  %4547 = vmatpush.bf16.msra.mxu0 %v7483_v56  ;;  %3984 = vmatmul.bf16.vlgmr.msrb.gmra.mxu1 %v7718_v40  ;;  %v7863_v40 = vpop.f32.mrf.mxu0  ;;  %v7512_v56 = vld [vmem:[%s8048_s3 + $0x120] sm:$0xff] }
 0x319   :  { %v7499_v50 = vld [vmem:[%s8048_s3 + $0xb8] sm:$0xff]  ;;  %4009 = vmatpush.bf16.msrb.mxu3 %v6483_v43  ;;  %4560 = vmatpush.bf16.msra.mxu1 %v7491_v46  ;;  %v3752_v2 = vadd.f32 %v7818_v5, %v3739_v25  ;;  %v7529_v43 = vld [vmem:[%s8048_s3 + $0x1a8] sm:$0xff]  ;;  %v7528_v5 = vld [vmem:[%s8048_s3 + $0x1a0] sm:$0xff] }
 0x31a   :  { %v7507_v51 = vld [vmem:[%s8048_s3 + $0xf8] sm:$0xff]  ;;  %3997 = vmatmul.bf16.vlgmr.msrb.gmra.mxu2 %v7712_v34  ;;  %v7505_v34 = vld [vmem:[%s8048_s3 + $0xe8] sm:$0xff] }
 0x31b   :  { %4573 = vmatpush.bf16.msra.mxu2 %v7499_v50  ;;  %v7479_v3 = vld [vmem:[%s8048_s3 + $0x18] sm:$0xff]  ;;  %v7520_v50 = vld [vmem:[%s8048_s3 + $0x160] sm:$0xff] }
 0x31c   :  { %4010 = vmatmul.bf16.vlgmr.msrb.gmra.mxu3 %v7716_v38  ;;  %4548 = vmatpush.bf16.msra.mxu0 %v7482_v53  ;;  %v7480_v38 = vld [vmem:[%s8048_s3 + $0x20] sm:$0xff]  ;;  %v7487_v4 = vld [vmem:[%s8048_s3 + $0x58] sm:$0xff]  ;;  %v3765_v53 = vadd.f32 %v7863_v40, %v3752_v2  ;;  %v7518_v40 = vld [vmem:[%s8048_s3 + $0x150] sm:$0xff] }
 0x31d   :  { %4586 = vmatpush.bf16.msra.mxu3 %v7507_v51  ;;  %4561 = vmatpush.bf16.msra.mxu1 %v7490_v54  ;;  %v7495_v10 = vld [vmem:[%s8048_s3 + $0x98] sm:$0xff]  ;;  %v3829_v51 = vpop.f32.mrf.mxu1 }
 0x31e   :  { %v7503_v12 = vld [vmem:[%s8048_s3 + $0xd8] sm:$0xff] }
 0x31f   :  { %4574 = vmatpush.bf16.msra.mxu2 %v7498_v55  ;;  %v7515_v48 = vld [vmem:[%s8048_s3 + $0x138] sm:$0xff] }
 0x320   :  { %4549 = vmatpush.bf16.msra.mxu0 %v7481_v58  ;;  %v3766_v17 = vpop.f32.mrf.mxu0  ;;  %v7523_v35 = vld [vmem:[%s8048_s3 + $0x178] sm:$0xff]  ;;  %v3778_v58 = vadd.f32 %v7871_v0, %v3765_v53  ;;  %v7991_v0 = vld [vmem:[#allocation6] sm:$0xff] }
 0x321   :  { %4587 = vmatpush.bf16.msra.mxu3 %v7506_v57  ;;  %4562 = vmatpush.bf16.msra.mxu1 %v7489_v37  ;;  %v7531_v52 = vld [vmem:[%s8048_s3 + $0x1b8] sm:$0xff]  ;;  %v3842_v57 = vpop.f32.mrf.mxu2  ;;  %v3855_v37 = vpop.f32.mrf.mxu3 }
 0x322   :  { %v7511_v54 = vld [vmem:[%s8048_s3 + $0x118] sm:$0xff] }
 0x323   :  { %4575 = vmatpush.bf16.msra.mxu2 %v7497_v60  ;;  %v7519_v55 = vld [vmem:[%s8048_s3 + $0x158] sm:$0xff] }
 0x324   :  { %4550 = vmatpush.bf16.msra.mxu0 %v7480_v38  ;;  %v7527_v60 = vld [vmem:[%s8048_s3 + $0x198] sm:$0xff] }
 0x325   :  { %4588 = vmatpush.bf16.msra.mxu3 %v7505_v34  ;;  %4563 = vmatpush.bf16.msra.mxu1 %v7488_v61  ;;  %v7510_v34 = vld [vmem:[%s8048_s3 + $0x110] sm:$0xff]  ;;  %v3831_v61 = vpop.f32.mrf.mxu1  ;;  %v7539_v8 = vld [vmem:[%s8048_s3 + $0x1f8] sm:$0xff] }
 0x327   :  { %4576 = vmatpush.bf16.msra.mxu2 %v7496_v62  ;;  %v3791_v62 = vadd.f32 %v7885_v11, %v3778_v58 }
 0x328   :  { %4551 = vmatpush.bf16.msra.mxu0 %v7479_v3  ;;  %v3816_v46 = vpop.f32.mrf.mxu0  ;;  %v7526_v3 = vld [vmem:[%s8048_s3 + $0x190] sm:$0xff] }
 0x329   :  { %4589 = vmatpush.bf16.msra.mxu3 %v7504_v1  ;;  %4564 = vmatpush.bf16.msra.mxu1 %v7487_v4  ;;  %v613_v1 = vperm.slane %v7991_v0, 6  ;;  %v7509_v4 = vld [vmem:[%s8048_s3 + $0x108] sm:$0xff]  ;;  %v3844_v11 = vpop.f32.mrf.mxu2 }
 0x32a   :  { %v7546_v11 = vld [vmem:[#allocation7] ss:$0 sm:$0xff] }
 0x32b   :  { %4577 = vmatpush.bf16.msra.mxu2 %v7495_v10  ;;  %v7517_v10 = vld [vmem:[%s8048_s3 + $0x148] sm:$0xff]  ;;  %v3817_v17 = vadd.f32 %v3816_v46, %v613_v1  ;;  %v614_v46 = vperm.slane %v7991_v0, 7 }
 0x32c   :  { %4552 = vmatpush.bf16.msra.mxu0 %v7478_v16  ;;  %v3857_v16 = vpop.f32.mrf.mxu3 }
 0x32d   :  { %4590 = vmatpush.bf16.msra.mxu3 %v7503_v12  ;;  %4565 = vmatpush.bf16.msra.mxu1 %v7486_v18  ;;  %v3804_v12 = vadd.f32 %v7890_v14, %v3791_v62  ;;  %v7525_v18 = vld [vmem:[%s8048_s3 + $0x188] sm:$0xff]  ;;  %v3830_v22 = vadd.f32 %v3829_v51, %v3817_v17 }
 0x32f   :  { %4578 = vmatpush.bf16.msra.mxu2 %v7494_v20  ;;  %v7508_v20 = vld [vmem:[%s8048_s3 + $0x100] sm:$0xff]  ;;  %v4020_v14 = vmax.f32 %v3804_v12, 0.0  ;;  %v3843_v27 = vadd.f32 %v3842_v57, %v3830_v22 }
 0x330   :  { %4553 = vmatpush.bf16.msra.mxu0 %v7477_v23  ;;  %v3818_v38 = vpop.f32.mrf.mxu0  ;;  %v7524_v23 = vld [vmem:[%s8048_s3 + $0x180] sm:$0xff] }
 0x331   :  { %4591 = vmatpush.bf16.msra.mxu3 %v7502_v21  ;;  %4566 = vmatpush.bf16.msra.mxu1 %v7485_v24  ;;  %v7516_v21 = vld [vmem:[%s8048_s3 + $0x140] sm:$0xff]  ;;  %v4027_v24 = vpack.c.bf16 %v4019_v6, %v4019_v6  ;;  %v3856_v13 = vadd.f32 %v3855_v37, %v3843_v27 }
 0x333   :  { %4579 = vmatpush.bf16.msra.mxu2 %v7493_v26  ;;  %v4028_v26 = vpack.c.bf16 %v4020_v14, %v4020_v14 }
 0x334   :  { %4554 = vmatpush.bf16.msra.mxu0 %v7476_v29 }
 0x335   :  { %4592 = vmatpush.bf16.msra.mxu3 %v7501_v19  ;;  %4567 = vmatpush.bf16.msra.mxu1 %v7484_v31  ;;  %v3881_v28 = vpop.f32.mrf.mxu1 }
 0x337   :  { %4580 = vmatpush.bf16.msra.mxu2 %v7492_v32  ;;  %4555 = vmatmul.bf16.vlgmr.msra.gmra.mxu0 %v4023_v45  ;;  %v7537_v45 = vld [vmem:[%s8048_s3 + $0x1e8] sm:$0xff] }
 0x338   :  { %4599 = vmatpush.bf16.msrb.mxu0 %v7515_v48  ;;  %4568 = vmatmul.bf16.vlgmr.msra.gmra.mxu1 %v4024_v7  ;;  %v3868_v19 = vpop.f32.mrf.mxu0  ;;  %v7538_v48 = vld [vmem:[%s8048_s3 + $0x1f0] sm:$0xff] }
 0x339   :  { %4593 = vmatpush.bf16.msra.mxu3 %v7500_v33  ;;  %4612 = vmatpush.bf16.msrb.mxu1 %v7523_v35  ;;  %v3869_v63 = vadd.f32 %v3868_v19, %v3856_v13 }
 0x33a   :  { %4581 = vmatmul.bf16.vlgmr.msra.gmra.mxu2 %v4025_v9  ;;  %v7536_v9 = vld [vmem:[%s8048_s3 + $0x1e0] sm:$0xff] }
 0x33b   :  { %4625 = vmatpush.bf16.msrb.mxu2 %v7531_v52  ;;  %v3882_v29 = vadd.f32 %v3881_v28, %v3869_v63 }
 0x33c   :  { %4594 = vmatmul.bf16.vlgmr.msra.gmra.mxu3 %v4026_v15  ;;  %4600 = vmatpush.bf16.msrb.mxu0 %v7514_v59  ;;  %v7535_v59 = vld [vmem:[%s8048_s3 + $0x1d8] sm:$0xff] }
 0x33d   :  { %4613 = vmatpush.bf16.msrb.mxu1 %v7522_v44  ;;  %v3894_v30 = vpop.f32.mrf.mxu2  ;;  %4638 = vmatpush.bf16.msrb.mxu3 %v7539_v8  ;;  %v3883_v47 = vpop.f32.mrf.mxu1  ;;  %v7534_v44 = vld [vmem:[%s8048_s3 + $0x1d0] sm:$0xff] }
 0x33e   :  { %v3895_v31 = vadd.f32 %v3894_v30, %v3882_v29 }
 0x33f   :  { %4626 = vmatpush.bf16.msrb.mxu2 %v7530_v39  ;;  %v3907_v32 = vpop.f32.mrf.mxu3 }
 0x340   :  { %4601 = vmatpush.bf16.msrb.mxu0 %v7513_v41  ;;  %v3908_v49 = vadd.f32 %v3907_v32, %v3895_v31  ;;  %v3870_v33 = vpop.f32.mrf.mxu0  ;;  %v7533_v41 = vld [vmem:[%s8048_s3 + $0x1c8] sm:$0xff] }
 0x341   :  { %4614 = vmatpush.bf16.msrb.mxu1 %v7521_v42  ;;  %4639 = vmatpush.bf16.msrb.mxu3 %v7538_v48 }
 0x342   :  { %v4021_v35 = vmax.f32 %v3908_v49, 0.0 }
 0x343   :  { %4627 = vmatpush.bf16.msrb.mxu2 %v7529_v43 }
 0x344   :  { %4602 = vmatpush.bf16.msrb.mxu0 %v7512_v56  ;;  %v4029_v36 = vpack.c.bf16 %v4021_v35, %v4021_v35  ;;  %v7532_v56 = vld [vmem:[%s8048_s3 + $0x1c0] sm:$0xff] }
 0x345   :  { %4615 = vmatpush.bf16.msrb.mxu1 %v7520_v50  ;;  %v3896_v52 = vpop.f32.mrf.mxu2  ;;  %4640 = vmatpush.bf16.msrb.mxu3 %v7537_v45 }
 0x347   :  { %4628 = vmatpush.bf16.msrb.mxu2 %v7528_v5  ;;  %v3909_v7 = vpop.f32.mrf.mxu3 }
 0x348   :  { %4603 = vmatpush.bf16.msrb.mxu0 %v7511_v54 }
 0x349   :  { %4616 = vmatpush.bf16.msrb.mxu1 %v7519_v55  ;;  %4641 = vmatpush.bf16.msrb.mxu3 %v7536_v9 }
 0x34b   :  { %4629 = vmatpush.bf16.msrb.mxu2 %v7527_v60 }
 0x34c   :  { %4604 = vmatpush.bf16.msrb.mxu0 %v7510_v34 }
 0x34d   :  { %4617 = vmatpush.bf16.msrb.mxu1 %v7518_v40  ;;  %4642 = vmatpush.bf16.msrb.mxu3 %v7535_v59 }
 0x34f   :  { %4630 = vmatpush.bf16.msrb.mxu2 %v7526_v3 }
 0x350   :  { %4605 = vmatpush.bf16.msrb.mxu0 %v7509_v4 }
 0x351   :  { %4618 = vmatpush.bf16.msrb.mxu1 %v7517_v10  ;;  %4643 = vmatpush.bf16.msrb.mxu3 %v7534_v44 }
 0x353   :  { %4631 = vmatpush.bf16.msrb.mxu2 %v7525_v18  ;;  %v3920_v15 = vpop.f32.mrf.mxu0 }
 0x354   :  { %4606 = vmatpush.bf16.msrb.mxu0 %v7508_v20  ;;  %v3921_v53 = vadd.f32 %v3920_v15, %v614_v46 }
 0x355   :  { %4619 = vmatpush.bf16.msrb.mxu1 %v7516_v21  ;;  %v3933_v25 = vpop.f32.mrf.mxu1  ;;  %4644 = vmatpush.bf16.msrb.mxu3 %v7533_v41 }
 0x356   :  { %v3934_v5 = vadd.f32 %v3933_v25, %v3921_v53 }
 0x357   :  { %4607 = vmatmul.bf16.vlgmr.msrb.gmra.mxu0 %v4027_v24  ;;  %4632 = vmatpush.bf16.msrb.mxu2 %v7524_v23 }
 0x358   :  { %4620 = vmatmul.bf16.vlgmr.msrb.gmra.mxu1 %v4028_v26 }
 0x359   :  { %4645 = vmatpush.bf16.msrb.mxu3 %v7532_v56 }
 0x35a   :  { %4633 = vmatmul.bf16.vlgmr.msrb.gmra.mxu2 %v4029_v36 }
 0x35b   :  { %v3922_v2 = vpop.f32.mrf.mxu0 }
 0x35d   :  { %v3946_v39 = vpop.f32.mrf.mxu2  ;;  %v3935_v43 = vpop.f32.mrf.mxu1 }
 0x35e   :  { %v3947_v54 = vadd.f32 %v3946_v39, %v3934_v5 }
 0x35f   :  { %v3959_v42 = vpop.f32.mrf.mxu3 }
 0x360   :  { %v3960_v55 = vadd.f32 %v3959_v42, %v3947_v54 }
 0x365   :  { %v3948_v50 = vpop.f32.mrf.mxu2 }
 0x367   :  { %v3961_v51 = vpop.f32.mrf.mxu3 }
 0x393   :  { %v3972_v57 = vpop.f32.mrf.mxu0 }
 0x394   :  { %v3973_v37 = vadd.f32 %v3972_v57, %v3960_v55 }
 0x395   :  { %v3985_v58 = vpop.f32.mrf.mxu1 }
 0x396   :  { %v3986_v60 = vadd.f32 %v3985_v58, %v3973_v37 }
 0x39b   :  { %v3974_v61 = vpop.f32.mrf.mxu0 }
 0x39d   :  { %v3998_v34 = vpop.f32.mrf.mxu2  ;;  %v3987_v62 = vpop.f32.mrf.mxu1 }
 0x39e   :  { %v3999_v38 = vadd.f32 %v3998_v34, %v3986_v60 }
 0x39f   :  { %v4011_v40 = vpop.f32.mrf.mxu3 }
 0x3a0   :  { %v4012_v1 = vadd.f32 %v4011_v40, %v3999_v38 }
 0x3a2   :  { %v4022_v3 = vmax.f32 %v4012_v1, 0.0 }
 0x3a4   :  { %v4030_v4 = vpack.c.bf16 %v4022_v3, %v4022_v3 }
 0x3a5   :  { %v4000_v10 = vpop.f32.mrf.mxu2 }
 0x3a6   :  { %4646 = vmatmul.bf16.vlgmr.msrb.gmra.mxu3 %v4030_v4 }
 0x3a7   :  { %v4013_v0 = vpop.f32.mrf.mxu3 }
 0x3b4   :  { %v4556_v12 = vpop.f32.mrf.mxu0 }
 0x3b5   :  { %v4557_v16 = vadd.f32 %v7546_v11, %v4556_v12  ;;  %v4569_v17 = vpop.f32.mrf.mxu1 }
 0x3b7   :  { %v4570_v18 = vadd.f32 %v4569_v17, %v4557_v16 }
 0x3bc   :  { %v4558_v14 = vpop.f32.mrf.mxu0 }
 0x3bd   :  { %v4582_v20 = vpop.f32.mrf.mxu2  ;;  %v4571_v22 = vpop.f32.mrf.mxu1 }
 0x3be   :  { %v4583_v6 = vadd.f32 %v4582_v20, %v4570_v18 }
 0x3bf   :  { %v4595_v21 = vpop.f32.mrf.mxu3 }
 0x3c0   :  { %v4596_v23 = vadd.f32 %v4595_v21, %v4583_v6 }
 0x3c5   :  { %v4584_v24 = vpop.f32.mrf.mxu2 }
 0x3c7   :  { %v4597_v26 = vpop.f32.mrf.mxu3 }
 0x3d4   :  { %v4608_v27 = vpop.f32.mrf.mxu0 }
 0x3d5   :  { %v4609_v13 = vadd.f32 %v4608_v27, %v4596_v23  ;;  %v4621_v19 = vpop.f32.mrf.mxu1 }
 0x3d7   :  { %v4622_v63 = vadd.f32 %v4621_v19, %v4609_v13 }
 0x3dc   :  { %v4610_v28 = vpop.f32.mrf.mxu0 }
 0x3dd   :  { %v4623_v29 = vpop.f32.mrf.mxu1  ;;  %v4634_v30 = vpop.f32.mrf.mxu2 }
 0x3de   :  { %v4635_v32 = vadd.f32 %v4634_v30, %v4622_v63 }
 0x3e5   :  { %v4636_v31 = vpop.f32.mrf.mxu2 }
 0x429   :  { %v4647_v8 = vpop.f32.mrf.mxu3 }
 0x42a   :  { %v4648_v49 = vadd.f32 %v4647_v8, %v4635_v32 }
 0x42c   :  { %4652 = vst.msk [vmem:[%s8050_s5] sm:$0xff] %vm4651_vm0, %v4648_v49 }
 0x431   :  { %v4649_v33 = vpop.f32.mrf.mxu3 }
 0x432   :  { %4657 = vsyncpa [#allocation3], 1 }
 0x433   :  { %4658 = vsyncpa [#allocation5], 1 }
 0x434   :  { %4659 = vsyncpa [#allocation8], 1 }

</bundles_post_ra>
